<compile_context>
chip_gen: v7x
topology: tpu7x:2x2x1
jax: 0.10.0
libtpu: 0.0.40
codegen_flags: <defaults>
</compile_context>

<pallas_src>
import jax
import jax.numpy as jnp
from jax.experimental import pallas as pl
from jax.experimental.pallas import tpu as pltpu

EPS = 1e-5  # nn.InstanceNorm2d default eps


def resblock_kernel(x_ref, w1_ref, w2_ref, o_ref, pad_ref, patch_ref):
    # x_ref/o_ref: (H, W, C)      w*_ref: (9*C, C) bf16 fused taps (resident)
    # pad_ref:   (H+2, W+2, C) f32 zero-padded conv input scratch
    # patch_ref: (H*W, 9*C) bf16 im2col scratch (MXU LHS operand)
    H, W, C = x_ref.shape
    HW = H * W

    # Zero only the 1-pixel border (interior is fully overwritten below).
    # Re-done every step so it is correct under megacore grid sharding.
    zrow = jnp.zeros((1, W + 2, C), dtype=pad_ref.dtype)
    pad_ref[0:1, :, :] = zrow
    pad_ref[H + 1:H + 2, :, :] = zrow
    zcol = jnp.zeros((H + 2, 1, C), dtype=pad_ref.dtype)
    pad_ref[:, 0:1, :] = zcol
    pad_ref[:, W + 1:W + 2, :] = zcol

    def conv3x3(w_ref):
        # im2col: write each shifted window into a lane-aligned bf16 column
        # block of the patch scratch, then do a single matmul with K = 9*C.
        for dx in range(3):          # order must match host-side weight fusion
            for dy in range(3):
                k = dx * 3 + dy
                win = pad_ref[dy:dy + H, dx:dx + W, :]
                patch_ref[:, k * C:(k + 1) * C] = (
                    win.reshape(HW, C).astype(patch_ref.dtype))
        return jnp.dot(patch_ref[...], w_ref[...],
                       preferred_element_type=jnp.float32)   # (HW, C) f32

    def instance_norm(y):
        # Per-channel stats over the spatial axis (this grid step = one batch elem).
        mean = jnp.mean(y, axis=0, keepdims=True)
        cen = y - mean
        var = jnp.mean(cen * cen, axis=0, keepdims=True)
        return cen * jax.lax.rsqrt(var + EPS)

    # block1: conv -> InstanceNorm -> ReLU.  Conv bias omitted: InstanceNorm
    # (affine=False) subtracts the per-channel mean, cancelling the bias exactly.
    pad_ref[1:H + 1, 1:W + 1, :] = x_ref[...].astype(pad_ref.dtype)
    y1 = jnp.maximum(instance_norm(conv3x3(w1_ref)), 0.0)

    # block2: conv -> InstanceNorm (reuse the zero-bordered scratch for y1).
    pad_ref[1:H + 1, 1:W + 1, :] = y1.reshape(H, W, C)
    y2 = instance_norm(conv3x3(w2_ref))

    # Residual add (re-read x_ref here instead of keeping x live across convs).
    out = y2.reshape(H, W, C) + x_ref[...].astype(jnp.float32)
    o_ref[...] = out.astype(o_ref.dtype)


def _vmem_limit_bytes(per_step_bytes):
    """Generation-aware scoped-VMEM limit (64 MiB on v7x, 128 MiB on v5e/v6e)."""
    try:
        cap = int(getattr(pltpu.get_tpu_info(), "vmem_capacity_bytes", 128 << 20))
    except Exception:
        cap = 128 << 20
    ceiling = (cap * 3) // 4          # headroom for compiler temporaries
    return int(min(max(2 * per_step_bytes, 16 << 20), ceiling))


def resblock_nhwc(x, w1f, w2f):
    """x: (B, H, W, C) NHWC; w1f/w2f: (9*C, C) bf16 fused 3x3 weights."""
    B, H, W, C = x.shape
    assert w1f.shape == (9 * C, C) and w2f.shape == (9 * C, C)
    itemsize = jnp.dtype(x.dtype).itemsize

    blk = H * W * C * itemsize
    est = (2 * blk + 2 * blk                       # x + out, double buffered
           + 2 * 9 * C * C * 2                     # resident bf16 fused weights
           + (H + 2) * (W + 2) * C * 4             # f32 padded scratch
           + H * W * 9 * C * 2                     # bf16 im2col scratch
           + 4 * H * W * C * 4)                    # f32 intermediates headroom
    vmem_limit = _vmem_limit_bytes(est)

    cost = pl.CostEstimate(
        flops=2 * 2 * B * H * W * 9 * C * C,                   # two K=9C matmuls
        transcendentals=2 * B * C,                             # rsqrt per (n, c)
        bytes_accessed=2 * B * H * W * C * itemsize + 2 * 9 * C * C * 2,
    )

    return pl.pallas_call(
        resblock_kernel,
        out_shape=jax.ShapeDtypeStruct((B, H, W, C), x.dtype),
        grid_spec=pltpu.PrefetchScalarGridSpec(
            num_scalar_prefetch=0,
            grid=(B,),
            in_specs=[
                pl.BlockSpec((None, H, W, C), lambda b: (b, 0, 0, 0)),  # x (streamed)
                pl.BlockSpec((9 * C, C), lambda b: (0, 0)),             # W1 (resident)
                pl.BlockSpec((9 * C, C), lambda b: (0, 0)),             # W2 (resident)
            ],
            out_specs=pl.BlockSpec((None, H, W, C), lambda b: (b, 0, 0, 0)),
            scratch_shapes=[
                pltpu.VMEM((H + 2, W + 2, C), jnp.float32),   # padded conv input
                pltpu.VMEM((H * W, 9 * C), jnp.bfloat16),     # im2col patch
            ]),
        compiler_params=pltpu.CompilerParams(
            dimension_semantics=("parallel",),
            vmem_limit_bytes=vmem_limit),
        cost_estimate=cost,
    )(x, w1f, w2f)


def resblock(x_nchw, w1, b1, w2, b2):
    """ResBlock forward.

    x: (B, C, H, W)  (PyTorch NCHW layout)
    w1, w2: (3, 3, C_in, C_out) HWIO  (PyTorch OIHW weights -> transpose(2, 3, 1, 0))
    b1, b2: (C,)  accepted for API parity; mathematically cancelled by
            InstanceNorm2d(affine=False), so they are not used.
    """
    B, C, H, W = x_nchw.shape
    assert w1.shape == (3, 3, C, C) and w2.shape == (3, 3, C, C)
    del b1, b2  # cancelled by the per-channel mean subtraction in InstanceNorm

    x = jnp.transpose(x_nchw, (0, 2, 3, 1))  # NHWC: channels on the 128-lane axis

    # Fuse the 9 taps along the contraction axis in (dx, dy) order to match the
    # kernel's patch column layout: row block k = dx*3 + dy holds w[dy, dx].
    w1f = jnp.transpose(w1, (1, 0, 2, 3)).reshape(9 * C, C).astype(jnp.bfloat16)
    w2f = jnp.transpose(w2, (1, 0, 2, 3)).reshape(9 * C, C).astype(jnp.bfloat16)

    out = resblock_nhwc(x, w1f, w2f)
    return jnp.transpose(out, (0, 3, 1, 2))


def resblock_ref(x_nchw, w1, b1, w2, b2):
    """Pure-JAX reference (NHWC conv via lax.conv_general_dilated), f32, with bias."""
    x = jnp.transpose(x_nchw, (0, 2, 3, 1)).astype(jnp.float32)

    def conv(v, w, b):
        y = jax.lax.conv_general_dilated(
            v, w.astype(jnp.float32), window_strides=(1, 1),
            padding=((1, 1), (1, 1)),
            dimension_numbers=("NHWC", "HWIO", "NHWC"),
            precision=jax.lax.Precision.HIGHEST)
        return y + b.astype(jnp.float32)

    def inorm(y):
        m = jnp.mean(y, axis=(1, 2), keepdims=True)
        v = jnp.mean((y - m) ** 2, axis=(1, 2), keepdims=True)
        return (y - m) * jax.lax.rsqrt(v + EPS)

    y = jnp.maximum(inorm(conv(x, w1, b1)), 0.0)
    y = inorm(conv(y, w2, b2))
    out = y + x
    return jnp.transpose(out, (0, 3, 1, 2)).astype(x_nchw.dtype)


if __name__ == "__main__":
    key = jax.random.PRNGKey(0)
    B, C, H, W = 2, 128, 16, 16   # lane-dense channels (multiple of 128), small spatial

    kx, k1, k2, kb1, kb2 = jax.random.split(key, 5)
    x = jax.random.normal(kx, (B, C, H, W), dtype=jnp.float32)
    fan_in = 9 * C
    w1 = jax.random.normal(k1, (3, 3, C, C), dtype=jnp.float32) / jnp.sqrt(fan_in)
    w2 = jax.random.normal(k2, (3, 3, C, C), dtype=jnp.float32) / jnp.sqrt(fan_in)
    b1 = jax.random.normal(kb1, (C,), dtype=jnp.float32) * 0.01
    b2 = jax.random.normal(kb2, (C,), dtype=jnp.float32) * 0.01

    out = resblock(x, w1, b1, w2, b2)
    out = jax.block_until_ready(out)

    ref = resblock_ref(x, w1, b1, w2, b2)
    assert out.shape == (B, C, H, W)
    # Tolerance reflects bf16 MXU operands with f32 accumulation vs an f32
    # HIGHEST-precision reference (structural bugs would give O(1) errors).
    assert jnp.allclose(out, ref, atol=2e-2, rtol=2e-2), "mismatch vs reference"
    print("KERNEL_OK")
</pallas_src>

<mosaic_0001>
module attributes {stable_mosaic.version = 11 : i64} {
  func.func @resblock_kernel(%arg0: i32, %arg1: memref<1x16x16x128xf32, #tpu.memory_space<vmem>>, %arg2: memref<1152x128xbf16, #tpu.memory_space<vmem>>, %arg3: memref<1152x128xbf16, #tpu.memory_space<vmem>>, %arg4: memref<1x16x16x128xf32, #tpu.memory_space<vmem>>, %arg5: memref<18x18x128xf32, #tpu.memory_space<vmem>>, %arg6: memref<256x1152xbf16, #tpu.memory_space<vmem>>) attributes {dimension_semantics = [#tpu.dimension_semantics<parallel>], iteration_bounds = array<i64: 2>, scalar_prefetch = 0 : i64, scratch_operands = 2 : i64, tpu.core_type = #tpu.core_type<tc>, window_params = [{transform_indices = @transform_0, window_bounds = array<i64: 1, 16, 16, 128>}, {pipeline_mode = #tpu.pipeline_mode<synchronous>, transform_indices = @transform_1, window_bounds = array<i64: 1152, 128>}, {pipeline_mode = #tpu.pipeline_mode<synchronous>, transform_indices = @transform_2, window_bounds = array<i64: 1152, 128>}, {transform_indices = @transform_3, window_bounds = array<i64: 1, 16, 16, 128>}]} {
    %cst = arith.constant 0.000000e+00 : f32
    %0 = vector.broadcast %cst : f32 to vector<1x18x128xf32>
    %c0 = arith.constant 0 : index
    %c0_0 = arith.constant 0 : index
    %c0_1 = arith.constant 0 : index
    %1 = vector.load %arg5[%c0, %c0_0, %c0_1] : memref<18x18x128xf32, #tpu.memory_space<vmem>>, vector<1x18x128xf32>
    tpu.vector_store %arg5[%c0, %c0_0, %c0_1], %0 {strides = array<i32>} : memref<18x18x128xf32, #tpu.memory_space<vmem>>, vector<1x18x128xf32>,
    %c17 = arith.constant 17 : index
    %c0_2 = arith.constant 0 : index
    %c0_3 = arith.constant 0 : index
    %2 = vector.load %arg5[%c17, %c0_2, %c0_3] : memref<18x18x128xf32, #tpu.memory_space<vmem>>, vector<1x18x128xf32>
    tpu.vector_store %arg5[%c17, %c0_2, %c0_3], %0 {strides = array<i32>} : memref<18x18x128xf32, #tpu.memory_space<vmem>>, vector<1x18x128xf32>,
    %cst_4 = arith.constant 0.000000e+00 : f32
    %3 = vector.broadcast %cst_4 : f32 to vector<18x1x128xf32>
    %c0_5 = arith.constant 0 : index
    %c0_6 = arith.constant 0 : index
    %c0_7 = arith.constant 0 : index
    %4 = vector.load %arg5[%c0_5, %c0_6, %c0_7] : memref<18x18x128xf32, #tpu.memory_space<vmem>>, vector<18x1x128xf32>
    tpu.vector_store %arg5[%c0_5, %c0_6, %c0_7], %3 {strides = array<i32>} : memref<18x18x128xf32, #tpu.memory_space<vmem>>, vector<18x1x128xf32>,
    %c0_8 = arith.constant 0 : index
    %c17_9 = arith.constant 17 : index
    %c0_10 = arith.constant 0 : index
    %5 = vector.load %arg5[%c0_8, %c17_9, %c0_10] : memref<18x18x128xf32, #tpu.memory_space<vmem>>, vector<18x1x128xf32>
    tpu.vector_store %arg5[%c0_8, %c17_9, %c0_10], %3 {strides = array<i32>} : memref<18x18x128xf32, #tpu.memory_space<vmem>>, vector<18x1x128xf32>,
    %c0_11 = arith.constant 0 : index
    %c0_12 = arith.constant 0 : index
    %c0_13 = arith.constant 0 : index
    %c0_14 = arith.constant 0 : index
    %6 = vector.load %arg1[%c0_11, %c0_12, %c0_13, %c0_14] : memref<1x16x16x128xf32, #tpu.memory_space<vmem>>, vector<1x16x16x128xf32>
    %7 = vector.shape_cast %6 : vector<1x16x16x128xf32> to vector<16x16x128xf32>
    %c1 = arith.constant 1 : index
    %c1_15 = arith.constant 1 : index
    %c0_16 = arith.constant 0 : index
    %8 = vector.load %arg5[%c1, %c1_15, %c0_16] : memref<18x18x128xf32, #tpu.memory_space<vmem>>, vector<16x16x128xf32>
    tpu.vector_store %arg5[%c1, %c1_15, %c0_16], %7 {strides = array<i32>} : memref<18x18x128xf32, #tpu.memory_space<vmem>>, vector<16x16x128xf32>,
    %c0_17 = arith.constant 0 : index
    %c0_18 = arith.constant 0 : index
    %c0_19 = arith.constant 0 : index
    %9 = vector.load %arg5[%c0_17, %c0_18, %c0_19] : memref<18x18x128xf32, #tpu.memory_space<vmem>>, vector<16x16x128xf32>
    %10 = vector.shape_cast %9 : vector<16x16x128xf32> to vector<256x128xf32>
    %11 = arith.truncf %10 : vector<256x128xf32> to vector<256x128xbf16>
    %c0_20 = arith.constant 0 : index
    %c0_21 = arith.constant 0 : index
    %12 = vector.load %arg6[%c0_20, %c0_21] : memref<256x1152xbf16, #tpu.memory_space<vmem>>, vector<256x128xbf16>
    tpu.vector_store %arg6[%c0_20, %c0_21], %11 {strides = array<i32>} : memref<256x1152xbf16, #tpu.memory_space<vmem>>, vector<256x128xbf16>,
    %c1_22 = arith.constant 1 : index
    %c0_23 = arith.constant 0 : index
    %c0_24 = arith.constant 0 : index
    %13 = vector.load %arg5[%c1_22, %c0_23, %c0_24] : memref<18x18x128xf32, #tpu.memory_space<vmem>>, vector<16x16x128xf32>
    %14 = vector.shape_cast %13 : vector<16x16x128xf32> to vector<256x128xf32>
    %15 = arith.truncf %14 : vector<256x128xf32> to vector<256x128xbf16>
    %c0_25 = arith.constant 0 : index
    %c128 = arith.constant 128 : index
    %16 = vector.load %arg6[%c0_25, %c128] : memref<256x1152xbf16, #tpu.memory_space<vmem>>, vector<256x128xbf16>
    tpu.vector_store %arg6[%c0_25, %c128], %15 {strides = array<i32>} : memref<256x1152xbf16, #tpu.memory_space<vmem>>, vector<256x128xbf16>,
    %c2 = arith.constant 2 : index
    %c0_26 = arith.constant 0 : index
    %c0_27 = arith.constant 0 : index
    %17 = vector.load %arg5[%c2, %c0_26, %c0_27] : memref<18x18x128xf32, #tpu.memory_space<vmem>>, vector<16x16x128xf32>
    %18 = vector.shape_cast %17 : vector<16x16x128xf32> to vector<256x128xf32>
    %19 = arith.truncf %18 : vector<256x128xf32> to vector<256x128xbf16>
    %c0_28 = arith.constant 0 : index
    %c256 = arith.constant 256 : index
    %20 = vector.load %arg6[%c0_28, %c256] : memref<256x1152xbf16, #tpu.memory_space<vmem>>, vector<256x128xbf16>
    tpu.vector_store %arg6[%c0_28, %c256], %19 {strides = array<i32>} : memref<256x1152xbf16, #tpu.memory_space<vmem>>, vector<256x128xbf16>,
    %c0_29 = arith.constant 0 : index
    %c1_30 = arith.constant 1 : index
    %c0_31 = arith.constant 0 : index
    %21 = vector.load %arg5[%c0_29, %c1_30, %c0_31] : memref<18x18x128xf32, #tpu.memory_space<vmem>>, vector<16x16x128xf32>
    %22 = vector.shape_cast %21 : vector<16x16x128xf32> to vector<256x128xf32>
    %23 = arith.truncf %22 : vector<256x128xf32> to vector<256x128xbf16>
    %c0_32 = arith.constant 0 : index
    %c384 = arith.constant 384 : index
    %24 = vector.load %arg6[%c0_32, %c384] : memref<256x1152xbf16, #tpu.memory_space<vmem>>, vector<256x128xbf16>
    tpu.vector_store %arg6[%c0_32, %c384], %23 {strides = array<i32>} : memref<256x1152xbf16, #tpu.memory_space<vmem>>, vector<256x128xbf16>,
    %c1_33 = arith.constant 1 : index
    %c1_34 = arith.constant 1 : index
    %c0_35 = arith.constant 0 : index
    %25 = vector.load %arg5[%c1_33, %c1_34, %c0_35] : memref<18x18x128xf32, #tpu.memory_space<vmem>>, vector<16x16x128xf32>
    %26 = vector.shape_cast %25 : vector<16x16x128xf32> to vector<256x128xf32>
    %27 = arith.truncf %26 : vector<256x128xf32> to vector<256x128xbf16>
    %c0_36 = arith.constant 0 : index
    %c512 = arith.constant 512 : index
    %28 = vector.load %arg6[%c0_36, %c512] : memref<256x1152xbf16, #tpu.memory_space<vmem>>, vector<256x128xbf16>
    tpu.vector_store %arg6[%c0_36, %c512], %27 {strides = array<i32>} : memref<256x1152xbf16, #tpu.memory_space<vmem>>, vector<256x128xbf16>,
    %c2_37 = arith.constant 2 : index
    %c1_38 = arith.constant 1 : index
    %c0_39 = arith.constant 0 : index
    %29 = vector.load %arg5[%c2_37, %c1_38, %c0_39] : memref<18x18x128xf32, #tpu.memory_space<vmem>>, vector<16x16x128xf32>
    %30 = vector.shape_cast %29 : vector<16x16x128xf32> to vector<256x128xf32>
    %31 = arith.truncf %30 : vector<256x128xf32> to vector<256x128xbf16>
    %c0_40 = arith.constant 0 : index
    %c640 = arith.constant 640 : index
    %32 = vector.load %arg6[%c0_40, %c640] : memref<256x1152xbf16, #tpu.memory_space<vmem>>, vector<256x128xbf16>
    tpu.vector_store %arg6[%c0_40, %c640], %31 {strides = array<i32>} : memref<256x1152xbf16, #tpu.memory_space<vmem>>, vector<256x128xbf16>,
    %c0_41 = arith.constant 0 : index
    %c2_42 = arith.constant 2 : index
    %c0_43 = arith.constant 0 : index
    %33 = vector.load %arg5[%c0_41, %c2_42, %c0_43] : memref<18x18x128xf32, #tpu.memory_space<vmem>>, vector<16x16x128xf32>
    %34 = vector.shape_cast %33 : vector<16x16x128xf32> to vector<256x128xf32>
    %35 = arith.truncf %34 : vector<256x128xf32> to vector<256x128xbf16>
    %c0_44 = arith.constant 0 : index
    %c768 = arith.constant 768 : index
    %36 = vector.load %arg6[%c0_44, %c768] : memref<256x1152xbf16, #tpu.memory_space<vmem>>, vector<256x128xbf16>
    tpu.vector_store %arg6[%c0_44, %c768], %35 {strides = array<i32>} : memref<256x1152xbf16, #tpu.memory_space<vmem>>, vector<256x128xbf16>,
    %c1_45 = arith.constant 1 : index
    %c2_46 = arith.constant 2 : index
    %c0_47 = arith.constant 0 : index
    %37 = vector.load %arg5[%c1_45, %c2_46, %c0_47] : memref<18x18x128xf32, #tpu.memory_space<vmem>>, vector<16x16x128xf32>
    %38 = vector.shape_cast %37 : vector<16x16x128xf32> to vector<256x128xf32>
    %39 = arith.truncf %38 : vector<256x128xf32> to vector<256x128xbf16>
    %c0_48 = arith.constant 0 : index
    %c896 = arith.constant 896 : index
    %40 = vector.load %arg6[%c0_48, %c896] : memref<256x1152xbf16, #tpu.memory_space<vmem>>, vector<256x128xbf16>
    tpu.vector_store %arg6[%c0_48, %c896], %39 {strides = array<i32>} : memref<256x1152xbf16, #tpu.memory_space<vmem>>, vector<256x128xbf16>,
    %c2_49 = arith.constant 2 : index
    %c2_50 = arith.constant 2 : index
    %c0_51 = arith.constant 0 : index
    %41 = vector.load %arg5[%c2_49, %c2_50, %c0_51] : memref<18x18x128xf32, #tpu.memory_space<vmem>>, vector<16x16x128xf32>
    %42 = vector.shape_cast %41 : vector<16x16x128xf32> to vector<256x128xf32>
    %43 = arith.truncf %42 : vector<256x128xf32> to vector<256x128xbf16>
    %c0_52 = arith.constant 0 : index
    %c1024 = arith.constant 1024 : index
    %44 = vector.load %arg6[%c0_52, %c1024] : memref<256x1152xbf16, #tpu.memory_space<vmem>>, vector<256x128xbf16>
    tpu.vector_store %arg6[%c0_52, %c1024], %43 {strides = array<i32>} : memref<256x1152xbf16, #tpu.memory_space<vmem>>, vector<256x128xbf16>,
    %c0_53 = arith.constant 0 : index
    %c0_54 = arith.constant 0 : index
    %45 = vector.load %arg6[%c0_53, %c0_54] : memref<256x1152xbf16, #tpu.memory_space<vmem>>, vector<256x1152xbf16>
    %c0_55 = arith.constant 0 : index
    %c0_56 = arith.constant 0 : index
    %46 = vector.load %arg2[%c0_55, %c0_56] : memref<1152x128xbf16, #tpu.memory_space<vmem>>, vector<1152x128xbf16>
    %cst_57 = arith.constant dense<0.000000e+00> : vector<256x128xf32>
    %47 = tpu.matmul %45, %46, %cst_57 {dimension_numbers = #tpu.dot_dimension_numbers<[1], [0], [0], [1], [0, 0, 1, 1], [], []>} : vector<256x1152xbf16>, vector<1152x128xbf16>, vector<256x128xf32> -> vector<256x128xf32>
    %cst_58 = arith.constant dense<0.000000e+00> : vector<128xf32>
    %48 = vector.multi_reduction <add>, %47, %cst_58 [0] : vector<256x128xf32> to vector<128xf32>
    %49 = vector.shape_cast %48 : vector<128xf32> to vector<1x128xf32>
    %cst_59 = arith.constant 2.560000e+02 : f32
    %50 = vector.broadcast %cst_59 : f32 to vector<1x128xf32>
    %51 = arith.divf %49, %50 : vector<1x128xf32>
    %52 = vector.broadcast %51 : vector<1x128xf32> to vector<256x128xf32>
    %53 = arith.subf %47, %52 : vector<256x128xf32>
    %54 = arith.mulf %53, %53 : vector<256x128xf32>
    %cst_60 = arith.constant dense<0.000000e+00> : vector<128xf32>
    %55 = vector.multi_reduction <add>, %54, %cst_60 [0] : vector<256x128xf32> to vector<128xf32>
    %56 = vector.shape_cast %55 : vector<128xf32> to vector<1x128xf32>
    %cst_61 = arith.constant 2.560000e+02 : f32
    %57 = vector.broadcast %cst_61 : f32 to vector<1x128xf32>
    %58 = arith.divf %56, %57 : vector<1x128xf32>
    %cst_62 = arith.constant 9.99999974E-6 : f32
    %59 = vector.broadcast %cst_62 : f32 to vector<1x128xf32>
    %60 = arith.addf %58, %59 : vector<1x128xf32>
    %61 = math.rsqrt %60 : vector<1x128xf32>
    %62 = vector.broadcast %61 : vector<1x128xf32> to vector<256x128xf32>
    %63 = arith.mulf %53, %62 : vector<256x128xf32>
    %cst_63 = arith.constant 0.000000e+00 : f32
    %64 = vector.broadcast %cst_63 : f32 to vector<256x128xf32>
    %65 = arith.maximumf %63, %64 : vector<256x128xf32>
    %66 = vector.shape_cast %65 : vector<256x128xf32> to vector<16x16x128xf32>
    %c1_64 = arith.constant 1 : index
    %c1_65 = arith.constant 1 : index
    %c0_66 = arith.constant 0 : index
    %67 = vector.load %arg5[%c1_64, %c1_65, %c0_66] : memref<18x18x128xf32, #tpu.memory_space<vmem>>, vector<16x16x128xf32>
    tpu.vector_store %arg5[%c1_64, %c1_65, %c0_66], %66 {strides = array<i32>} : memref<18x18x128xf32, #tpu.memory_space<vmem>>, vector<16x16x128xf32>,
    %c0_67 = arith.constant 0 : index
    %c0_68 = arith.constant 0 : index
    %c0_69 = arith.constant 0 : index
    %68 = vector.load %arg5[%c0_67, %c0_68, %c0_69] : memref<18x18x128xf32, #tpu.memory_space<vmem>>, vector<16x16x128xf32>
    %69 = vector.shape_cast %68 : vector<16x16x128xf32> to vector<256x128xf32>
    %70 = arith.truncf %69 : vector<256x128xf32> to vector<256x128xbf16>
    %c0_70 = arith.constant 0 : index
    %c0_71 = arith.constant 0 : index
    %71 = vector.load %arg6[%c0_70, %c0_71] : memref<256x1152xbf16, #tpu.memory_space<vmem>>, vector<256x128xbf16>
    tpu.vector_store %arg6[%c0_70, %c0_71], %70 {strides = array<i32>} : memref<256x1152xbf16, #tpu.memory_space<vmem>>, vector<256x128xbf16>,
    %c1_72 = arith.constant 1 : index
    %c0_73 = arith.constant 0 : index
    %c0_74 = arith.constant 0 : index
    %72 = vector.load %arg5[%c1_72, %c0_73, %c0_74] : memref<18x18x128xf32, #tpu.memory_space<vmem>>, vector<16x16x128xf32>
    %73 = vector.shape_cast %72 : vector<16x16x128xf32> to vector<256x128xf32>
    %74 = arith.truncf %73 : vector<256x128xf32> to vector<256x128xbf16>
    %c0_75 = arith.constant 0 : index
    %c128_76 = arith.constant 128 : index
    %75 = vector.load %arg6[%c0_75, %c128_76] : memref<256x1152xbf16, #tpu.memory_space<vmem>>, vector<256x128xbf16>
    tpu.vector_store %arg6[%c0_75, %c128_76], %74 {strides = array<i32>} : memref<256x1152xbf16, #tpu.memory_space<vmem>>, vector<256x128xbf16>,
    %c2_77 = arith.constant 2 : index
    %c0_78 = arith.constant 0 : index
    %c0_79 = arith.constant 0 : index
    %76 = vector.load %arg5[%c2_77, %c0_78, %c0_79] : memref<18x18x128xf32, #tpu.memory_space<vmem>>, vector<16x16x128xf32>
    %77 = vector.shape_cast %76 : vector<16x16x128xf32> to vector<256x128xf32>
    %78 = arith.truncf %77 : vector<256x128xf32> to vector<256x128xbf16>
    %c0_80 = arith.constant 0 : index
    %c256_81 = arith.constant 256 : index
    %79 = vector.load %arg6[%c0_80, %c256_81] : memref<256x1152xbf16, #tpu.memory_space<vmem>>, vector<256x128xbf16>
    tpu.vector_store %arg6[%c0_80, %c256_81], %78 {strides = array<i32>} : memref<256x1152xbf16, #tpu.memory_space<vmem>>, vector<256x128xbf16>,
    %c0_82 = arith.constant 0 : index
    %c1_83 = arith.constant 1 : index
    %c0_84 = arith.constant 0 : index
    %80 = vector.load %arg5[%c0_82, %c1_83, %c0_84] : memref<18x18x128xf32, #tpu.memory_space<vmem>>, vector<16x16x128xf32>
    %81 = vector.shape_cast %80 : vector<16x16x128xf32> to vector<256x128xf32>
    %82 = arith.truncf %81 : vector<256x128xf32> to vector<256x128xbf16>
    %c0_85 = arith.constant 0 : index
    %c384_86 = arith.constant 384 : index
    %83 = vector.load %arg6[%c0_85, %c384_86] : memref<256x1152xbf16, #tpu.memory_space<vmem>>, vector<256x128xbf16>
    tpu.vector_store %arg6[%c0_85, %c384_86], %82 {strides = array<i32>} : memref<256x1152xbf16, #tpu.memory_space<vmem>>, vector<256x128xbf16>,
    %c1_87 = arith.constant 1 : index
    %c1_88 = arith.constant 1 : index
    %c0_89 = arith.constant 0 : index
    %84 = vector.load %arg5[%c1_87, %c1_88, %c0_89] : memref<18x18x128xf32, #tpu.memory_space<vmem>>, vector<16x16x128xf32>
    %85 = vector.shape_cast %84 : vector<16x16x128xf32> to vector<256x128xf32>
    %86 = arith.truncf %85 : vector<256x128xf32> to vector<256x128xbf16>
    %c0_90 = arith.constant 0 : index
    %c512_91 = arith.constant 512 : index
    %87 = vector.load %arg6[%c0_90, %c512_91] : memref<256x1152xbf16, #tpu.memory_space<vmem>>, vector<256x128xbf16>
    tpu.vector_store %arg6[%c0_90, %c512_91], %86 {strides = array<i32>} : memref<256x1152xbf16, #tpu.memory_space<vmem>>, vector<256x128xbf16>,
    %c2_92 = arith.constant 2 : index
    %c1_93 = arith.constant 1 : index
    %c0_94 = arith.constant 0 : index
    %88 = vector.load %arg5[%c2_92, %c1_93, %c0_94] : memref<18x18x128xf32, #tpu.memory_space<vmem>>, vector<16x16x128xf32>
    %89 = vector.shape_cast %88 : vector<16x16x128xf32> to vector<256x128xf32>
    %90 = arith.truncf %89 : vector<256x128xf32> to vector<256x128xbf16>
    %c0_95 = arith.constant 0 : index
    %c640_96 = arith.constant 640 : index
    %91 = vector.load %arg6[%c0_95, %c640_96] : memref<256x1152xbf16, #tpu.memory_space<vmem>>, vector<256x128xbf16>
    tpu.vector_store %arg6[%c0_95, %c640_96], %90 {strides = array<i32>} : memref<256x1152xbf16, #tpu.memory_space<vmem>>, vector<256x128xbf16>,
    %c0_97 = arith.constant 0 : index
    %c2_98 = arith.constant 2 : index
    %c0_99 = arith.constant 0 : index
    %92 = vector.load %arg5[%c0_97, %c2_98, %c0_99] : memref<18x18x128xf32, #tpu.memory_space<vmem>>, vector<16x16x128xf32>
    %93 = vector.shape_cast %92 : vector<16x16x128xf32> to vector<256x128xf32>
    %94 = arith.truncf %93 : vector<256x128xf32> to vector<256x128xbf16>
    %c0_100 = arith.constant 0 : index
    %c768_101 = arith.constant 768 : index
    %95 = vector.load %arg6[%c0_100, %c768_101] : memref<256x1152xbf16, #tpu.memory_space<vmem>>, vector<256x128xbf16>
    tpu.vector_store %arg6[%c0_100, %c768_101], %94 {strides = array<i32>} : memref<256x1152xbf16, #tpu.memory_space<vmem>>, vector<256x128xbf16>,
    %c1_102 = arith.constant 1 : index
    %c2_103 = arith.constant 2 : index
    %c0_104 = arith.constant 0 : index
    %96 = vector.load %arg5[%c1_102, %c2_103, %c0_104] : memref<18x18x128xf32, #tpu.memory_space<vmem>>, vector<16x16x128xf32>
    %97 = vector.shape_cast %96 : vector<16x16x128xf32> to vector<256x128xf32>
    %98 = arith.truncf %97 : vector<256x128xf32> to vector<256x128xbf16>
    %c0_105 = arith.constant 0 : index
    %c896_106 = arith.constant 896 : index
    %99 = vector.load %arg6[%c0_105, %c896_106] : memref<256x1152xbf16, #tpu.memory_space<vmem>>, vector<256x128xbf16>
    tpu.vector_store %arg6[%c0_105, %c896_106], %98 {strides = array<i32>} : memref<256x1152xbf16, #tpu.memory_space<vmem>>, vector<256x128xbf16>,
    %c2_107 = arith.constant 2 : index
    %c2_108 = arith.constant 2 : index
    %c0_109 = arith.constant 0 : index
    %100 = vector.load %arg5[%c2_107, %c2_108, %c0_109] : memref<18x18x128xf32, #tpu.memory_space<vmem>>, vector<16x16x128xf32>
    %101 = vector.shape_cast %100 : vector<16x16x128xf32> to vector<256x128xf32>
    %102 = arith.truncf %101 : vector<256x128xf32> to vector<256x128xbf16>
    %c0_110 = arith.constant 0 : index
    %c1024_111 = arith.constant 1024 : index
    %103 = vector.load %arg6[%c0_110, %c1024_111] : memref<256x1152xbf16, #tpu.memory_space<vmem>>, vector<256x128xbf16>
    tpu.vector_store %arg6[%c0_110, %c1024_111], %102 {strides = array<i32>} : memref<256x1152xbf16, #tpu.memory_space<vmem>>, vector<256x128xbf16>,
    %c0_112 = arith.constant 0 : index
    %c0_113 = arith.constant 0 : index
    %104 = vector.load %arg6[%c0_112, %c0_113] : memref<256x1152xbf16, #tpu.memory_space<vmem>>, vector<256x1152xbf16>
    %c0_114 = arith.constant 0 : index
    %c0_115 = arith.constant 0 : index
    %105 = vector.load %arg3[%c0_114, %c0_115] : memref<1152x128xbf16, #tpu.memory_space<vmem>>, vector<1152x128xbf16>
    %cst_116 = arith.constant dense<0.000000e+00> : vector<256x128xf32>
    %106 = tpu.matmul %104, %105, %cst_116 {dimension_numbers = #tpu.dot_dimension_numbers<[1], [0], [0], [1], [0, 0, 1, 1], [], []>} : vector<256x1152xbf16>, vector<1152x128xbf16>, vector<256x128xf32> -> vector<256x128xf32>
    %cst_117 = arith.constant dense<0.000000e+00> : vector<128xf32>
    %107 = vector.multi_reduction <add>, %106, %cst_117 [0] : vector<256x128xf32> to vector<128xf32>
    %108 = vector.shape_cast %107 : vector<128xf32> to vector<1x128xf32>
    %cst_118 = arith.constant 2.560000e+02 : f32
    %109 = vector.broadcast %cst_118 : f32 to vector<1x128xf32>
    %110 = arith.divf %108, %109 : vector<1x128xf32>
    %111 = vector.broadcast %110 : vector<1x128xf32> to vector<256x128xf32>
    %112 = arith.subf %106, %111 : vector<256x128xf32>
    %113 = arith.mulf %112, %112 : vector<256x128xf32>
    %cst_119 = arith.constant dense<0.000000e+00> : vector<128xf32>
    %114 = vector.multi_reduction <add>, %113, %cst_119 [0] : vector<256x128xf32> to vector<128xf32>
    %115 = vector.shape_cast %114 : vector<128xf32> to vector<1x128xf32>
    %cst_120 = arith.constant 2.560000e+02 : f32
    %116 = vector.broadcast %cst_120 : f32 to vector<1x128xf32>
    %117 = arith.divf %115, %116 : vector<1x128xf32>
    %cst_121 = arith.constant 9.99999974E-6 : f32
    %118 = vector.broadcast %cst_121 : f32 to vector<1x128xf32>
    %119 = arith.addf %117, %118 : vector<1x128xf32>
    %120 = math.rsqrt %119 : vector<1x128xf32>
    %121 = vector.broadcast %120 : vector<1x128xf32> to vector<256x128xf32>
    %122 = arith.mulf %112, %121 : vector<256x128xf32>
    %123 = vector.shape_cast %122 : vector<256x128xf32> to vector<16x16x128xf32>
    %c0_122 = arith.constant 0 : index
    %c0_123 = arith.constant 0 : index
    %c0_124 = arith.constant 0 : index
    %c0_125 = arith.constant 0 : index
    %124 = vector.load %arg1[%c0_122, %c0_123, %c0_124, %c0_125] : memref<1x16x16x128xf32, #tpu.memory_space<vmem>>, vector<1x16x16x128xf32>
    %125 = vector.shape_cast %124 : vector<1x16x16x128xf32> to vector<16x16x128xf32>
    %126 = arith.addf %123, %125 : vector<16x16x128xf32>
    %c0_126 = arith.constant 0 : index
    %c0_127 = arith.constant 0 : index
    %c0_128 = arith.constant 0 : index
    %c0_129 = arith.constant 0 : index
    %127 = vector.load %arg4[%c0_126, %c0_127, %c0_128, %c0_129] : memref<1x16x16x128xf32, #tpu.memory_space<vmem>>, vector<1x16x16x128xf32>
    %128 = vector.shape_cast %127 : vector<1x16x16x128xf32> to vector<16x16x128xf32>
    %129 = vector.shape_cast %126 : vector<16x16x128xf32> to vector<1x16x16x128xf32>
    tpu.vector_store %arg4[%c0_126, %c0_127, %c0_128, %c0_129], %129 {strides = array<i32>} : memref<1x16x16x128xf32, #tpu.memory_space<vmem>>, vector<1x16x16x128xf32>,
    return
  }
  func.func @transform_0(%arg0: i32) -> (i32, i32, i32, i32) {
    %c0_i32 = arith.constant 0 : i32
    %c0_i32_0 = arith.constant 0 : i32
    %c0_i32_1 = arith.constant 0 : i32
    %c0_i32_2 = arith.constant 0 : i32
    return %arg0, %c0_i32, %c0_i32_0, %c0_i32_1 : i32, i32, i32, i32
  }
  func.func @transform_1(%arg0: i32) -> (i32, i32) {
    %c0_i32 = arith.constant 0 : i32
    %c0_i32_0 = arith.constant 0 : i32
    %c0_i32_1 = arith.constant 0 : i32
    return %c0_i32, %c0_i32_0 : i32, i32
  }
  func.func @transform_2(%arg0: i32) -> (i32, i32) {
    %c0_i32 = arith.constant 0 : i32
    %c0_i32_0 = arith.constant 0 : i32
    %c0_i32_1 = arith.constant 0 : i32
    return %c0_i32, %c0_i32_0 : i32, i32
  }
  func.func @transform_3(%arg0: i32) -> (i32, i32, i32, i32) {
    %c0_i32 = arith.constant 0 : i32
    %c0_i32_0 = arith.constant 0 : i32
    %c0_i32_1 = arith.constant 0 : i32
    %c0_i32_2 = arith.constant 0 : i32
    return %arg0, %c0_i32, %c0_i32_0, %c0_i32_1 : i32, i32, i32, i32
  }
}

</mosaic_0001>

<bundles_post_ra>
// kernel: tpu_custom_call.1
= control target key start
LH: loop header
LB: loop body
LE: loop exit
PB: predicated region body
PF: predicated region fallthrough
CT: control target
= control target key end

     0   :  { %8 = vsyncpa [#allocation5], 0  ;;  %s8581_s0 = inlined_call_operand.hbm [shape: f32[2,16,16,128], index: 0, kind: input, shape index: {}]   ;;  %s8582_s1 = inlined_call_operand.hbm [shape: bf16[1152,128], index: 1, kind: input, shape index: {}]   ;;  %s8583_s2 = inlined_call_operand.hbm [shape: bf16[1152,128], index: 2, kind: input, shape index: {}]   ;;  %s8584_s3 = inlined_call_operand.hbm [shape: f32[2,16,16,128], index: 3, kind: output, shape index: {}]  }
   0x1   :  { %10 = vsyncpa [#allocation5 + $0x1], 0 }
   0x2   :  { %11 = vsyncpa [#allocation8], 0 }
   0x3   :  { %12 = vsyncpa [#allocation6], 0 }
   0x4   :  { %14 = vsyncpa [#allocation6 + $0x1], 0  ;;  %s6762_s12 = smov 0   ;;  %s6764_s13 = smov 0  }
   0x5   :  { %s6766_s14 = smov 0   ;;  %s6768_s15 = smov 0  }
   0x6 LB: > { %s6783_s16 = sadd.s32 4294967295, %s6729_s15   ;;  %s5145_s17 = sadd.s32 4294967294, %s6729_s15   ;;  %s6729_s15 = sphi %s6768_s15, %s8604_s15   ;;  %s6725_s14 = sphi %s6766_s14, %s8603_s14   ;;  %s6721_s13 = sphi %s6764_s13, %s8602_s13   ;;  %s6717_s12 = sphi %s6762_s12, %s8601_s12  }
   0x7   : > { %p40_p0 = scmp.ne.s32.totalorder %s6721_s13, %s6717_s12  ;;  %p8585_p1 = scmp.eq.s32.totalorder %s6783_s16, 0 }
   0x8   : > { %p112_p3 = scmp.eq.s32.totalorder %s5145_s17, 1  ;;  %p5146_p5 = scmp.ge.s32.totalorder %s6729_s15, 1 }
   0x9   : > { %p6792_p4 = por %p8585_p1, %p40_p0  ;;  %p119_p7 = scmp.lt.s32.totalorder %s6729_s15, 3 }
   0xa   : > { %p6797_p6 = por %p112_p3, %p40_p0  ;;  %s6731_s21 = smov [#allocation7]  }
   0xb   : > { %s8588_s18 = scalar_select %p6792_p4, 1, 0 }
   0xc   : > { %s8589_s19 = scalar_select %p6797_p6, 1, 0 }
   0xd   : > { %p6802_p8 = pnand %p5146_p5, %p119_p7  ;;  %s131_s22 = sshll.u32 %s6731_s21, 4  ;;  %s6806_s22 = int_to_ptr.vmem [resolvable:$true] %s131_s22 }
   0xe   : > { %s6732_s24 = smov [#allocation9]   ;;  %s6573_s28 = scalar_lea.hbm %s8582_s1, 9216 }
   0xf   : > { %p6361_p9 = pneg %p6802_p8  ;;  %s144_s25 = sshll.u32 %s6732_s24, 4  ;;  %s6817_s25 = int_to_ptr.vmem [resolvable:$true] %s144_s25 }
  0x10   : > { %p6574_p12 = scmp.ne.s32.totalorder %s8582_s1, %s6573_s28  ;;  %p6580_p5 = scmp.lt.u32.totalorder %s6573_s28, %s8582_s1 }
  0x11   : > { %p6813_p11 = pnand %p6361_p9, %p8585_p1 }
  0x13   : > { %p6575_p13 = pneg %p6813_p11 }
  0x15   : > { %p6576_p0 = pnand %p6575_p13, %p6574_p12 }
  0x17   : > { %p6577_p3 = pneg %p6576_p0 }
  0x19   : > { %p6582_p7 = pnand %p6580_p5, %p6577_p3 }
  0x1b   : > { %6585 = shalt.err (!%p6582_p7)
}
  0x1c   : > { %s6586_s6 = scalar_lea.vmem %s6806_s22, 9216  ;;  %p6594_p2 = scmp.lt.s32.totalorder %s6806_s22, %s6806_s22 }
  0x1d   : > { %p6587_p9 = scmp.ne.s32.totalorder %s6806_s22, %s6586_s6  ;;  %p6595_p12 = scmp.lt.s32.totalorder %s6586_s6, %s6586_s6 }
  0x1f   : > { %p6589_p10 = pnand %p6587_p9, %p6575_p13  ;;  %p6596_p0 = por %p6595_p12, %p6594_p2 }
  0x21   : > { %p6590_p1 = pneg %p6589_p10 }
  0x23   : > { %p6597_p6 = pnand %p6596_p0, %p6590_p1 }
  0x25   : > { %6600 = shalt.err (!%p6597_p6)
}
  0x26   : > { %s6733_s7 = smov 64   ;;  %s6734_s8 = smov 4  }
  0x27   : > { %6364 = dma.hbm_to_vmem [thread:$0]  (!%p6813_p11), %s8582_s1, 9216, %s6806_s22, [#allocation8], %s6733_s7, %s6733_s7, %s6734_s8  }
  0x28   : > { %s6601_s21 = scalar_lea.hbm %s8583_s2, 9216 }
  0x29   : > { %p6602_p2 = scmp.ne.s32.totalorder %s8583_s2, %s6601_s21  ;;  %p6608_p10 = scmp.lt.u32.totalorder %s6601_s21, %s8583_s2 }
  0x2b   : > { %p6604_p1 = pnand %p6602_p2, %p6575_p13 }
  0x2d   : > { %p6605_p6 = pneg %p6604_p1 }
  0x2f   : > { %p6610_p3 = pnand %p6608_p10, %p6605_p6 }
  0x31   : > { %6613 = shalt.err (!%p6610_p3)
}
  0x32   : > { %s6614_s22 = scalar_lea.vmem %s6817_s25, 9216  ;;  %p6622_p12 = scmp.lt.s32.totalorder %s6817_s25, %s6817_s25 }
  0x33   : > { %p6615_p5 = scmp.ne.s32.totalorder %s6817_s25, %s6614_s22  ;;  %p6623_p0 = scmp.lt.s32.totalorder %s6614_s22, %s6614_s22 }
  0x35   : > { %p6617_p7 = pnand %p6615_p5, %p6575_p13  ;;  %p6624_p2 = por %p6623_p0, %p6622_p12 }
  0x37   : > { %p6618_p9 = pneg %p6617_p7 }
  0x39   : > { %p6625_p1 = pnand %p6624_p2, %p6618_p9 }
  0x3b   : > { %6628 = shalt.err (!%p6625_p1)
}
  0x3c   : > { %6367 = dma.hbm_to_vmem [thread:$0]  (!%p6813_p11), %s8583_s2, 9216, %s6817_s25, [#allocation8], %s6733_s7, %s6733_s7, %s6734_s8  }
  0x3d   : > { %s6872_s4 = sadd.s32 1, %s6729_s15   ;;  %s27_s23 = sadd.s32 1, %s6725_s14 }
  0x3e   : > { %s24_s5 = ssub.s32 %s6729_s15, %s6872_s4  ;;  %p34_p13 = scmp.ne.s32.totalorder %s6725_s14, %s6721_s13 }
  0x3f   : > { %p25_p6 = scmp.eq.s32.totalorder %s24_s5, 0  ;;  %p35_p10 = scmp.eq.s32.totalorder %s6729_s15, 0 }
  0x40   : > { %p8592_p3 = scmp.eq.s32.totalorder %s6783_s16, 1  ;;  %p6378_p7 = scmp.lt.s32.totalorder %s6729_s15, 2 }
  0x41   : > { %s6888_s9 = scalar_select %p25_p6, %s6725_s14, %s27_s23  }
  0x42   : > { %p6882_p5 = por %p8592_p3, %p34_p13  ;;  %p36_p9 = por %p35_p10, %p34_p13 }
  0x43   : > { %s158_s10 = sand.u32 1, %s6725_s14   ;;  %s5307_s25 = sshll.u32 %s6729_s15, 12 }
  0x44   : > { %s8593_s6 = scalar_select %p6882_p5, 1, 0 }
  0x45   : > { %s5150_s11 = sshll.u32 %s158_s10, 8  ;;  %s6895_s17 = scalar_lea.hbm %s8581_s0, %s5307_s25 }
  0x46   : > { %s162_s21 = scalar_lea.vmem [#allocation4], %s5150_s11  ;;  %p6899_p11 = pnand %p6378_p7, %p36_p9 }
  0x47   : > { %s169_s24 = sshll.u32 %s162_s21, 4  ;;  %s6903_s27 = scalar_lea.sflag [#allocation5], %s158_s10  ;;  %s6897_s24 = int_to_ptr.vmem [resolvable:$true] %s169_s24 }
  0x48   : > { %s6629_s28 = scalar_lea.hbm %s6895_s17, 4096  ;;  %p6631_p0 = pneg %p6899_p11 }
  0x49   : > { %p6630_p12 = scmp.ne.s32.totalorder %s6895_s17, %s6629_s28  ;;  %s6634_s30 = scalar_lea.hbm %s8581_s0, 8192 }
  0x4a   : > { %p6635_p13 = scmp.lt.u32.totalorder %s6895_s17, %s8581_s0  ;;  %p6636_p6 = scmp.lt.u32.totalorder %s6634_s30, %s6629_s28 }
  0x4b   : > { %p6632_p2 = pnand %p6631_p0, %p6630_p12  ;;  %p6638_p3 = scmp.lt.u32.totalorder %s6629_s28, %s6895_s17 }
  0x4c   : > { %p6637_p10 = por %p6636_p6, %p6635_p13 }
  0x4d   : > { %p6633_p1 = pneg %p6632_p2 }
  0x4e   : > { %p6639_p7 = por %p6638_p3, %p6637_p10 }
  0x50   : > { %p6640_p9 = pnand %p6639_p7, %p6633_p1 }
  0x52   : > { %6643 = shalt.err (!%p6640_p9)
}
  0x53   : > { %s6644_s10 = scalar_lea.vmem %s6897_s24, 4096  ;;  %s6735_s11 = smov [#allocation4]  }
  0x54   : > { %p6645_p12 = scmp.ne.s32.totalorder %s6897_s24, %s6644_s10  ;;  %s6649_s25 = sshll.u32 %s6735_s11, 4  ;;  %s6650_s25 = int_to_ptr.vmem [resolvable:$false] %s6649_s25 }
  0x55   : > { %s6651_s7 = scalar_lea.vmem %s6650_s25, 8192  ;;  %p6652_p4 = scmp.lt.s32.totalorder %s6897_s24, %s6650_s25 }
  0x56   : > { %p6647_p2 = pnand %p6645_p12, %p6631_p0  ;;  %p6653_p13 = scmp.lt.s32.totalorder %s6651_s7, %s6644_s10 }
  0x58   : > { %p6648_p5 = pneg %p6647_p2  ;;  %p6654_p6 = por %p6653_p13, %p6652_p4 }
  0x5a   : > { %p6655_p10 = pnand %p6654_p6, %p6648_p5 }
  0x5c   : > { %6658 = shalt.err (!%p6655_p10)
}
  0x5d   : > { %s6736_s8 = smov 128   ;;  %s6737_s21 = smov 8  }
  0x5e   : > { %6371 = dma.hbm_to_vmem [thread:$0]  (!%p6899_p11), %s6895_s17, 4096, %s6897_s24, %s6903_s27, %s6736_s8, %s6736_s8, %s6737_s21  }
  0x5f   : > { %181 = sbr.rel (%p6802_p8) target bundleno = 1497 (0x5d9), region = 32  ;;  %s6934_s28 = sand.u32 (!%p6802_p8), 1, %s6721_s13  }
  0x60   : > { %s5154_s22 = sshll.u32 (!%p6802_p8), %s6934_s28, 8  ;;  %s184_s29 = scalar_lea.sflag (!%p6802_p8), [#allocation5], %s6934_s28 }
  0x61   : > { %s6940_s30 = scalar_lea.vmem (!%p6802_p8), [#allocation4], %s5154_s22  ;;  %p8595_p4 = scmp.ne.s32.totalorder (!%p6802_p8), %s8588_s18, 0 }
  0x66   : > { %6704 = dma.done.wait (%p8595_p4), %s184_s29, 4096  }
  0x67   : > { %6706 = vsyncadd (%p8595_p4), %s184_s29, 4294963200  ;;  %p8596_p5 = scmp.eq.s32.totalorder %s6783_s16, 0 }
  0x69   : > { %6708 = dma.done.wait (%p8596_p5), [#allocation8], 18432   ;;  %p8597_p8 = pmov %p8596_p5 }
  0x6a   : > { %v6738_v0 = vmov 0.0   ;;  %v6423_v1 = vld [vmem:[#allocation7 + $0x40] sm:$0xff]   ;;  %v6427_v5 = vld [vmem:[#allocation7 + $0x48] sm:$0xff]   ;;  %v6431_v9 = vld [vmem:[#allocation7 + $0x50] sm:$0xff]   ;;  %s8408_s18 = scalar_lea.vmem [#allocation10], %s5154_s22  ;;  %s5308_s20 = sshll.u32 %s6783_s16, 12 }
  0x6b   : > { %6710 = vsyncadd (%p8597_p8), [#allocation8], 4294948864  ;;  %227 = vst [vmem:[#allocation2 + $0x18] sm:$0x1] %v6738_v0  ;;  %v6424_v2 = vld [vmem:[#allocation7 + $0xc0] sm:$0xff]   ;;  %5309 = vmatprep.subr.bf16.mxu0 %v6423_v1  ;;  %v6428_v6 = vld [vmem:[#allocation7 + $0xc8] sm:$0xff]   ;;  %s8517_s27 = scalar_lea.hbm %s8584_s3, %s5308_s20 }
  0x6c   : > { %219 = vst [vmem:[#allocation2] sm:$0xff] %v6738_v0  ;;  %220 = vst [vmem:[#allocation2 + $0x8] sm:$0xff] %v6738_v0  ;;  %v6425_v3 = vld [vmem:[#allocation7] sm:$0xff]   ;;  %5421 = vmatprep.subr.bf16.mxu1 %v6424_v2  ;;  %v6429_v7 = vld [vmem:[#allocation7 + $0x8] sm:$0xff]   ;;  %s5053_s17 = sshll.u32 %s8408_s18, 4  ;;  %s5040_s16 = scalar_lea.sflag [#allocation6], %s6934_s28  ;;  %s8521_s17 = int_to_ptr.vmem [resolvable:$true] %s5053_s17 }
  0x6d   : > { %221 = vst [vmem:[#allocation2 + $0x10] sm:$0x3] %v6738_v0  ;;  %223 = vst [vmem:[#allocation2 + $0x198] sm:$0xff] %v6738_v0  ;;  %v6426_v4 = vld [vmem:[#allocation7 + $0x80] sm:$0xff]   ;;  %5310 = vmatpush3.bf16.msra.mxu0 %v6425_v3  ;;  %v6430_v8 = vld [vmem:[#allocation7 + $0x88] sm:$0xff]   ;;  %s6659_s23 = scalar_lea.vmem %s8521_s17, 4096 }
  0x6e   : > { %224 = vst [vmem:[#allocation2 + $0x1a0] sm:$0xff] %v6738_v0  ;;  %225 = vst [vmem:[#allocation2 + $0x1a8] sm:$0x3] %v6738_v0  ;;  %5422 = vmatpush3.bf16.msra.mxu1 %v6426_v4  ;;  %5311 = vmatprep.subr.bf16.mxu0 %v6427_v5  ;;  %v6432_v10 = vld [vmem:[#allocation7 + $0xd0] sm:$0xff]   ;;  %v6435_v13 = vld [vmem:[#allocation7 + $0x58] sm:$0xff]   ;;  %p6660_p11 = scmp.ne.s32.totalorder %s8521_s17, %s6659_s23  ;;  %p8598_p0 = scmp.ne.s32.totalorder %s8593_s6, 0 }
  0x6f   : > { %228 = vst [vmem:[#allocation2 + $0x30] sm:$0x1] %v6738_v0  ;;  %229 = vst [vmem:[#allocation2 + $0x48] sm:$0x1] %v6738_v0  ;;  %5423 = vmatprep.subr.bf16.mxu1 %v6428_v6  ;;  %v6433_v11 = vld [vmem:[#allocation7 + $0x10] sm:$0xff]   ;;  %v6436_v14 = vld [vmem:[#allocation7 + $0xd8] sm:$0xff]  }
  0x70   : > { %230 = vst [vmem:[#allocation2 + $0x60] sm:$0x1] %v6738_v0  ;;  %231 = vst [vmem:[#allocation2 + $0x78] sm:$0x1] %v6738_v0  ;;  %v6434_v12 = vld [vmem:[#allocation7 + $0x90] sm:$0xff]   ;;  %v6437_v15 = vld [vmem:[#allocation7 + $0x18] sm:$0xff]   ;;  %p6661_p1 = pnand %p6660_p11, %p8598_p0 }
  0x71   : > { %232 = vst [vmem:[#allocation2 + $0x90] sm:$0x1] %v6738_v0  ;;  %233 = vst [vmem:[#allocation2 + $0xa8] sm:$0x1] %v6738_v0  ;;  %5312 = vmatpush3.bf16.msra.mxu0 %v6429_v7  ;;  %v6438_v16 = vld [vmem:[#allocation7 + $0x98] sm:$0xff]   ;;  %v6439_v17 = vld [vmem:[#allocation7 + $0x60] sm:$0xff]  }
  0x72   : > { %234 = vst [vmem:[#allocation2 + $0xc0] sm:$0x1] %v6738_v0  ;;  %235 = vst [vmem:[#allocation2 + $0xd8] sm:$0x1] %v6738_v0  ;;  %5424 = vmatpush3.bf16.msra.mxu1 %v6430_v8  ;;  %5313 = vmatprep.subr.bf16.mxu0 %v6431_v9  ;;  %v6440_v18 = vld [vmem:[#allocation7 + $0xe0] sm:$0xff]   ;;  %v6443_v21 = vld [vmem:[#allocation7 + $0x68] sm:$0xff]   ;;  %p6662_p3 = pneg %p6661_p1 }
  0x73   : > { %236 = vst [vmem:[#allocation2 + $0xf0] sm:$0x1] %v6738_v0  ;;  %237 = vst [vmem:[#allocation2 + $0x108] sm:$0x1] %v6738_v0  ;;  %5425 = vmatprep.subr.bf16.mxu1 %v6432_v10  ;;  %v6441_v19 = vld [vmem:[#allocation7 + $0x20] sm:$0xff]   ;;  %v6444_v22 = vld [vmem:[#allocation7 + $0xe8] sm:$0xff]  }
  0x74   : > { %238 = vst [vmem:[#allocation2 + $0x120] sm:$0x1] %v6738_v0  ;;  %239 = vst [vmem:[#allocation2 + $0x138] sm:$0x1] %v6738_v0  ;;  %v6442_v20 = vld [vmem:[#allocation7 + $0xa0] sm:$0xff]   ;;  %v6445_v23 = vld [vmem:[#allocation7 + $0x28] sm:$0xff]  }
  0x75   : > { %240 = vst [vmem:[#allocation2 + $0x150] sm:$0x1] %v6738_v0  ;;  %241 = vst [vmem:[#allocation2 + $0x168] sm:$0x1] %v6738_v0  ;;  %5314 = vmatpush3.bf16.msra.mxu0 %v6433_v11  ;;  %v6446_v24 = vld [vmem:[#allocation7 + $0xa8] sm:$0xff]   ;;  %v6447_v25 = vld [vmem:[#allocation7 + $0x70] sm:$0xff]  }
  0x76   : > { %242 = vst [vmem:[#allocation2 + $0x180] sm:$0x1] %v6738_v0  ;;  %245 = vst [vmem:[#allocation2 + $0x29] sm:$0x1] %v6738_v0  ;;  %5426 = vmatpush3.bf16.msra.mxu1 %v6434_v12  ;;  %5315 = vmatprep.subr.bf16.mxu0 %v6435_v13  ;;  %v6448_v26 = vld [vmem:[#allocation7 + $0xf0] sm:$0xff]   ;;  %v6451_v29 = vld [vmem:[#allocation7 + $0x78] sm:$0xff]  }
  0x77   : > { %246 = vst [vmem:[#allocation2 + $0x41] sm:$0x1] %v6738_v0  ;;  %247 = vst [vmem:[#allocation2 + $0x59] sm:$0x1] %v6738_v0  ;;  %5427 = vmatprep.subr.bf16.mxu1 %v6436_v14  ;;  %v6449_v27 = vld [vmem:[#allocation7 + $0x30] sm:$0xff]   ;;  %v6452_v30 = vld [vmem:[#allocation7 + $0xf8] sm:$0xff]  }
  0x78   : > { %248 = vst [vmem:[#allocation2 + $0x71] sm:$0x1] %v6738_v0  ;;  %249 = vst [vmem:[#allocation2 + $0x89] sm:$0x1] %v6738_v0  ;;  %v6450_v28 = vld [vmem:[#allocation7 + $0xb0] sm:$0xff]   ;;  %v6453_v31 = vld [vmem:[#allocation7 + $0x38] sm:$0xff]  }
  0x79   : > { %250 = vst [vmem:[#allocation2 + $0xa1] sm:$0x1] %v6738_v0  ;;  %251 = vst [vmem:[#allocation2 + $0xb9] sm:$0x1] %v6738_v0  ;;  %5316 = vmatpush3.bf16.msra.mxu0 %v6437_v15  ;;  %v6454_v32 = vld [vmem:[#allocation7 + $0xb8] sm:$0xff]   ;;  %v262_v33 = vld [vmem:[%s6940_s30] sm:$0xff] }
  0x7a   : > { %252 = vst [vmem:[#allocation2 + $0xd1] sm:$0x1] %v6738_v0  ;;  %253 = vst [vmem:[#allocation2 + $0xe9] sm:$0x1] %v6738_v0  ;;  %5428 = vmatpush3.bf16.msra.mxu1 %v6438_v16  ;;  %5317 = vmatprep.subr.bf16.mxu0 %v6439_v17  ;;  %v263_v34 = vld [vmem:[%s6940_s30 + $0x8] sm:$0xff]  ;;  %v520_v35 = vld [vmem:[#allocation2 + $0x1] sm:$0xff] }
  0x7b   : > { %254 = vst [vmem:[#allocation2 + $0x101] sm:$0x1] %v6738_v0  ;;  %255 = vst [vmem:[#allocation2 + $0x119] sm:$0x1] %v6738_v0  ;;  %5429 = vmatprep.subr.bf16.mxu1 %v6440_v18  ;;  %v521_v36 = vld [vmem:[#allocation2 + $0x9] sm:$0xff]  ;;  %v264_v37 = vld [vmem:[%s6940_s30 + $0x10] sm:$0xff]  ;;  %v7027_v57 = vpack.c.bf16 %v263_v34, %v262_v33 }
  0x7c   : > { %256 = vst [vmem:[#allocation2 + $0x131] sm:$0x1] %v6738_v0  ;;  %257 = vst [vmem:[#allocation2 + $0x149] sm:$0x1] %v6738_v0  ;;  %v552_v38 = vpack.c.bf16 %v521_v36, %v520_v35  ;;  %v265_v39 = vld [vmem:[%s6940_s30 + $0x18] sm:$0xff]  ;;  %v6455_v40 = vld [vmem:[#allocation7 + $0x140] sm:$0xff]  }
  0x7d   : > { %258 = vst [vmem:[#allocation2 + $0x161] sm:$0x1] %v6738_v0  ;;  %259 = vst [vmem:[#allocation2 + $0x179] sm:$0x1] %v6738_v0  ;;  %5318 = vmatpush3.bf16.msra.mxu0 %v6441_v19  ;;  %v6997_v42 = vld [vmem:[%s6940_s30 + $0x20] sm:$0xff]  ;;  %v7000_v43 = vld [vmem:[%s6940_s30 + $0x28] sm:$0xff]  ;;  %v7054_v6 = vpack.c.bf16 %v265_v39, %v264_v37 }
  0x7e   : > { %260 = vst [vmem:[#allocation2 + $0x191] sm:$0x1] %v6738_v0  ;;  %244 = vst [vmem:[#allocation2 + $0x11] sm:$0x1] %v6738_v0  ;;  %5430 = vmatpush3.bf16.msra.mxu1 %v6442_v20  ;;  %5319 = vmatprep.subr.bf16.mxu0 %v6443_v21  ;;  %v7005_v44 = vld [vmem:[%s6940_s30 + $0x30] sm:$0xff]  ;;  %v7008_v45 = vld [vmem:[%s6940_s30 + $0x38] sm:$0xff] }
  0x7f   : > { %226 = vst [vmem:[#allocation2] sm:$0x1] %v6738_v0  ;;  %243 = vst [vmem:[#allocation2 + $0x198] sm:$0x1] %v6738_v0  ;;  %5431 = vmatprep.subr.bf16.mxu1 %v6444_v22  ;;  %1817 = vmatprep.mubr.bf16.mxu1 %v552_v38  ;;  %v6456_v46 = vld [vmem:[#allocation7 + $0x100] sm:$0xff]   ;;  %v7017_v51 = vld [vmem:[%s6940_s30 + $0x48] sm:$0xff] }
  0x80   : > { %261 = vst [vmem:[#allocation2 + $0x1a9] sm:$0x1] %v6738_v0  ;;  %295 = vst [vmem:[#allocation2 + $0x19] sm:$0xff] %v262_v33  ;;  %v7013_v47 = vld [vmem:[%s6940_s30 + $0x40] sm:$0xff]  ;;  %v7022_v54 = vld [vmem:[%s6940_s30 + $0x50] sm:$0xff]  ;;  %s6739_s5 = smov [#allocation10]  }
  0x81   : > { %5320 = vmatpush3.bf16.msra.mxu0 %v6445_v23  ;;  %296 = vst [vmem:[#allocation2 + $0x21] sm:$0xff] %v263_v34  ;;  %297 = vst [vmem:[#allocation2 + $0x31] sm:$0xff] %v264_v37  ;;  %v7025_v55 = vld [vmem:[%s6940_s30 + $0x58] sm:$0xff]  ;;  %v6457_v59 = vld [vmem:[#allocation7 + $0x148] sm:$0xff]   ;;  %v7078_v23 = vpack.c.bf16 %v7000_v43, %v6997_v42  ;;  %s6663_s10 = sshll.u32 %s6739_s5, 4  ;;  %s6664_s10 = int_to_ptr.vmem [resolvable:$false] %s6663_s10 }
  0x82   : > { %5432 = vmatpush3.bf16.msra.mxu1 %v6446_v24  ;;  %5321 = vmatprep.subr.bf16.mxu0 %v6447_v25  ;;  %298 = vst [vmem:[#allocation2 + $0x39] sm:$0xff] %v265_v39  ;;  %299 = vst [vmem:[#allocation2 + $0x49] sm:$0xff] %v6997_v42  ;;  %v6458_v60 = vld [vmem:[#allocation7 + $0x108] sm:$0xff]   ;;  %v6459_v61 = vld [vmem:[#allocation7 + $0x150] sm:$0xff]   ;;  %s6665_s11 = scalar_lea.vmem %s6664_s10, 8192  ;;  %p6666_p7 = scmp.lt.s32.totalorder %s8521_s17, %s6664_s10 }
  0x83   : > { %5433 = vmatprep.subr.bf16.mxu1 %v6448_v26  ;;  %300 = vst [vmem:[#allocation2 + $0x51] sm:$0xff] %v7000_v43  ;;  %301 = vst [vmem:[#allocation2 + $0x61] sm:$0xff] %v7005_v44  ;;  %v7040_v1 = vld [vmem:[%s6940_s30 + $0x68] sm:$0xff]  ;;  %v7044_v2 = vld [vmem:[%s6940_s30 + $0x70] sm:$0xff]  ;;  %p6667_p9 = scmp.lt.s32.totalorder %s6665_s11, %s6659_s23 }
  0x84   : > { %302 = vst [vmem:[#allocation2 + $0x69] sm:$0xff] %v7008_v45  ;;  %303 = vst [vmem:[#allocation2 + $0x79] sm:$0xff] %v7013_v47  ;;  %v7047_v3 = vld [vmem:[%s6940_s30 + $0x78] sm:$0xff]  ;;  %v6460_v5 = vld [vmem:[#allocation7 + $0x110] sm:$0xff]  }
  0x85   : > { %5322 = vmatpush3.bf16.msra.mxu0 %v6449_v27  ;;  %304 = vst [vmem:[#allocation2 + $0x81] sm:$0xff] %v7017_v51  ;;  %305 = vst [vmem:[#allocation2 + $0x91] sm:$0xff] %v7022_v54  ;;  %v6461_v7 = vld [vmem:[#allocation7 + $0x158] sm:$0xff]   ;;  %v7057_v8 = vld [vmem:[%s6940_s30 + $0x80] sm:$0xff]  ;;  %p6668_p12 = por %p6667_p9, %p6666_p7 }
  0x86   : > { %5434 = vmatpush3.bf16.msra.mxu1 %v6450_v28  ;;  %5323 = vmatprep.subr.bf16.mxu0 %v6451_v29  ;;  %v327_v41 = vld [vmem:[#allocation2] sm:$0xff]  ;;  %306 = vst [vmem:[#allocation2 + $0x99] sm:$0xff] %v7025_v55  ;;  %308 = vst [vmem:[#allocation2 + $0xb1] sm:$0xff] %v7040_v1  ;;  %v7060_v9 = vld [vmem:[%s6940_s30 + $0x88] sm:$0xff] }
  0x87   : > { %5435 = vmatprep.subr.bf16.mxu1 %v6452_v30  ;;  %v391_v48 = vld [vmem:[#allocation2 + $0x18] sm:$0xff]  ;;  %v359_v50 = vpack.c.bf16 %v6738_v0, %v327_v41  ;;  %v7035_v0 = vld [vmem:[%s6940_s30 + $0x60] sm:$0xff]  ;;  %309 = vst [vmem:[#allocation2 + $0xc1] sm:$0xff] %v7044_v2  ;;  %310 = vst [vmem:[#allocation2 + $0xc9] sm:$0xff] %v7047_v3  ;;  %v7099_v41 = vpack.c.bf16 %v7008_v45, %v7005_v44  ;;  %p6669_p2 = pnand %p6668_p12, %p6662_p3 }
  0x88   : > { %v392_v49 = vld [vmem:[#allocation2 + $0x20] sm:$0xff]  ;;  %v456_v53 = vld [vmem:[#allocation2 + $0x30] sm:$0xff]  ;;  %307 = vst [vmem:[#allocation2 + $0xa9] sm:$0xff] %v7035_v0  ;;  %311 = vst [vmem:[#allocation2 + $0xd9] sm:$0xff] %v7057_v8 }
  0x89   : > { %5324 = vmatpush3.bf16.msra.mxu0 %v6453_v31  ;;  %v423_v52 = vpack.c.bf16 %v392_v49, %v391_v48  ;;  %v457_v56 = vld [vmem:[#allocation2 + $0x38] sm:$0xff]  ;;  %v458_v62 = vld [vmem:[#allocation2 + $0x48] sm:$0xff]  ;;  %312 = vst [vmem:[#allocation2 + $0xe1] sm:$0xff] %v7060_v9  ;;  %v280_v10 = vld [vmem:[%s6940_s30 + $0x90] sm:$0xff] }
  0x8a   : > { %5436 = vmatpush3.bf16.msra.mxu1 %v6454_v32  ;;  %5533 = vmatprep.subr.bf16.mxu0 %v6455_v40  ;;  %v7031_v58 = vpack.c.bf16 %v457_v56, %v456_v53  ;;  %v459_v63 = vld [vmem:[#allocation2 + $0x50] sm:$0xff]  ;;  %v281_v11 = vld [vmem:[%s6940_s30 + $0x98] sm:$0xff]  ;;  %313 = vst [vmem:[#allocation2 + $0xf1] sm:$0xff] %v280_v10  ;;  %v460_v14 = vld [vmem:[#allocation2 + $0x60] sm:$0xff] }
  0x8b   : > { %1656 = vmatprep.mubr.bf16.mxu0 %v423_v52  ;;  %v7052_v4 = vpack.c.bf16 %v459_v63, %v458_v62  ;;  %314 = vst [vmem:[#allocation2 + $0xf9] sm:$0xff] %v281_v11  ;;  %v7066_v12 = vpack.c.bf16 %v281_v11, %v280_v10  ;;  %v6464_v13 = vld [vmem:[#allocation7 + $0x1c0] sm:$0xff]   ;;  %v461_v15 = vld [vmem:[#allocation2 + $0x68] sm:$0xff]  ;;  %v283_v21 = vld [vmem:[%s6940_s30 + $0xa8] sm:$0xff]  ;;  %v7123_v11 = vpack.c.bf16 %v7025_v55, %v7022_v54 }
  0x8c   : > { %1657 = vmatmul.mubr.bf16.vlgmr.msra.gmra.mrb[0].mxu0 %v359_v50  ;;  %v6462_v16 = vld [vmem:[#allocation7 + $0x118] sm:$0xff]   ;;  %v6463_v17 = vld [vmem:[#allocation7 + $0x160] sm:$0xff]   ;;  %5645 = vmatprep.subr.bf16.mxu1 %v6464_v13  ;;  %v7071_v19 = vpack.c.bf16 %v461_v15, %v460_v14  ;;  %v284_v22 = vld [vmem:[%s6940_s30 + $0xb0] sm:$0xff]  ;;  %316 = vst [vmem:[#allocation2 + $0x111] sm:$0xff] %v283_v21  ;;  %v7131_v54 = vpack.c.bf16 %v7040_v1, %v7035_v0 }
  0x8d   : > { %1818 = vmatmul.mubr.bf16.vlgmr.msra.gmra.mrb[0].mxu1 %v7031_v58  ;;  %5534 = vmatpush3.bf16.msra.mxu0 %v6456_v46  ;;  %v6466_v18 = vld [vmem:[#allocation7 + $0x180] sm:$0xff]   ;;  %v285_v25 = vld [vmem:[%s6940_s30 + $0xb8] sm:$0xff]  ;;  %317 = vst [vmem:[#allocation2 + $0x121] sm:$0xff] %v284_v22  ;;  %v462_v28 = vld [vmem:[#allocation2 + $0x78] sm:$0xff] }
  0x8e   : > { %1664 = vmatprep.mubr.bf16.mxu0 %v7031_v58  ;;  %1825 = vmatprep.mubr.bf16.mxu1 %v7027_v57  ;;  %v282_v20 = vld [vmem:[%s6940_s30 + $0xa0] sm:$0xff]  ;;  %318 = vst [vmem:[#allocation2 + $0x129] sm:$0xff] %v285_v25  ;;  %v7083_v27 = vpack.c.bf16 %v285_v25, %v284_v22  ;;  %v463_v29 = vld [vmem:[#allocation2 + $0x80] sm:$0xff]  ;;  %v6467_v30 = vld [vmem:[#allocation7 + $0x168] sm:$0xff]   ;;  %v7136_v25 = vpack.c.bf16 %v7047_v3, %v7044_v2 }
  0x8f   : > { %5535 = vmatprep.subr.bf16.mxu0 %v6457_v59  ;;  %v6465_v24 = vld [vmem:[#allocation7 + $0x120] sm:$0xff]   ;;  %5646 = vmatpush3.bf16.msra.mxu1 %v6466_v18  ;;  %315 = vst [vmem:[#allocation2 + $0x109] sm:$0xff] %v282_v20  ;;  %v7081_v26 = vpack.c.bf16 %v283_v21, %v282_v20  ;;  %v6468_v31 = vld [vmem:[#allocation7 + $0x1c8] sm:$0xff]   ;;  %v288_v36 = vld [vmem:[%s6940_s30 + $0xd0] sm:$0xff]  ;;  %v491_v38 = vpack.c.bf16 %v463_v29, %v462_v28 }
  0x90   : > { %v6469_v32 = vld [vmem:[#allocation7 + $0x128] sm:$0xff]   ;;  %5647 = vmatprep.subr.bf16.mxu1 %v6468_v31  ;;  %v286_v34 = vld [vmem:[%s6940_s30 + $0xc0] sm:$0xff]  ;;  %v289_v37 = vld [vmem:[%s6940_s30 + $0xd8] sm:$0xff]  ;;  %321 = vst [vmem:[#allocation2 + $0x151] sm:$0xff] %v288_v36  ;;  %v7141_v29 = vpack.c.bf16 %v7060_v9, %v7057_v8 }
  0x91   : > { %5536 = vmatpush3.bf16.msra.mxu0 %v6458_v60  ;;  %v6470_v33 = vld [vmem:[#allocation7 + $0x188] sm:$0xff]   ;;  %319 = vst [vmem:[#allocation2 + $0x139] sm:$0xff] %v286_v34  ;;  %322 = vst [vmem:[#allocation2 + $0x159] sm:$0xff] %v289_v37  ;;  %v7095_v40 = vpack.c.bf16 %v289_v37, %v288_v36  ;;  %v6471_v42 = vld [vmem:[#allocation7 + $0x170] sm:$0xff]  }
  0x92   : > { %5537 = vmatprep.subr.bf16.mxu0 %v6459_v61  ;;  %v287_v35 = vld [vmem:[%s6940_s30 + $0xc8] sm:$0xff]  ;;  %v464_v43 = vld [vmem:[#allocation2 + $0x90] sm:$0xff]  ;;  %v6472_v48 = vld [vmem:[#allocation7 + $0x1d0] sm:$0xff]  }
  0x93   : > { %5648 = vmatpush3.bf16.msra.mxu1 %v6470_v33  ;;  %320 = vst [vmem:[#allocation2 + $0x141] sm:$0xff] %v287_v35  ;;  %v7093_v39 = vpack.c.bf16 %v287_v35, %v286_v34  ;;  %v465_v46 = vld [vmem:[#allocation2 + $0x98] sm:$0xff]  ;;  %v6473_v49 = vld [vmem:[#allocation7 + $0x130] sm:$0xff]   ;;  %v6475_v56 = vld [vmem:[#allocation7 + $0x1d8] sm:$0xff]  }
  0x94   : > { %1665 = vmatmul.mubr.bf16.gmra.mrb[4].mxu0 %v423_v52  ;;  %v6474_v50 = vld [vmem:[#allocation7 + $0x190] sm:$0xff]   ;;  %v290_v52 = vld [vmem:[%s6940_s30 + $0xe0] sm:$0xff]  ;;  %v291_v53 = vld [vmem:[%s6940_s30 + $0xe8] sm:$0xff]  ;;  %5649 = vmatprep.subr.bf16.mxu1 %v6472_v48  ;;  %v492_v45 = vpack.c.bf16 %v465_v46, %v464_v43 }
  0x95   : > { %1826 = vmatmul.mubr.bf16.gmra.mrb[4].mxu1 %v7052_v4  ;;  %1672 = vmatprep.mubr.bf16.mxu0 %v7052_v4  ;;  %323 = vst [vmem:[#allocation2 + $0x169] sm:$0xff] %v290_v52  ;;  %324 = vst [vmem:[#allocation2 + $0x171] sm:$0xff] %v291_v53  ;;  %v7105_v44 = vpack.c.bf16 %v291_v53, %v290_v52  ;;  %v6476_v59 = vld [vmem:[#allocation7 + $0x198] sm:$0xff]   ;;  %v7112_v60 = vld [vmem:[%s6940_s30 + $0xf0] sm:$0xff] }
  0x96   : > { %1833 = vmatprep.mubr.bf16.mxu1 %v7054_v6  ;;  %5538 = vmatpush3.bf16.msra.mxu0 %v6460_v5  ;;  %v7115_v61 = vld [vmem:[%s6940_s30 + $0xf8] sm:$0xff]  ;;  %325 = vst [vmem:[#allocation2 + $0x181] sm:$0xff] %v7112_v60  ;;  %v6480_v5 = vld [vmem:[#allocation7 + $0x1a0] sm:$0xff]   ;;  %v6482_v13 = vld [vmem:[#allocation7 + $0x1a8] sm:$0xff]  }
  0x97   : > { %5539 = vmatprep.subr.bf16.mxu0 %v6461_v7  ;;  %5650 = vmatpush3.bf16.msra.mxu1 %v6474_v50  ;;  %326 = vst [vmem:[#allocation2 + $0x189] sm:$0xff] %v7115_v61  ;;  %v6477_v62 = vld [vmem:[#allocation7 + $0x178] sm:$0xff]   ;;  %v6481_v7 = vld [vmem:[#allocation7 + $0x1e8] sm:$0xff]   ;;  %v6483_v14 = vld [vmem:[#allocation7 + $0x1f0] sm:$0xff]  }
  0x98   : > { %5651 = vmatprep.subr.bf16.mxu1 %v6475_v56  ;;  %v6478_v63 = vld [vmem:[#allocation7 + $0x138] sm:$0xff]   ;;  %v468_v15 = vld [vmem:[#allocation2 + $0xc0] sm:$0xff]  ;;  %v470_v21 = vld [vmem:[#allocation2 + $0xd8] sm:$0xff] }
  0x99   : > { %v6485_v18 = vld [vmem:[#allocation7 + $0x1f8] sm:$0xff]   ;;  %v471_v22 = vld [vmem:[#allocation2 + $0xe0] sm:$0xff]  ;;  %v472_v28 = vld [vmem:[#allocation2 + $0xf0] sm:$0xff] }
  0x9a   : > { %5540 = vmatpush3.bf16.msra.mxu0 %v6462_v16  ;;  %v469_v16 = vld [vmem:[#allocation2 + $0xc8] sm:$0xff]  ;;  %v473_v0 = vld [vmem:[#allocation2 + $0xf8] sm:$0xff]  ;;  %v475_v31 = vld [vmem:[#allocation2 + $0x110] sm:$0xff] }
  0x9b   : > { %5541 = vmatprep.subr.bf16.mxu0 %v6463_v17  ;;  %5652 = vmatpush3.bf16.msra.mxu1 %v6476_v59  ;;  %v6484_v17 = vld [vmem:[#allocation7 + $0x1b0] sm:$0xff]   ;;  %v494_v20 = vpack.c.bf16 %v469_v16, %v468_v15  ;;  %v6486_v55 = vld [vmem:[#allocation7 + $0x1b8] sm:$0xff]   ;;  %v496_v1 = vpack.c.bf16 %v473_v0, %v472_v28  ;;  %v478_v34 = vld [vmem:[#allocation2 + $0x138] sm:$0xff] }
  0x9c   : > { %1673 = vmatmul.mubr.bf16.gmra.mrb[8].mxu0 %v7031_v58  ;;  %v7109_v58 = vpack.c.bf16 %v7017_v51, %v7013_v47  ;;  %v466_v47 = vld [vmem:[#allocation2 + $0xa8] sm:$0xff]  ;;  %v467_v51 = vld [vmem:[#allocation2 + $0xb0] sm:$0xff]  ;;  %v476_v3 = vld [vmem:[#allocation2 + $0x120] sm:$0xff] }
  0x9d   : > { %1834 = vmatmul.mubr.bf16.gmra.mrb[8].mxu1 %v7071_v19  ;;  %1680 = vmatprep.mubr.bf16.mxu0 %v7071_v19  ;;  %v493_v10 = vpack.c.bf16 %v467_v51, %v466_v47  ;;  %v479_v8 = vld [vmem:[#allocation2 + $0x140] sm:$0xff]  ;;  %v480_v35 = vld [vmem:[#allocation2 + $0x150] sm:$0xff]  ;;  %v481_v36 = vld [vmem:[#allocation2 + $0x158] sm:$0xff] }
  0x9e   : > { %1841 = vmatprep.mubr.bf16.mxu1 %v7078_v23  ;;  %5542 = vmatpush3.bf16.msra.mxu0 %v6465_v24  ;;  %v495_v24 = vpack.c.bf16 %v471_v22, %v470_v21  ;;  %v499_v9 = vpack.c.bf16 %v479_v8, %v478_v34  ;;  %v500_v37 = vpack.c.bf16 %v481_v36, %v480_v35  ;;  %v484_v46 = vld [vmem:[#allocation2 + $0x180] sm:$0xff]  ;;  %v485_v48 = vld [vmem:[#allocation2 + $0x188] sm:$0xff]  ;;  %v486_v50 = vld [vmem:[#allocation2 + $0x198] sm:$0xff] }
  0x9f   : > { %5543 = vmatprep.subr.bf16.mxu0 %v6467_v30  ;;  %v474_v30 = vld [vmem:[#allocation2 + $0x108] sm:$0xff]  ;;  %v776_v52 = vld [vmem:[#allocation2 + $0x1a] sm:$0xff] }
  0xa0   : > { %v497_v2 = vpack.c.bf16 %v475_v31, %v474_v30  ;;  %v777_v53 = vld [vmem:[#allocation2 + $0x22] sm:$0xff]  ;;  %v779_v47 = vld [vmem:[#allocation2 + $0x3a] sm:$0xff]  ;;  %v796_v8 = vld [vmem:[#allocation2 + $0x10a] sm:$0xff] }
  0xa1   : > { %v808_v59 = vpack.c.bf16 %v777_v53, %v776_v52  ;;  %v6490_v16 = vld [vmem:[#allocation7 + $0x218] sm:$0xff]   ;;  %v6493_v21 = vld [vmem:[#allocation7 + $0x230] sm:$0xff]  }
  0xa2   : > { %5544 = vmatpush3.bf16.msra.mxu0 %v6469_v32  ;;  %v477_v32 = vld [vmem:[#allocation2 + $0x128] sm:$0xff]  ;;  %v787_v28 = vld [vmem:[#allocation2 + $0x9a] sm:$0xff] }
  0xa3   : > { %5545 = vmatprep.subr.bf16.mxu0 %v6471_v42  ;;  %v498_v33 = vpack.c.bf16 %v477_v32, %v476_v3  ;;  %v483_v42 = vld [vmem:[#allocation2 + $0x170] sm:$0xff]  ;;  %v790_v31 = vld [vmem:[#allocation2 + $0xc2] sm:$0xff]  ;;  %v792_v3 = vld [vmem:[#allocation2 + $0xda] sm:$0xff] }
  0xa4   : > { %1681 = vmatmul.mubr.bf16.gmra.mrb[12].mxu0 %v7052_v4  ;;  %v6479_v4 = vld [vmem:[#allocation7 + $0x1e0] sm:$0xff]   ;;  %v798_v35 = vld [vmem:[#allocation2 + $0x122] sm:$0xff] }
  0xa5   : > { %1842 = vmatmul.mubr.bf16.gmra.mrb[12].mxu1 %v491_v38  ;;  %1688 = vmatprep.mubr.bf16.mxu0 %v491_v38 }
  0xa6   : > { %1849 = vmatprep.mubr.bf16.mxu1 %v7099_v41  ;;  %5546 = vmatpush3.bf16.msra.mxu0 %v6473_v49  ;;  %v502_v49 = vpack.c.bf16 %v485_v48, %v484_v46 }
  0xa7   : > { %5547 = vmatprep.subr.bf16.mxu0 %v6477_v62  ;;  %5653 = vmatprep.subr.bf16.mxu1 %v6479_v4  ;;  %v712_v62 = vld [vmem:[#allocation2 + $0x2] sm:$0xff]  ;;  %v778_v4 = vld [vmem:[#allocation2 + $0x32] sm:$0xff] }
  0xa8   : > { %5654 = vmatpush3.bf16.msra.mxu1 %v6480_v5  ;;  %v7151_v5 = vpack.c.bf16 %v779_v47, %v778_v4  ;;  %v802_v47 = vld [vmem:[#allocation2 + $0x152] sm:$0xff] }
  0xa9   : > { %5655 = vmatprep.subr.bf16.mxu1 %v6481_v7  ;;  %v6488_v7 = vld [vmem:[#allocation7 + $0x208] sm:$0xff]  }
  0xaa   : > { %5548 = vmatpush3.bf16.msra.mxu0 %v6478_v63  ;;  %v713_v63 = vld [vmem:[#allocation2 + $0xa] sm:$0xff] }
  0xab   : > { %v744_v51 = vpack.c.bf16 %v713_v63, %v712_v62 }
  0xac   : > { %1689 = vmatmul.mubr.bf16.gmra.mrb[16].mxu0 %v7071_v19  ;;  %5656 = vmatpush3.bf16.msra.mxu1 %v6482_v13  ;;  %v7126_v19 = vld [vmem:[#allocation7 + $0x200] sm:$0xff]  }
  0xad   : > { %1850 = vmatmul.mubr.bf16.gmra.mrb[16].mxu1 %v492_v45  ;;  %1696 = vmatprep.mubr.bf16.mxu0 %v492_v45  ;;  %v780_v13 = vld [vmem:[#allocation2 + $0x4a] sm:$0xff] }
  0xae   : > { %1857 = vmatprep.mubr.bf16.mxu1 %v7109_v58  ;;  %5657 = vmatprep.subr.bf16.mxu1 %v6483_v14  ;;  %v781_v14 = vld [vmem:[#allocation2 + $0x52] sm:$0xff] }
  0xaf   : > { %6253 = vmatprep.subr.bf16.mxu0 %v7126_v19  ;;  %v7157_v15 = vpack.c.bf16 %v781_v14, %v780_v13 }
  0xb0   : > { %5658 = vmatpush3.bf16.msra.mxu1 %v6484_v17  ;;  %v783_v17 = vld [vmem:[#allocation2 + $0x6a] sm:$0xff] }
  0xb1   : > { %5659 = vmatprep.subr.bf16.mxu1 %v6485_v18  ;;  %v6491_v18 = vld [vmem:[#allocation7 + $0x220] sm:$0xff]  }
  0xb4   : > { %1697 = vmatmul.mubr.bf16.gmra.mrb[20].mxu0 %v491_v38  ;;  %5660 = vmatpush3.bf16.msra.mxu1 %v6486_v55  ;;  %v482_v38 = vld [vmem:[#allocation2 + $0x168] sm:$0xff] }
  0xb5   : > { %1858 = vmatmul.mubr.bf16.gmra.mrb[20].mxu1 %v493_v10  ;;  %1704 = vmatprep.mubr.bf16.mxu0 %v493_v10  ;;  %v501_v43 = vpack.c.bf16 %v483_v42, %v482_v38  ;;  %v785_v55 = vld [vmem:[#allocation2 + $0x82] sm:$0xff] }
  0xb6   : > { %1865 = vmatprep.mubr.bf16.mxu1 %v7123_v11  ;;  %v801_v38 = vld [vmem:[#allocation2 + $0x142] sm:$0xff] }
  0xbc   : > { %1705 = vmatmul.mubr.bf16.gmra.mrb[24].mxu0 %v492_v45  ;;  %v6571_v45 = vld [vmem:[#allocation2 + $0x8] sm:$0xff] }
  0xbd   : > { %1866 = vmatmul.mubr.bf16.gmra.mrb[24].mxu1 %v494_v20  ;;  %1712 = vmatprep.mubr.bf16.mxu0 %v494_v20  ;;  %v503_v56 = vpack.c.bf16 %v6571_v45, %v486_v50 }
  0xbe   : > { %1873 = vmatprep.mubr.bf16.mxu1 %v7131_v54 }
  0xc4   : > { %1713 = vmatmul.mubr.bf16.gmra.mrb[28].mxu0 %v493_v10  ;;  %v6489_v10 = vld [vmem:[#allocation7 + $0x210] sm:$0xff]  }
  0xc5   : > { %1874 = vmatmul.mubr.bf16.gmra.mrb[28].mxu1 %v495_v24  ;;  %1720 = vmatprep.mubr.bf16.mxu0 %v495_v24 }
  0xc6   : > { %1881 = vmatprep.mubr.bf16.mxu1 %v7136_v25 }
  0xcc   : > { %1721 = vmatmul.mubr.bf16.gmra.mrb[32].mxu0 %v494_v20  ;;  %v6492_v20 = vld [vmem:[#allocation7 + $0x228] sm:$0xff]  }
  0xcd   : > { %1882 = vmatmul.mubr.bf16.gmra.mrb[32].mxu1 %v496_v1  ;;  %1728 = vmatprep.mubr.bf16.mxu0 %v496_v1 }
  0xce   : > { %1889 = vmatprep.mubr.bf16.mxu1 %v7141_v29 }
  0xd4   : > { %1729 = vmatmul.mubr.bf16.gmra.mrb[36].mxu0 %v495_v24  ;;  %v6494_v24 = vld [vmem:[#allocation7 + $0x238] sm:$0xff]  }
  0xd5   : > { %1890 = vmatmul.mubr.bf16.gmra.mrb[36].mxu1 %v497_v2  ;;  %1736 = vmatprep.mubr.bf16.mxu0 %v497_v2 }
  0xd6   : > { %1897 = vmatprep.mubr.bf16.mxu1 %v7066_v12 }
  0xdc   : > { %1737 = vmatmul.mubr.bf16.gmra.mrb[40].mxu0 %v496_v1  ;;  %v789_v1 = vld [vmem:[#allocation2 + $0xb2] sm:$0xff] }
  0xdd   : > { %1898 = vmatmul.mubr.bf16.gmra.mrb[40].mxu1 %v498_v33  ;;  %1744 = vmatprep.mubr.bf16.mxu0 %v498_v33 }
  0xde   : > { %1905 = vmatprep.mubr.bf16.mxu1 %v7081_v26 }
  0xe4   : > { %1745 = vmatmul.mubr.bf16.gmra.mrb[44].mxu0 %v497_v2 }
  0xe5   : > { %1906 = vmatmul.mubr.bf16.gmra.mrb[44].mxu1 %v499_v9  ;;  %1752 = vmatprep.mubr.bf16.mxu0 %v499_v9 }
  0xe6   : > { %1913 = vmatprep.mubr.bf16.mxu1 %v7083_v27 }
  0xec   : > { %1753 = vmatmul.mubr.bf16.gmra.mrb[48].mxu0 %v498_v33  ;;  %v794_v33 = vld [vmem:[#allocation2 + $0xf2] sm:$0xff] }
  0xed   : > { %1914 = vmatmul.mubr.bf16.gmra.mrb[48].mxu1 %v500_v37  ;;  %1760 = vmatprep.mubr.bf16.mxu0 %v500_v37 }
  0xee   : > { %1921 = vmatprep.mubr.bf16.mxu1 %v7093_v39 }
  0xf4   : > { %1761 = vmatmul.mubr.bf16.gmra.mrb[52].mxu0 %v499_v9 }
  0xf5   : > { %1922 = vmatmul.mubr.bf16.gmra.mrb[52].mxu1 %v501_v43  ;;  %1768 = vmatprep.mubr.bf16.mxu0 %v501_v43 }
  0xf6   : > { %1929 = vmatprep.mubr.bf16.mxu1 %v7095_v40 }
  0xfc   : > { %1769 = vmatmul.mubr.bf16.gmra.mrb[56].mxu0 %v500_v37 }
  0xfd   : > { %1930 = vmatmul.mubr.bf16.gmra.mrb[56].mxu1 %v502_v49  ;;  %1776 = vmatprep.mubr.bf16.mxu0 %v502_v49 }
  0xfe   : > { %1937 = vmatprep.mubr.bf16.mxu1 %v7105_v44 }
 0x104   : > { %1777 = vmatmul.mubr.bf16.gmra.mrb[60].mxu0 %v501_v43 }
 0x105   : > { %1938 = vmatmul.mubr.bf16.gmra.mrb[60].mxu1 %v503_v56  ;;  %1978 = vmatprep.mubr.bf16.mxu0 %v7054_v6 }
 0x106   : > { %2139 = vmatprep.mubr.bf16.mxu1 %v808_v59 }
 0x10c   : > { %1979 = vmatmul.mubr.bf16.vlgmr.msra.gmra.mrb[64].mxu0 %v7027_v57  ;;  %v782_v57 = vld [vmem:[#allocation2 + $0x62] sm:$0xff] }
 0x10d   : > { %6254 = vmatpush3.bf16.msra.mxu0 %v7126_v19  ;;  %2140 = vmatmul.mubr.bf16.vlgmr.msra.gmra.mrb[64].mxu1 %v744_v51  ;;  %v7162_v19 = vpack.c.bf16 %v783_v17, %v782_v57  ;;  %v803_v51 = vld [vmem:[#allocation2 + $0x15a] sm:$0xff] }
 0x10e   : > { %1986 = vmatprep.mubr.bf16.mxu0 %v7078_v23  ;;  %2147 = vmatprep.mubr.bf16.mxu1 %v7151_v5 }
 0x10f   : > { %6255 = vmatprep.subr.bf16.mxu0 %v6488_v7 }
 0x111   : > { %6256 = vmatpush3.bf16.msra.mxu0 %v6488_v7 }
 0x112   : > { %6257 = vmatprep.subr.bf16.mxu0 %v6489_v10 }
 0x114   : > { %1987 = vmatmul.mubr.bf16.gmra.mrb[68].mxu0 %v7054_v6  ;;  %v784_v6 = vld [vmem:[#allocation2 + $0x7a] sm:$0xff] }
 0x115   : > { %2148 = vmatmul.mubr.bf16.gmra.mrb[68].mxu1 %v808_v59  ;;  %1994 = vmatprep.mubr.bf16.mxu0 %v7099_v41  ;;  %v7168_v22 = vpack.c.bf16 %v785_v55, %v784_v6 }
 0x116   : > { %2155 = vmatprep.mubr.bf16.mxu1 %v7157_v15  ;;  %6258 = vmatpush3.bf16.msra.mxu0 %v6489_v10 }
 0x117   : > { %6259 = vmatprep.subr.bf16.mxu0 %v6490_v16 }
 0x11a   : > { %6260 = vmatpush3.bf16.msra.mxu0 %v6490_v16 }
 0x11b   : > { %6261 = vmatprep.subr.bf16.mxu0 %v6491_v18 }
 0x11c   : > { %1995 = vmatmul.mubr.bf16.gmra.mrb[72].mxu0 %v7078_v23  ;;  %v786_v23 = vld [vmem:[#allocation2 + $0x92] sm:$0xff] }
 0x11d   : > { %2156 = vmatmul.mubr.bf16.gmra.mrb[72].mxu1 %v7151_v5  ;;  %2002 = vmatprep.mubr.bf16.mxu0 %v7109_v58  ;;  %v7174_v0 = vpack.c.bf16 %v787_v28, %v786_v23  ;;  %v804_v28 = vld [vmem:[#allocation2 + $0x16a] sm:$0xff] }
 0x11e   : > { %2163 = vmatprep.mubr.bf16.mxu1 %v7162_v19  ;;  %6262 = vmatpush3.bf16.msra.mxu0 %v6491_v18  ;;  %v7226_v18 = vpack.c.bf16 %v803_v51, %v802_v47 }
 0x11f   : > { %6263 = vmatprep.subr.bf16.mxu0 %v6492_v20 }
 0x122   : > { %6264 = vmatpush3.bf16.msra.mxu0 %v6492_v20 }
 0x123   : > { %6265 = vmatprep.subr.bf16.mxu0 %v6493_v21 }
 0x124   : > { %2003 = vmatmul.mubr.bf16.gmra.mrb[76].mxu0 %v7099_v41  ;;  %v788_v41 = vld [vmem:[#allocation2 + $0xaa] sm:$0xff] }
 0x125   : > { %2164 = vmatmul.mubr.bf16.gmra.mrb[76].mxu1 %v7157_v15  ;;  %2010 = vmatprep.mubr.bf16.mxu0 %v7123_v11  ;;  %v7180_v30 = vpack.c.bf16 %v789_v1, %v788_v41  ;;  %v805_v41 = vld [vmem:[#allocation2 + $0x172] sm:$0xff] }
 0x126   : > { %2171 = vmatprep.mubr.bf16.mxu1 %v7168_v22  ;;  %6266 = vmatpush3.bf16.msra.mxu0 %v6493_v21 }
 0x127   : > { %6267 = vmatprep.subr.bf16.mxu0 %v6494_v24 }
 0x12a   : > { %6268 = vmatpush3.bf16.msra.mxu0 %v6494_v24 }
 0x12c   : > { %2011 = vmatmul.mubr.bf16.gmra.mrb[80].mxu0 %v7109_v58  ;;  %v791_v58 = vld [vmem:[#allocation2 + $0xca] sm:$0xff] }
 0x12d   : > { %2172 = vmatmul.mubr.bf16.gmra.mrb[80].mxu1 %v7162_v19  ;;  %2018 = vmatprep.mubr.bf16.mxu0 %v7131_v54  ;;  %v7186_v2 = vpack.c.bf16 %v791_v58, %v790_v31 }
 0x12e   : > { %2179 = vmatprep.mubr.bf16.mxu1 %v7174_v0 }
 0x134   : > { %2019 = vmatmul.mubr.bf16.gmra.mrb[84].mxu0 %v7123_v11  ;;  %v793_v11 = vld [vmem:[#allocation2 + $0xe2] sm:$0xff] }
 0x135   : > { %2180 = vmatmul.mubr.bf16.gmra.mrb[84].mxu1 %v7168_v22  ;;  %2026 = vmatprep.mubr.bf16.mxu0 %v7136_v25  ;;  %v7192_v32 = vpack.c.bf16 %v793_v11, %v792_v3 }
 0x136   : > { %2187 = vmatprep.mubr.bf16.mxu1 %v7180_v30 }
 0x13c   : > { %2027 = vmatmul.mubr.bf16.gmra.mrb[88].mxu0 %v7131_v54  ;;  %v795_v54 = vld [vmem:[#allocation2 + $0xfa] sm:$0xff] }
 0x13d   : > { %2188 = vmatmul.mubr.bf16.gmra.mrb[88].mxu1 %v7174_v0  ;;  %2034 = vmatprep.mubr.bf16.mxu0 %v7141_v29  ;;  %v7198_v34 = vpack.c.bf16 %v795_v54, %v794_v33 }
 0x13e   : > { %2195 = vmatprep.mubr.bf16.mxu1 %v7186_v2 }
 0x144   : > { %2035 = vmatmul.mubr.bf16.gmra.mrb[92].mxu0 %v7136_v25  ;;  %v797_v25 = vld [vmem:[#allocation2 + $0x112] sm:$0xff] }
 0x145   : > { %2196 = vmatmul.mubr.bf16.gmra.mrb[92].mxu1 %v7180_v30  ;;  %2042 = vmatprep.mubr.bf16.mxu0 %v7066_v12  ;;  %v7204_v9 = vpack.c.bf16 %v797_v25, %v796_v8  ;;  %v7238_v25 = vpack.c.bf16 %v805_v41, %v804_v28 }
 0x146   : > { %2203 = vmatprep.mubr.bf16.mxu1 %v7192_v32 }
 0x14c   : > { %2043 = vmatmul.mubr.bf16.gmra.mrb[96].mxu0 %v7141_v29  ;;  %v799_v29 = vld [vmem:[#allocation2 + $0x12a] sm:$0xff] }
 0x14d   : > { %2204 = vmatmul.mubr.bf16.gmra.mrb[96].mxu1 %v7186_v2  ;;  %2050 = vmatprep.mubr.bf16.mxu0 %v7081_v26  ;;  %v7210_v36 = vpack.c.bf16 %v799_v29, %v798_v35 }
 0x14e   : > { %2211 = vmatprep.mubr.bf16.mxu1 %v7198_v34 }
 0x154   : > { %2051 = vmatmul.mubr.bf16.gmra.mrb[100].mxu0 %v7066_v12  ;;  %v800_v12 = vld [vmem:[#allocation2 + $0x13a] sm:$0xff] }
 0x155   : > { %2212 = vmatmul.mubr.bf16.gmra.mrb[100].mxu1 %v7192_v32  ;;  %2058 = vmatprep.mubr.bf16.mxu0 %v7083_v27  ;;  %v7216_v45 = vpack.c.bf16 %v801_v38, %v800_v12  ;;  %v678_v38 = vld [vmem:[#allocation2 + $0x199] sm:$0xff] }
 0x156   : > { %2219 = vmatprep.mubr.bf16.mxu1 %v7204_v9 }
 0x15c   : > { %2059 = vmatmul.mubr.bf16.gmra.mrb[104].mxu0 %v7081_v26 }
 0x15d   : > { %2220 = vmatmul.mubr.bf16.gmra.mrb[104].mxu1 %v7198_v34  ;;  %2066 = vmatprep.mubr.bf16.mxu0 %v7093_v39 }
 0x15e   : > { %2227 = vmatprep.mubr.bf16.mxu1 %v7210_v36 }
 0x15f   : > { %v5325_v37 = vpop.f32.mrb[0].mxu0 }
 0x160   : > { %v5437_v42 = vpop.f32.mrb[0].mxu1  ;;  %v5326_v43 = vpop.f32.mrb[1].mxu0 }
 0x161   : > { %v5327_v46 = vadd.f32 %v5326_v43, %v5325_v37  ;;  %v5438_v48 = vpop.f32.mrb[1].mxu1  ;;  %v5328_v49 = vpop.f32.mrb[2].mxu0  ;;  %v806_v43 = vld [vmem:[#allocation2 + $0x182] sm:$0xff] }
 0x162   : > { %v5439_v50 = vadd.f32 %v5438_v48, %v5437_v42  ;;  %v5440_v52 = vpop.f32.mrb[2].mxu1  ;;  %v5329_v53 = vpop.f32.mrb[3].mxu0  ;;  %v679_v42 = vld [vmem:[#allocation2 + $0x1a1] sm:$0xff] }
 0x163   : > { %v5330_v26 = vadd.f32 %v5329_v53, %v5328_v49  ;;  %v5441_v56 = vpop.f32.mrb[3].mxu1 }
 0x164   : > { %v5442_v59 = vadd.f32 %v5441_v56, %v5440_v52  ;;  %2067 = vmatmul.mubr.bf16.gmra.mrb[108].mxu0 %v7083_v27  ;;  %v7219_v62 = vadd.f32 %v5439_v50, %v5327_v46  ;;  %v807_v46 = vld [vmem:[#allocation2 + $0x18a] sm:$0xff] }
 0x165   : > { %2228 = vmatmul.mubr.bf16.gmra.mrb[108].mxu1 %v7204_v9  ;;  %2074 = vmatprep.mubr.bf16.mxu0 %v7095_v40 }
 0x166   : > { %2235 = vmatprep.mubr.bf16.mxu1 %v7216_v45  ;;  %v7224_v63 = vadd.f32 %v5442_v59, %v5330_v26 }
 0x167   : > { %v5331_v4 = vpop.f32.mrb[4].mxu0 }
 0x168   : > { %v5443_v7 = vpop.f32.mrb[4].mxu1  ;;  %v5332_v10 = vpop.f32.mrb[5].mxu0 }
 0x169   : > { %v5333_v13 = vadd.f32 %v5332_v10, %v5331_v4  ;;  %v5444_v14 = vpop.f32.mrb[5].mxu1  ;;  %v5334_v16 = vpop.f32.mrb[6].mxu0  ;;  %v7247_v4 = vpack.c.bf16 %v807_v46, %v806_v43 }
 0x16a   : > { %v5445_v57 = vadd.f32 %v5444_v14, %v5443_v7  ;;  %v5446_v27 = vpop.f32.mrb[6].mxu1  ;;  %v5335_v17 = vpop.f32.mrb[7].mxu0 }
 0x16b   : > { %v5336_v20 = vadd.f32 %v5335_v17, %v5334_v16  ;;  %v5447_v6 = vpop.f32.mrb[7].mxu1 }
 0x16c   : > { %v5448_v55 = vadd.f32 %v5447_v6, %v5446_v27  ;;  %2075 = vmatmul.mubr.bf16.gmra.mrb[112].mxu0 %v7093_v39  ;;  %v7229_v21 = vadd.f32 %v5445_v57, %v5333_v13  ;;  %v694_v39 = vpack.c.bf16 %v7115_v61, %v7112_v60 }
 0x16d   : > { %2236 = vmatmul.mubr.bf16.gmra.mrb[112].mxu1 %v7210_v36  ;;  %2082 = vmatprep.mubr.bf16.mxu0 %v7105_v44 }
 0x16e   : > { %2243 = vmatprep.mubr.bf16.mxu1 %v7226_v18  ;;  %v7234_v24 = vadd.f32 %v5448_v55, %v5336_v20 }
 0x16f   : > { %v5337_v23 = vpop.f32.mrb[8].mxu0 }
 0x170   : > { %v5449_v1 = vpop.f32.mrb[8].mxu1  ;;  %v5338_v31 = vpop.f32.mrb[9].mxu0 }
 0x171   : > { %v5339_v58 = vadd.f32 %v5338_v31, %v5337_v23  ;;  %v5450_v3 = vpop.f32.mrb[9].mxu1  ;;  %v5340_v11 = vpop.f32.mrb[10].mxu0 }
 0x172   : > { %v5451_v33 = vadd.f32 %v5450_v3, %v5449_v1  ;;  %v5452_v54 = vpop.f32.mrb[10].mxu1  ;;  %v5341_v8 = vpop.f32.mrb[11].mxu0 }
 0x173   : > { %v5342_v35 = vadd.f32 %v5341_v8, %v5340_v11  ;;  %v5453_v29 = vpop.f32.mrb[11].mxu1 }
 0x174   : > { %v5454_v37 = vadd.f32 %v5453_v29, %v5452_v54  ;;  %2083 = vmatmul.mubr.bf16.gmra.mrb[116].mxu0 %v7095_v40  ;;  %v7241_v12 = vadd.f32 %v5451_v33, %v5339_v58  ;;  %v695_v40 = vpack.c.bf16 %v679_v42, %v678_v38 }
 0x175   : > { %2244 = vmatmul.mubr.bf16.gmra.mrb[116].mxu1 %v7216_v45  ;;  %2090 = vmatprep.mubr.bf16.mxu0 %v694_v39 }
 0x176   : > { %2251 = vmatprep.mubr.bf16.mxu1 %v7238_v25  ;;  %v7245_v60 = vadd.f32 %v5454_v37, %v5342_v35 }
 0x177   : > { %v5343_v61 = vpop.f32.mrb[12].mxu0 }
 0x178   : > { %v5455_v48 = vpop.f32.mrb[12].mxu1  ;;  %v5344_v49 = vpop.f32.mrb[13].mxu0 }
 0x179   : > { %v5345_v50 = vadd.f32 %v5344_v49, %v5343_v61  ;;  %v5456_v52 = vpop.f32.mrb[13].mxu1  ;;  %v5346_v53 = vpop.f32.mrb[14].mxu0 }
 0x17a   : > { %v5457_v26 = vadd.f32 %v5456_v52, %v5455_v48  ;;  %v5458_v56 = vpop.f32.mrb[14].mxu1  ;;  %v5347_v59 = vpop.f32.mrb[15].mxu0 }
 0x17b   : > { %v5348_v47 = vadd.f32 %v5347_v59, %v5346_v53  ;;  %v5459_v51 = vpop.f32.mrb[15].mxu1 }
 0x17c   : > { %v5460_v7 = vadd.f32 %v5459_v51, %v5458_v56  ;;  %2091 = vmatmul.mubr.bf16.gmra.mrb[120].mxu0 %v7105_v44  ;;  %v7250_v10 = vadd.f32 %v5457_v26, %v5345_v50 }
 0x17d   : > { %2252 = vmatmul.mubr.bf16.gmra.mrb[120].mxu1 %v7226_v18  ;;  %2098 = vmatprep.mubr.bf16.mxu0 %v695_v40 }
 0x17e   : > { %2259 = vmatprep.mubr.bf16.mxu1 %v7247_v4  ;;  %v7254_v13 = vadd.f32 %v5460_v7, %v5348_v47 }
 0x17f   : > { %v5349_v14 = vpop.f32.mrb[16].mxu0 }
 0x180   : > { %v5461_v16 = vpop.f32.mrb[16].mxu1  ;;  %v5350_v57 = vpop.f32.mrb[17].mxu0 }
 0x181   : > { %v5351_v27 = vadd.f32 %v5350_v57, %v5349_v14  ;;  %v5462_v17 = vpop.f32.mrb[17].mxu1  ;;  %v5352_v20 = vpop.f32.mrb[18].mxu0 }
 0x182   : > { %v5463_v6 = vadd.f32 %v5462_v17, %v5461_v16  ;;  %v5464_v55 = vpop.f32.mrb[18].mxu1  ;;  %v5353_v23 = vpop.f32.mrb[19].mxu0 }
 0x183   : > { %v5354_v28 = vadd.f32 %v5353_v23, %v5352_v20  ;;  %v5465_v44 = vpop.f32.mrb[19].mxu1 }
 0x184   : > { %v5466_v41 = vadd.f32 %v5465_v44, %v5464_v55  ;;  %2099 = vmatmul.mubr.bf16.gmra.mrb[124].mxu0 %v694_v39  ;;  %v7256_v1 = vadd.f32 %v5463_v6, %v5351_v27 }
 0x185   : > { %2260 = vmatmul.mubr.bf16.gmra.mrb[124].mxu1 %v7238_v25  ;;  %6269 = vmatprep.mubr.bf16.mxu0 %v7151_v5 }
 0x186   : > { %v7260_v31 = vadd.f32 %v5466_v41, %v5354_v28 }
 0x187   : > { %v5355_v58 = vpop.f32.mrb[20].mxu0 }
 0x188   : > { %v5467_v3 = vpop.f32.mrb[20].mxu1  ;;  %v5356_v11 = vpop.f32.mrb[21].mxu0 }
 0x189   : > { %v5357_v33 = vadd.f32 %v5356_v11, %v5355_v58  ;;  %v5468_v54 = vpop.f32.mrb[21].mxu1  ;;  %v5358_v8 = vpop.f32.mrb[22].mxu0 }
 0x18a   : > { %v5469_v35 = vadd.f32 %v5468_v54, %v5467_v3  ;;  %v5470_v29 = vpop.f32.mrb[22].mxu1  ;;  %v5359_v37 = vpop.f32.mrb[23].mxu0 }
 0x18b   : > { %v5360_v38 = vadd.f32 %v5359_v37, %v5358_v8  ;;  %v5471_v42 = vpop.f32.mrb[23].mxu1 }
 0x18c   : > { %v5472_v39 = vadd.f32 %v5471_v42, %v5470_v29  ;;  %6270 = vmatmul.mubr.bf16.vlgmr.msra.gmra.mrb[128].mxu0 %v7157_v15  ;;  %v7263_v61 = vadd.f32 %v5469_v35, %v5357_v33 }
 0x18d   : > { %6273 = vmatprep.mubr.bf16.mxu0 %v7162_v19 }
 0x18e   : > { %v7266_v5 = vadd.f32 %v5472_v39, %v5360_v38 }
 0x18f   : > { %v5361_v43 = vpop.f32.mrb[24].mxu0 }
 0x190   : > { %v5473_v46 = vpop.f32.mrb[24].mxu1  ;;  %v5362_v48 = vpop.f32.mrb[25].mxu0 }
 0x191   : > { %v5363_v49 = vadd.f32 %v5362_v48, %v5361_v43  ;;  %v5474_v50 = vpop.f32.mrb[25].mxu1  ;;  %v5364_v52 = vpop.f32.mrb[26].mxu0 }
 0x192   : > { %v5475_v53 = vadd.f32 %v5474_v50, %v5473_v46  ;;  %v5476_v40 = vpop.f32.mrb[26].mxu1  ;;  %v5365_v26 = vpop.f32.mrb[27].mxu0 }
 0x193   : > { %v5366_v56 = vadd.f32 %v5365_v26, %v5364_v52  ;;  %v5477_v59 = vpop.f32.mrb[27].mxu1 }
 0x194   : > { %v5478_v47 = vadd.f32 %v5477_v59, %v5476_v40  ;;  %6274 = vmatmul.mubr.bf16.gmra.mrb[132].mxu0 %v7168_v22  ;;  %v7269_v15 = vadd.f32 %v5475_v53, %v5363_v49 }
 0x195   : > { %6277 = vmatprep.mubr.bf16.mxu0 %v7174_v0 }
 0x196   : > { %v7272_v19 = vadd.f32 %v5478_v47, %v5366_v56 }
 0x197   : > { %v5367_v51 = vpop.f32.mrb[28].mxu0 }
 0x198   : > { %v5479_v7 = vpop.f32.mrb[28].mxu1  ;;  %v5368_v14 = vpop.f32.mrb[29].mxu0 }
 0x199   : > { %v5369_v16 = vadd.f32 %v5368_v14, %v5367_v51  ;;  %v5480_v57 = vpop.f32.mrb[29].mxu1  ;;  %v5370_v27 = vpop.f32.mrb[30].mxu0 }
 0x19a   : > { %v5481_v17 = vadd.f32 %v5480_v57, %v5479_v7  ;;  %v5482_v20 = vpop.f32.mrb[30].mxu1  ;;  %v5371_v6 = vpop.f32.mrb[31].mxu0 }
 0x19b   : > { %v5372_v55 = vadd.f32 %v5371_v6, %v5370_v27  ;;  %v5483_v23 = vpop.f32.mrb[31].mxu1 }
 0x19c   : > { %v5484_v28 = vadd.f32 %v5483_v23, %v5482_v20  ;;  %6278 = vmatmul.mubr.bf16.gmra.mrb[136].mxu0 %v7180_v30  ;;  %v7275_v22 = vadd.f32 %v5481_v17, %v5369_v16 }
 0x19d   : > { %6281 = vmatprep.mubr.bf16.mxu0 %v7186_v2 }
 0x19e   : > { %v7278_v0 = vadd.f32 %v5484_v28, %v5372_v55 }
 0x19f   : > { %v5373_v44 = vpop.f32.mrb[32].mxu0 }
 0x1a0   : > { %v5485_v41 = vpop.f32.mrb[32].mxu1  ;;  %v5374_v58 = vpop.f32.mrb[33].mxu0 }
 0x1a1   : > { %v5375_v3 = vadd.f32 %v5374_v58, %v5373_v44  ;;  %v5486_v11 = vpop.f32.mrb[33].mxu1  ;;  %v5376_v33 = vpop.f32.mrb[34].mxu0 }
 0x1a2   : > { %v5487_v54 = vadd.f32 %v5486_v11, %v5485_v41  ;;  %v5488_v8 = vpop.f32.mrb[34].mxu1  ;;  %v5377_v35 = vpop.f32.mrb[35].mxu0 }
 0x1a3   : > { %v5378_v29 = vadd.f32 %v5377_v35, %v5376_v33  ;;  %v5489_v37 = vpop.f32.mrb[35].mxu1 }
 0x1a4   : > { %v7280_v38 = vadd.f32 %v5487_v54, %v5375_v3  ;;  %v5490_v30 = vadd.f32 %v5489_v37, %v5488_v8  ;;  %6282 = vmatmul.mubr.bf16.gmra.mrb[140].mxu0 %v7192_v32 }
 0x1a5   : > { %6285 = vmatprep.mubr.bf16.mxu0 %v7198_v34 }
 0x1a6   : > { %v7284_v2 = vadd.f32 %v5490_v30, %v5378_v29 }
 0x1a7   : > { %v5379_v42 = vpop.f32.mrb[36].mxu0 }
 0x1a8   : > { %v5491_v39 = vpop.f32.mrb[36].mxu1  ;;  %v5380_v43 = vpop.f32.mrb[37].mxu0 }
 0x1a9   : > { %v5381_v46 = vadd.f32 %v5380_v43, %v5379_v42  ;;  %v5492_v48 = vpop.f32.mrb[37].mxu1  ;;  %v5382_v49 = vpop.f32.mrb[38].mxu0 }
 0x1aa   : > { %v5493_v50 = vadd.f32 %v5492_v48, %v5491_v39  ;;  %v5494_v52 = vpop.f32.mrb[38].mxu1  ;;  %v5383_v53 = vpop.f32.mrb[39].mxu0 }
 0x1ab   : > { %v5384_v40 = vadd.f32 %v5383_v53, %v5382_v49  ;;  %v5495_v26 = vpop.f32.mrb[39].mxu1 }
 0x1ac   : > { %v7286_v56 = vadd.f32 %v5493_v50, %v5381_v46  ;;  %v5496_v59 = vadd.f32 %v5495_v26, %v5494_v52  ;;  %6286 = vmatmul.mubr.bf16.gmra.mrb[144].mxu0 %v7204_v9 }
 0x1ad   : > { %6289 = vmatprep.mubr.bf16.mxu0 %v7210_v36 }
 0x1ae   : > { %v7290_v32 = vadd.f32 %v5496_v59, %v5384_v40 }
 0x1af   : > { %v5385_v34 = vpop.f32.mrb[40].mxu0 }
 0x1b0   : > { %v5497_v47 = vpop.f32.mrb[40].mxu1  ;;  %v5386_v51 = vpop.f32.mrb[41].mxu0 }
 0x1b1   : > { %v5387_v7 = vadd.f32 %v5386_v51, %v5385_v34  ;;  %v5498_v14 = vpop.f32.mrb[41].mxu1  ;;  %v5388_v16 = vpop.f32.mrb[42].mxu0 }
 0x1b2   : > { %v5499_v57 = vadd.f32 %v5498_v14, %v5497_v47  ;;  %v5500_v27 = vpop.f32.mrb[42].mxu1  ;;  %v5389_v17 = vpop.f32.mrb[43].mxu0 }
 0x1b3   : > { %v5390_v20 = vadd.f32 %v5389_v17, %v5388_v16  ;;  %v5501_v6 = vpop.f32.mrb[43].mxu1 }
 0x1b4   : > { %v7292_v55 = vadd.f32 %v5499_v57, %v5387_v7  ;;  %v5502_v23 = vadd.f32 %v5501_v6, %v5500_v27  ;;  %6290 = vmatmul.mubr.bf16.gmra.mrb[148].mxu0 %v7216_v45  ;;  %v870_v45 = vld [vmem:[#allocation2 + $0x19a] sm:$0xff] }
 0x1b5   : > { %6293 = vmatprep.mubr.bf16.mxu0 %v7226_v18  ;;  %v871_v18 = vld [vmem:[#allocation2 + $0x1a2] sm:$0xff] }
 0x1b6   : > { %v7296_v9 = vadd.f32 %v5502_v23, %v5390_v20  ;;  %v887_v46 = vpack.c.bf16 %v871_v18, %v870_v45 }
 0x1b7   : > { %v5391_v36 = vpop.f32.mrb[44].mxu0 }
 0x1b8   : > { %v5503_v28 = vpop.f32.mrb[44].mxu1  ;;  %v5392_v44 = vpop.f32.mrb[45].mxu0 }
 0x1b9   : > { %v5393_v41 = vadd.f32 %v5392_v44, %v5391_v36  ;;  %v5504_v58 = vpop.f32.mrb[45].mxu1  ;;  %v5394_v3 = vpop.f32.mrb[46].mxu0 }
 0x1ba   : > { %v5505_v11 = vadd.f32 %v5504_v58, %v5503_v28  ;;  %v5506_v33 = vpop.f32.mrb[46].mxu1  ;;  %v5395_v54 = vpop.f32.mrb[47].mxu0 }
 0x1bb   : > { %v5396_v8 = vadd.f32 %v5395_v54, %v5394_v3  ;;  %v5507_v35 = vpop.f32.mrb[47].mxu1 }
 0x1bc   : > { %v7298_v29 = vadd.f32 %v5505_v11, %v5393_v41  ;;  %v5508_v37 = vadd.f32 %v5507_v35, %v5506_v33  ;;  %6294 = vmatmul.mubr.bf16.gmra.mrb[152].mxu0 %v7238_v25 }
 0x1bd   : > { %6297 = vmatprep.mubr.bf16.mxu0 %v7247_v4 }
 0x1be   : > { %v7302_v30 = vadd.f32 %v5508_v37, %v5396_v8 }
 0x1bf   : > { %v5397_v42 = vpop.f32.mrb[48].mxu0 }
 0x1c0   : > { %v5509_v39 = vpop.f32.mrb[48].mxu1  ;;  %v5398_v43 = vpop.f32.mrb[49].mxu0 }
 0x1c1   : > { %v5399_v48 = vadd.f32 %v5398_v43, %v5397_v42  ;;  %v5510_v49 = vpop.f32.mrb[49].mxu1  ;;  %v5400_v50 = vpop.f32.mrb[50].mxu0 }
 0x1c2   : > { %v5511_v52 = vadd.f32 %v5510_v49, %v5509_v39  ;;  %v5512_v53 = vpop.f32.mrb[50].mxu1  ;;  %v5401_v40 = vpop.f32.mrb[51].mxu0 }
 0x1c3   : > { %v5402_v26 = vadd.f32 %v5401_v40, %v5400_v50  ;;  %v5513_v59 = vpop.f32.mrb[51].mxu1 }
 0x1c4   : > { %v7304_v34 = vadd.f32 %v5511_v52, %v5399_v48  ;;  %v5514_v25 = vadd.f32 %v5513_v59, %v5512_v53  ;;  %6298 = vmatmul.mubr.bf16.gmra.mrb[156].mxu0 %v887_v46 }
 0x1c6   : > { %v7306_v4 = vadd.f32 %v5514_v25, %v5402_v26 }
 0x1c7   : > { %v5403_v47 = vpop.f32.mrb[52].mxu0 }
 0x1c8   : > { %v5515_v51 = vpop.f32.mrb[52].mxu1  ;;  %v5404_v7 = vpop.f32.mrb[53].mxu0 }
 0x1c9   : > { %v5405_v14 = vadd.f32 %v5404_v7, %v5403_v47  ;;  %v5516_v16 = vpop.f32.mrb[53].mxu1  ;;  %v5406_v57 = vpop.f32.mrb[54].mxu0 }
 0x1ca   : > { %v5517_v27 = vadd.f32 %v5516_v16, %v5515_v51  ;;  %v5518_v17 = vpop.f32.mrb[54].mxu1  ;;  %v5407_v20 = vpop.f32.mrb[55].mxu0 }
 0x1cb   : > { %v5408_v6 = vadd.f32 %v5407_v20, %v5406_v57  ;;  %v5519_v23 = vpop.f32.mrb[55].mxu1 }
 0x1cc   : > { %v7308_v36 = vadd.f32 %v5517_v27, %v5405_v14  ;;  %v5520_v28 = vadd.f32 %v5519_v23, %v5518_v17 }
 0x1ce   : > { %v7310_v44 = vadd.f32 %v5520_v28, %v5408_v6 }
 0x1cf   : > { %v5409_v41 = vpop.f32.mrb[56].mxu0 }
 0x1d0   : > { %v5521_v58 = vpop.f32.mrb[56].mxu1  ;;  %v5410_v3 = vpop.f32.mrb[57].mxu0 }
 0x1d1   : > { %v5411_v11 = vadd.f32 %v5410_v3, %v5409_v41  ;;  %v5522_v33 = vpop.f32.mrb[57].mxu1  ;;  %v5412_v54 = vpop.f32.mrb[58].mxu0 }
 0x1d2   : > { %v5523_v8 = vadd.f32 %v5522_v33, %v5521_v58  ;;  %v5524_v35 = vpop.f32.mrb[58].mxu1  ;;  %v5413_v37 = vpop.f32.mrb[59].mxu0 }
 0x1d3   : > { %v5414_v45 = vadd.f32 %v5413_v37, %v5412_v54  ;;  %v5525_v18 = vpop.f32.mrb[59].mxu1 }
 0x1d4   : > { %v7312_v42 = vadd.f32 %v5523_v8, %v5411_v11  ;;  %v5526_v39 = vadd.f32 %v5525_v18, %v5524_v35 }
 0x1d6   : > { %v7314_v43 = vadd.f32 %v5526_v39, %v5414_v45 }
 0x1d7   : > { %v5415_v46 = vpop.f32.mrb[60].mxu0 }
 0x1d8   : > { %v5527_v48 = vpop.f32.mrb[60].mxu1  ;;  %v5416_v49 = vpop.f32.mrb[61].mxu0 }
 0x1d9   : > { %v5417_v50 = vadd.f32 %v5416_v49, %v5415_v46  ;;  %v5528_v52 = vpop.f32.mrb[61].mxu1  ;;  %v5418_v53 = vpop.f32.mrb[62].mxu0 }
 0x1da   : > { %v5529_v40 = vadd.f32 %v5528_v52, %v5527_v48  ;;  %v5530_v26 = vpop.f32.mrb[62].mxu1  ;;  %v5419_v59 = vpop.f32.mrb[63].mxu0 }
 0x1db   : > { %v5420_v25 = vadd.f32 %v5419_v59, %v5418_v53  ;;  %v5531_v47 = vpop.f32.mrb[63].mxu1 }
 0x1dc   : > { %v7316_v51 = vadd.f32 %v5529_v40, %v5417_v50  ;;  %v5532_v7 = vadd.f32 %v5531_v47, %v5530_v26 }
 0x1de   : > { %v7318_v14 = vadd.f32 %v5532_v7, %v5420_v25 }
 0x1df   : > { %v5549_v16 = vpop.f32.mrb[64].mxu0 }
 0x1e0   : > { %v5550_v57 = vpop.f32.mrb[65].mxu0  ;;  %v5661_v27 = vpop.f32.mrb[64].mxu1 }
 0x1e1   : > { %v5551_v17 = vadd.f32 %v5550_v57, %v5549_v16  ;;  %v5552_v20 = vpop.f32.mrb[66].mxu0  ;;  %v5662_v6 = vpop.f32.mrb[65].mxu1 }
 0x1e2   : > { %v5553_v23 = vpop.f32.mrb[67].mxu0  ;;  %v5663_v28 = vadd.f32 %v5662_v6, %v5661_v27  ;;  %v5664_v41 = vpop.f32.mrb[66].mxu1 }
 0x1e3   : > { %v1981_v58 = vadd.f32 %v5551_v17, %v7219_v62  ;;  %v5554_v3 = vadd.f32 %v5553_v23, %v5552_v20  ;;  %v5665_v11 = vpop.f32.mrb[67].mxu1 }
 0x1e4   : > { %v5666_v33 = vadd.f32 %v5665_v11, %v5664_v41 }
 0x1e5   : > { %v1984_v54 = vadd.f32 %v5554_v3, %v7224_v63  ;;  %v7322_v8 = vadd.f32 %v5663_v28, %v1981_v58 }
 0x1e7   : > { %v5555_v35 = vpop.f32.mrb[68].mxu0  ;;  %v7324_v37 = vadd.f32 %v5666_v33, %v1984_v54 }
 0x1e8   : > { %v5556_v45 = vpop.f32.mrb[69].mxu0  ;;  %v5667_v18 = vpop.f32.mrb[68].mxu1 }
 0x1e9   : > { %v5557_v39 = vadd.f32 %v5556_v45, %v5555_v35  ;;  %v5558_v46 = vpop.f32.mrb[70].mxu0  ;;  %v5668_v48 = vpop.f32.mrb[69].mxu1 }
 0x1ea   : > { %v5559_v49 = vpop.f32.mrb[71].mxu0  ;;  %v5669_v50 = vadd.f32 %v5668_v48, %v5667_v18  ;;  %v5670_v52 = vpop.f32.mrb[70].mxu1 }
 0x1eb   : > { %v1989_v62 = vadd.f32 %v5557_v39, %v7229_v21  ;;  %v5560_v53 = vadd.f32 %v5559_v49, %v5558_v46  ;;  %v5671_v40 = vpop.f32.mrb[71].mxu1 }
 0x1ec   : > { %v5672_v26 = vadd.f32 %v5671_v40, %v5670_v52 }
 0x1ed   : > { %v1992_v63 = vadd.f32 %v5560_v53, %v7234_v24  ;;  %v7328_v59 = vadd.f32 %v5669_v50, %v1989_v62 }
 0x1ef   : > { %v5561_v25 = vpop.f32.mrb[72].mxu0  ;;  %v7330_v47 = vadd.f32 %v5672_v26, %v1992_v63 }
 0x1f0   : > { %v5562_v7 = vpop.f32.mrb[73].mxu0  ;;  %v5673_v16 = vpop.f32.mrb[72].mxu1 }
 0x1f1   : > { %v5563_v57 = vadd.f32 %v5562_v7, %v5561_v25  ;;  %v5564_v27 = vpop.f32.mrb[74].mxu0  ;;  %v5674_v17 = vpop.f32.mrb[73].mxu1 }
 0x1f2   : > { %v5565_v20 = vpop.f32.mrb[75].mxu0  ;;  %v5675_v6 = vadd.f32 %v5674_v17, %v5673_v16  ;;  %v5676_v23 = vpop.f32.mrb[74].mxu1 }
 0x1f3   : > { %v1997_v21 = vadd.f32 %v5563_v57, %v7241_v12  ;;  %v5566_v28 = vadd.f32 %v5565_v20, %v5564_v27  ;;  %v5677_v41 = vpop.f32.mrb[75].mxu1 }
 0x1f4   : > { %v5678_v58 = vadd.f32 %v5677_v41, %v5676_v23 }
 0x1f5   : > { %v2000_v24 = vadd.f32 %v5566_v28, %v7245_v60  ;;  %v7334_v3 = vadd.f32 %v5675_v6, %v1997_v21 }
 0x1f7   : > { %v5567_v11 = vpop.f32.mrb[76].mxu0  ;;  %v7336_v33 = vadd.f32 %v5678_v58, %v2000_v24 }
 0x1f8   : > { %v5568_v54 = vpop.f32.mrb[77].mxu0  ;;  %v5679_v35 = vpop.f32.mrb[76].mxu1 }
 0x1f9   : > { %v5569_v45 = vadd.f32 %v5568_v54, %v5567_v11  ;;  %v5570_v18 = vpop.f32.mrb[78].mxu0  ;;  %v5680_v39 = vpop.f32.mrb[77].mxu1 }
 0x1fa   : > { %v5571_v46 = vpop.f32.mrb[79].mxu0  ;;  %v5681_v48 = vadd.f32 %v5680_v39, %v5679_v35  ;;  %v5682_v49 = vpop.f32.mrb[78].mxu1 }
 0x1fb   : > { %v2005_v12 = vadd.f32 %v5569_v45, %v7250_v10  ;;  %v5572_v50 = vadd.f32 %v5571_v46, %v5570_v18  ;;  %v5683_v52 = vpop.f32.mrb[79].mxu1 }
 0x1fc   : > { %v5684_v62 = vadd.f32 %v5683_v52, %v5682_v49 }
 0x1fd   : > { %v2008_v60 = vadd.f32 %v5572_v50, %v7254_v13  ;;  %v7340_v53 = vadd.f32 %v5681_v48, %v2005_v12 }
 0x1ff   : > { %v5573_v40 = vpop.f32.mrb[80].mxu0  ;;  %v7342_v26 = vadd.f32 %v5684_v62, %v2008_v60 }
 0x200   : > { %v5574_v63 = vpop.f32.mrb[81].mxu0  ;;  %v5685_v25 = vpop.f32.mrb[80].mxu1 }
 0x201   : > { %v5575_v7 = vadd.f32 %v5574_v63, %v5573_v40  ;;  %v5576_v16 = vpop.f32.mrb[82].mxu0  ;;  %v5686_v57 = vpop.f32.mrb[81].mxu1 }
 0x202   : > { %v5577_v27 = vpop.f32.mrb[83].mxu0  ;;  %v5687_v17 = vadd.f32 %v5686_v57, %v5685_v25  ;;  %v5688_v20 = vpop.f32.mrb[82].mxu1 }
 0x203   : > { %v2013_v10 = vadd.f32 %v5575_v7, %v7256_v1  ;;  %v5578_v6 = vadd.f32 %v5577_v27, %v5576_v16  ;;  %v5689_v23 = vpop.f32.mrb[83].mxu1 }
 0x204   : > { %v5690_v21 = vadd.f32 %v5689_v23, %v5688_v20 }
 0x205   : > { %v2016_v13 = vadd.f32 %v5578_v6, %v7260_v31  ;;  %v7346_v28 = vadd.f32 %v5687_v17, %v2013_v10 }
 0x207   : > { %v5579_v41 = vpop.f32.mrb[84].mxu0  ;;  %v7348_v58 = vadd.f32 %v5690_v21, %v2016_v13 }
 0x208   : > { %v5580_v24 = vpop.f32.mrb[85].mxu0  ;;  %v5691_v11 = vpop.f32.mrb[84].mxu1 }
 0x209   : > { %v5581_v54 = vadd.f32 %v5580_v24, %v5579_v41  ;;  %v5582_v35 = vpop.f32.mrb[86].mxu0  ;;  %v5692_v45 = vpop.f32.mrb[85].mxu1 }
 0x20a   : > { %v5583_v18 = vpop.f32.mrb[87].mxu0  ;;  %v5693_v39 = vadd.f32 %v5692_v45, %v5691_v11  ;;  %v5694_v46 = vpop.f32.mrb[86].mxu1 }
 0x20b   : > { %v2021_v1 = vadd.f32 %v5581_v54, %v7263_v61  ;;  %v5584_v48 = vadd.f32 %v5583_v18, %v5582_v35  ;;  %v5695_v49 = vpop.f32.mrb[87].mxu1 }
 0x20c   : > { %v5696_v12 = vadd.f32 %v5695_v49, %v5694_v46 }
 0x20d   : > { %v2024_v31 = vadd.f32 %v5584_v48, %v7266_v5  ;;  %v7352_v50 = vadd.f32 %v5693_v39, %v2021_v1 }
 0x20f   : > { %v5585_v52 = vpop.f32.mrb[88].mxu0  ;;  %v7354_v62 = vadd.f32 %v5696_v12, %v2024_v31 }
 0x210   : > { %v5586_v60 = vpop.f32.mrb[89].mxu0  ;;  %v5697_v40 = vpop.f32.mrb[88].mxu1 }
 0x211   : > { %v5587_v63 = vadd.f32 %v5586_v60, %v5585_v52  ;;  %v5588_v25 = vpop.f32.mrb[90].mxu0  ;;  %v5698_v7 = vpop.f32.mrb[89].mxu1 }
 0x212   : > { %v5589_v16 = vpop.f32.mrb[91].mxu0  ;;  %v5699_v57 = vadd.f32 %v5698_v7, %v5697_v40  ;;  %v5700_v27 = vpop.f32.mrb[90].mxu1 }
 0x213   : > { %v2029_v61 = vadd.f32 %v5587_v63, %v7269_v15  ;;  %v5590_v17 = vadd.f32 %v5589_v16, %v5588_v25  ;;  %v5701_v20 = vpop.f32.mrb[91].mxu1 }
 0x214   : > { %v5702_v10 = vadd.f32 %v5701_v20, %v5700_v27 }
 0x215   : > { %v2032_v5 = vadd.f32 %v5590_v17, %v7272_v19  ;;  %v7358_v6 = vadd.f32 %v5699_v57, %v2029_v61 }
 0x217   : > { %v5591_v23 = vpop.f32.mrb[92].mxu0  ;;  %v7360_v21 = vadd.f32 %v5702_v10, %v2032_v5 }
 0x218   : > { %v5592_v13 = vpop.f32.mrb[93].mxu0  ;;  %v5703_v41 = vpop.f32.mrb[92].mxu1 }
 0x219   : > { %v5593_v24 = vadd.f32 %v5592_v13, %v5591_v23  ;;  %v5594_v11 = vpop.f32.mrb[94].mxu0  ;;  %v5704_v54 = vpop.f32.mrb[93].mxu1 }
 0x21a   : > { %v5595_v35 = vpop.f32.mrb[95].mxu0  ;;  %v5705_v45 = vadd.f32 %v5704_v54, %v5703_v41  ;;  %v5706_v18 = vpop.f32.mrb[94].mxu1 }
 0x21b   : > { %v2037_v15 = vadd.f32 %v5593_v24, %v7275_v22  ;;  %v5596_v39 = vadd.f32 %v5595_v35, %v5594_v11  ;;  %v5707_v46 = vpop.f32.mrb[95].mxu1 }
 0x21c   : > { %v5708_v1 = vadd.f32 %v5707_v46, %v5706_v18 }
 0x21d   : > { %v2040_v19 = vadd.f32 %v5596_v39, %v7278_v0  ;;  %v7364_v48 = vadd.f32 %v5705_v45, %v2037_v15 }
 0x21f   : > { %v5597_v49 = vpop.f32.mrb[96].mxu0  ;;  %v7366_v12 = vadd.f32 %v5708_v1, %v2040_v19 }
 0x220   : > { %v5598_v31 = vpop.f32.mrb[97].mxu0  ;;  %v5709_v52 = vpop.f32.mrb[96].mxu1 }
 0x221   : > { %v5599_v60 = vadd.f32 %v5598_v31, %v5597_v49  ;;  %v5600_v40 = vpop.f32.mrb[98].mxu0  ;;  %v5710_v63 = vpop.f32.mrb[97].mxu1 }
 0x222   : > { %v5601_v25 = vpop.f32.mrb[99].mxu0  ;;  %v5711_v7 = vadd.f32 %v5710_v63, %v5709_v52  ;;  %v5712_v16 = vpop.f32.mrb[98].mxu1 }
 0x223   : > { %v2045_v22 = vadd.f32 %v5599_v60, %v7280_v38  ;;  %v5602_v57 = vadd.f32 %v5601_v25, %v5600_v40  ;;  %v5713_v27 = vpop.f32.mrb[99].mxu1 }
 0x224   : > { %v5714_v61 = vadd.f32 %v5713_v27, %v5712_v16 }
 0x225   : > { %v2048_v0 = vadd.f32 %v5602_v57, %v7284_v2  ;;  %v7370_v17 = vadd.f32 %v5711_v7, %v2045_v22 }
 0x227   : > { %v5603_v20 = vpop.f32.mrb[100].mxu0  ;;  %v7372_v10 = vadd.f32 %v5714_v61, %v2048_v0 }
 0x228   : > { %v5604_v5 = vpop.f32.mrb[101].mxu0  ;;  %v5715_v23 = vpop.f32.mrb[100].mxu1 }
 0x229   : > { %v5605_v13 = vadd.f32 %v5604_v5, %v5603_v20  ;;  %v5606_v41 = vpop.f32.mrb[102].mxu0  ;;  %v5716_v24 = vpop.f32.mrb[101].mxu1 }
 0x22a   : > { %v5607_v11 = vpop.f32.mrb[103].mxu0  ;;  %v5717_v54 = vadd.f32 %v5716_v24, %v5715_v23  ;;  %v5718_v35 = vpop.f32.mrb[102].mxu1 }
 0x22b   : > { %v2053_v38 = vadd.f32 %v5605_v13, %v7286_v56  ;;  %v5608_v45 = vadd.f32 %v5607_v11, %v5606_v41  ;;  %v5719_v18 = vpop.f32.mrb[103].mxu1 }
 0x22c   : > { %v5720_v15 = vadd.f32 %v5719_v18, %v5718_v35 }
 0x22d   : > { %v2056_v2 = vadd.f32 %v5608_v45, %v7290_v32  ;;  %v7376_v39 = vadd.f32 %v5717_v54, %v2053_v38 }
 0x22f   : > { %v5609_v46 = vpop.f32.mrb[104].mxu0  ;;  %v7378_v1 = vadd.f32 %v5720_v15, %v2056_v2 }
 0x230   : > { %v5610_v19 = vpop.f32.mrb[105].mxu0  ;;  %v5721_v49 = vpop.f32.mrb[104].mxu1 }
 0x231   : > { %v5611_v31 = vadd.f32 %v5610_v19, %v5609_v46  ;;  %v5612_v52 = vpop.f32.mrb[106].mxu0  ;;  %v5722_v60 = vpop.f32.mrb[105].mxu1 }
 0x232   : > { %v5613_v40 = vpop.f32.mrb[107].mxu0  ;;  %v5723_v63 = vadd.f32 %v5722_v60, %v5721_v49  ;;  %v5724_v25 = vpop.f32.mrb[106].mxu1 }
 0x233   : > { %v2061_v56 = vadd.f32 %v5611_v31, %v7292_v55  ;;  %v5614_v7 = vadd.f32 %v5613_v40, %v5612_v52  ;;  %v5725_v16 = vpop.f32.mrb[107].mxu1 }
 0x234   : > { %v5726_v22 = vadd.f32 %v5725_v16, %v5724_v25 }
 0x235   : > { %v2064_v32 = vadd.f32 %v5614_v7, %v7296_v9  ;;  %v7382_v57 = vadd.f32 %v5723_v63, %v2061_v56 }
 0x237   : > { %v5615_v27 = vpop.f32.mrb[108].mxu0  ;;  %v7384_v61 = vadd.f32 %v5726_v22, %v2064_v32 }
 0x238   : > { %v5616_v0 = vpop.f32.mrb[109].mxu0  ;;  %v5727_v20 = vpop.f32.mrb[108].mxu1 }
 0x239   : > { %v5617_v5 = vadd.f32 %v5616_v0, %v5615_v27  ;;  %v5618_v23 = vpop.f32.mrb[110].mxu0  ;;  %v5728_v13 = vpop.f32.mrb[109].mxu1 }
 0x23a   : > { %v5619_v41 = vpop.f32.mrb[111].mxu0  ;;  %v5729_v24 = vadd.f32 %v5728_v13, %v5727_v20  ;;  %v5730_v11 = vpop.f32.mrb[110].mxu1 }
 0x23b   : > { %v2069_v55 = vadd.f32 %v5617_v5, %v7298_v29  ;;  %v5620_v54 = vadd.f32 %v5619_v41, %v5618_v23  ;;  %v5731_v35 = vpop.f32.mrb[111].mxu1 }
 0x23c   : > { %v5732_v38 = vadd.f32 %v5731_v35, %v5730_v11 }
 0x23d   : > { %v2072_v9 = vadd.f32 %v5620_v54, %v7302_v30  ;;  %v7388_v45 = vadd.f32 %v5729_v24, %v2069_v55 }
 0x23f   : > { %v5621_v18 = vpop.f32.mrb[112].mxu0  ;;  %v7390_v15 = vadd.f32 %v5732_v38, %v2072_v9 }
 0x240   : > { %v5622_v2 = vpop.f32.mrb[113].mxu0  ;;  %v5733_v46 = vpop.f32.mrb[112].mxu1 }
 0x241   : > { %v5623_v19 = vadd.f32 %v5622_v2, %v5621_v18  ;;  %v5624_v49 = vpop.f32.mrb[114].mxu0  ;;  %v5734_v31 = vpop.f32.mrb[113].mxu1 }
 0x242   : > { %v5625_v52 = vpop.f32.mrb[115].mxu0  ;;  %v5735_v60 = vadd.f32 %v5734_v31, %v5733_v46  ;;  %v5736_v40 = vpop.f32.mrb[114].mxu1 }
 0x243   : > { %v2077_v29 = vadd.f32 %v5623_v19, %v7304_v34  ;;  %v5626_v63 = vadd.f32 %v5625_v52, %v5624_v49  ;;  %v5737_v25 = vpop.f32.mrb[115].mxu1 }
 0x244   : > { %v5738_v56 = vadd.f32 %v5737_v25, %v5736_v40 }
 0x245   : > { %v2080_v30 = vadd.f32 %v5626_v63, %v7306_v4  ;;  %v7394_v7 = vadd.f32 %v5735_v60, %v2077_v29 }
 0x247   : > { %v5627_v16 = vpop.f32.mrb[116].mxu0  ;;  %v7396_v22 = vadd.f32 %v5738_v56, %v2080_v30 }
 0x248   : > { %v5628_v32 = vpop.f32.mrb[117].mxu0  ;;  %v5739_v27 = vpop.f32.mrb[116].mxu1 }
 0x249   : > { %v5629_v0 = vadd.f32 %v5628_v32, %v5627_v16  ;;  %v5630_v20 = vpop.f32.mrb[118].mxu0  ;;  %v5740_v5 = vpop.f32.mrb[117].mxu1 }
 0x24a   : > { %v5631_v23 = vpop.f32.mrb[119].mxu0  ;;  %v5741_v13 = vadd.f32 %v5740_v5, %v5739_v27  ;;  %v5742_v41 = vpop.f32.mrb[118].mxu1 }
 0x24b   : > { %v2085_v34 = vadd.f32 %v5629_v0, %v7308_v36  ;;  %v5632_v24 = vadd.f32 %v5631_v23, %v5630_v20  ;;  %v5743_v11 = vpop.f32.mrb[119].mxu1 }
 0x24c   : > { %v5744_v55 = vadd.f32 %v5743_v11, %v5742_v41 }
 0x24d   : > { %v2088_v4 = vadd.f32 %v5632_v24, %v7310_v44  ;;  %v7400_v54 = vadd.f32 %v5741_v13, %v2085_v34 }
 0x24f   : > { %v5633_v35 = vpop.f32.mrb[120].mxu0  ;;  %v7402_v38 = vadd.f32 %v5744_v55, %v2088_v4 }
 0x250   : > { %v5634_v9 = vpop.f32.mrb[121].mxu0  ;;  %v5745_v18 = vpop.f32.mrb[120].mxu1 }
 0x251   : > { %v5635_v2 = vadd.f32 %v5634_v9, %v5633_v35  ;;  %v5636_v46 = vpop.f32.mrb[122].mxu0  ;;  %v5746_v19 = vpop.f32.mrb[121].mxu1 }
 0x252   : > { %v5637_v49 = vpop.f32.mrb[123].mxu0  ;;  %v5747_v31 = vadd.f32 %v5746_v19, %v5745_v18  ;;  %v5748_v52 = vpop.f32.mrb[122].mxu1 }
 0x253   : > { %v2093_v36 = vadd.f32 %v5635_v2, %v7312_v42  ;;  %v5638_v60 = vadd.f32 %v5637_v49, %v5636_v46  ;;  %v5749_v40 = vpop.f32.mrb[123].mxu1 }
 0x254   : > { %v5750_v29 = vadd.f32 %v5749_v40, %v5748_v52 }
 0x255   : > { %v2096_v44 = vadd.f32 %v5638_v60, %v7314_v43  ;;  %v7406_v63 = vadd.f32 %v5747_v31, %v2093_v36 }
 0x257   : > { %v5639_v25 = vpop.f32.mrb[124].mxu0  ;;  %v7408_v56 = vadd.f32 %v5750_v29, %v2096_v44 }
 0x258   : > { %v5640_v30 = vpop.f32.mrb[125].mxu0  ;;  %v5751_v16 = vpop.f32.mrb[124].mxu1 }
 0x259   : > { %v5641_v32 = vadd.f32 %v5640_v30, %v5639_v25  ;;  %v5642_v27 = vpop.f32.mrb[126].mxu0  ;;  %v5752_v0 = vpop.f32.mrb[125].mxu1 }
 0x25a   : > { %v5643_v20 = vpop.f32.mrb[127].mxu0  ;;  %v5753_v5 = vadd.f32 %v5752_v0, %v5751_v16  ;;  %v5754_v23 = vpop.f32.mrb[126].mxu1 }
 0x25b   : > { %v2101_v42 = vadd.f32 %v5641_v32, %v7316_v51  ;;  %v5644_v13 = vadd.f32 %v5643_v20, %v5642_v27  ;;  %v5755_v41 = vpop.f32.mrb[127].mxu1 }
 0x25c   : > { %v5756_v34 = vadd.f32 %v5755_v41, %v5754_v23 }
 0x25d   : > { %v2104_v43 = vadd.f32 %v5644_v13, %v7318_v14  ;;  %v7412_v24 = vadd.f32 %v5753_v5, %v2101_v42 }
 0x25f   : > { %v6271_v11 = vpop.f32.mrb[128].mxu0  ;;  %v7414_v55 = vadd.f32 %v5756_v34, %v2104_v43 }
 0x260   : > { %v7417_v4 = vadd.f32 %v6271_v11, %v7328_v59  ;;  %v2302_v35 = vpop.f32.mrb[129].mxu0 }
 0x261   : > { %v7420_v9 = vadd.f32 %v2302_v35, %v7322_v8  ;;  %v6272_v18 = vpop.f32.mrb[130].mxu0 }
 0x262   : > { %v7423_v51 = vadd.f32 %v6272_v18, %v7330_v47  ;;  %v2305_v2 = vpop.f32.mrb[131].mxu0 }
 0x263   : > { %v7426_v46 = vadd.f32 %v2305_v2, %v7324_v37 }
 0x265   : > { %v2429_v14 = vadd.f32 %v7426_v46, %v7420_v9 }
 0x267   : > { %v2430_v19 = vadd.f32 %v2429_v14, %v7417_v4  ;;  %v6275_v49 = vpop.f32.mrb[132].mxu0 }
 0x268   : > { %v7432_v59 = vadd.f32 %v6275_v49, %v7340_v53  ;;  %v2318_v31 = vpop.f32.mrb[133].mxu0 }
 0x269   : > { %v7435_v8 = vadd.f32 %v2318_v31, %v7334_v3  ;;  %v2431_v47 = vadd.f32 %v2430_v19, %v7423_v51  ;;  %v6276_v52 = vpop.f32.mrb[134].mxu0 }
 0x26a   : > { %v7439_v36 = vadd.f32 %v6276_v52, %v7342_v26  ;;  %v2321_v37 = vpop.f32.mrb[135].mxu0 }
 0x26b   : > { %v2432_v60 = vadd.f32 %v2431_v47, %v7435_v8  ;;  %v7443_v40 = vadd.f32 %v2321_v37, %v7336_v33 }
 0x26d   : > { %v2433_v29 = vadd.f32 %v2432_v60, %v7443_v40 }
 0x26f   : > { %v2434_v53 = vadd.f32 %v2433_v29, %v7432_v59  ;;  %v6279_v44 = vpop.f32.mrb[136].mxu0 }
 0x270   : > { %v7448_v3 = vadd.f32 %v6279_v44, %v7352_v50  ;;  %v2334_v25 = vpop.f32.mrb[137].mxu0 }
 0x271   : > { %v7451_v30 = vadd.f32 %v2334_v25, %v7346_v28  ;;  %v2435_v26 = vadd.f32 %v2434_v53, %v7439_v36  ;;  %v6280_v16 = vpop.f32.mrb[138].mxu0 }
 0x272   : > { %v7455_v32 = vadd.f32 %v6280_v16, %v7354_v62  ;;  %v2337_v33 = vpop.f32.mrb[139].mxu0 }
 0x273   : > { %v2436_v27 = vadd.f32 %v2435_v26, %v7451_v30  ;;  %v7459_v0 = vadd.f32 %v2337_v33, %v7348_v58 }
 0x275   : > { %v2437_v20 = vadd.f32 %v2436_v27, %v7459_v0 }
 0x277   : > { %v2438_v50 = vadd.f32 %v2437_v20, %v7448_v3  ;;  %v6283_v5 = vpop.f32.mrb[140].mxu0 }
 0x278   : > { %v7464_v28 = vadd.f32 %v6283_v5, %v7364_v48  ;;  %v2350_v23 = vpop.f32.mrb[141].mxu0 }
 0x279   : > { %v7467_v42 = vadd.f32 %v2350_v23, %v7358_v6  ;;  %v2439_v62 = vadd.f32 %v2438_v50, %v7455_v32  ;;  %v6284_v13 = vpop.f32.mrb[142].mxu0 }
 0x27a   : > { %v7471_v41 = vadd.f32 %v6284_v13, %v7366_v12  ;;  %v2353_v58 = vpop.f32.mrb[143].mxu0  ;;  %v6495_v13 = vld [vmem:[#allocation9 + $0x40] sm:$0xff]  }
 0x27b   : > { %v2440_v34 = vadd.f32 %v2439_v62, %v7467_v42  ;;  %v7475_v43 = vadd.f32 %v2353_v58, %v7360_v21  ;;  %v6507_v62 = vld [vmem:[#allocation9 + $0xc0] sm:$0xff]   ;;  %5781 = vmatprep.subr.bf16.mxu1 %v6495_v13 }
 0x27c   : > { %5893 = vmatprep.subr.bf16.mxu0 %v6507_v62  ;;  %v6504_v62 = vld [vmem:[#allocation9 + $0x20] sm:$0xff]  }
 0x27d   : > { %v2441_v11 = vadd.f32 %v2440_v34, %v7475_v43  ;;  %v6496_v34 = vld [vmem:[#allocation9] sm:$0xff]  }
 0x27e   : > { %5782 = vmatpush3.bf16.msra.mxu1 %v6496_v34  ;;  %v6522_v34 = vld [vmem:[#allocation9 + $0xa8] sm:$0xff]  }
 0x27f   : > { %v2442_v48 = vadd.f32 %v2441_v11, %v7464_v28  ;;  %v6287_v35 = vpop.f32.mrb[144].mxu0 }
 0x280   : > { %v7480_v6 = vadd.f32 %v6287_v35, %v7376_v39  ;;  %v2366_v18 = vpop.f32.mrb[145].mxu0 }
 0x281   : > { %v7483_v2 = vadd.f32 %v2366_v18, %v7370_v17  ;;  %v2443_v12 = vadd.f32 %v2442_v48, %v7471_v41  ;;  %v6288_v14 = vpop.f32.mrb[146].mxu0  ;;  %v6512_v18 = vld [vmem:[#allocation9 + $0x88] sm:$0xff]  }
 0x282   : > { %v7487_v19 = vadd.f32 %v6288_v14, %v7378_v1  ;;  %v2369_v21 = vpop.f32.mrb[147].mxu0 }
 0x283   : > { %v2444_v49 = vadd.f32 %v2443_v12, %v7483_v2  ;;  %v7491_v31 = vadd.f32 %v2369_v21, %v7372_v10 }
 0x285   : > { %v2445_v47 = vadd.f32 %v2444_v49, %v7491_v31  ;;  %v6498_v49 = vld [vmem:[#allocation9 + $0x8] sm:$0xff]  }
 0x287   : > { %v2446_v39 = vadd.f32 %v2445_v47, %v7480_v6  ;;  %v6291_v52 = vpop.f32.mrb[148].mxu0 }
 0x288   : > { %v7496_v17 = vadd.f32 %v6291_v52, %v7388_v45  ;;  %v2382_v37 = vpop.f32.mrb[149].mxu0 }
 0x289   : > { %v7499_v60 = vadd.f32 %v2382_v37, %v7382_v57  ;;  %v2447_v1 = vadd.f32 %v2446_v39, %v7487_v19  ;;  %v6292_v29 = vpop.f32.mrb[150].mxu0  ;;  %v6513_v37 = vld [vmem:[#allocation9 + $0xd0] sm:$0xff]  }
 0x28a   : > { %v7503_v53 = vadd.f32 %v6292_v29, %v7390_v15  ;;  %v2385_v10 = vpop.f32.mrb[151].mxu0 }
 0x28b   : > { %v2448_v44 = vadd.f32 %v2447_v1, %v7499_v60  ;;  %v7507_v25 = vadd.f32 %v2385_v10, %v7384_v61  ;;  %v6514_v1 = vld [vmem:[#allocation9 + $0x90] sm:$0xff]  }
 0x28c   : > { %v6500_v10 = vld [vmem:[#allocation9 + $0x10] sm:$0xff]  }
 0x28d   : > { %v2449_v26 = vadd.f32 %v2448_v44, %v7507_v25  ;;  %v6515_v44 = vld [vmem:[#allocation9 + $0xd8] sm:$0xff]  }
 0x28f   : > { %v2450_v45 = vadd.f32 %v2449_v26, %v7496_v17  ;;  %v6295_v16 = vpop.f32.mrb[152].mxu0  ;;  %v6501_v26 = vld [vmem:[#allocation9 + $0x58] sm:$0xff]  }
 0x290   : > { %v7512_v57 = vadd.f32 %v6295_v16, %v7400_v54  ;;  %v2398_v33 = vpop.f32.mrb[153].mxu0  ;;  %v6509_v54 = vld [vmem:[#allocation9 + $0x80] sm:$0xff]  }
 0x291   : > { %v7515_v27 = vadd.f32 %v2398_v33, %v7394_v7  ;;  %v2451_v15 = vadd.f32 %v2450_v45, %v7503_v53  ;;  %v6296_v20 = vpop.f32.mrb[154].mxu0  ;;  %5894 = vmatpush3.bf16.msra.mxu0 %v6509_v54  ;;  %v6516_v45 = vld [vmem:[#allocation9 + $0x98] sm:$0xff]   ;;  %v6521_v54 = vld [vmem:[#allocation9 + $0xe8] sm:$0xff]  }
 0x292   : > { %v7519_v50 = vadd.f32 %v6296_v20, %v7402_v38  ;;  %v2401_v61 = vpop.f32.mrb[155].mxu0  ;;  %v6511_v38 = vld [vmem:[#allocation9 + $0xc8] sm:$0xff]   ;;  %v6503_v20 = vld [vmem:[#allocation9 + $0x60] sm:$0xff]  }
 0x293   : > { %v2452_v5 = vadd.f32 %v2451_v15, %v7515_v27  ;;  %v7523_v23 = vadd.f32 %v2401_v61, %v7396_v22  ;;  %v6497_v22 = vld [vmem:[#allocation9 + $0x48] sm:$0xff]   ;;  %5895 = vmatprep.subr.bf16.mxu0 %v6511_v38  ;;  %v6517_v15 = vld [vmem:[#allocation9 + $0xe0] sm:$0xff]  }
 0x294   : > { %5783 = vmatprep.subr.bf16.mxu1 %v6497_v22  ;;  %v6519_v61 = vld [vmem:[#allocation9 + $0xa0] sm:$0xff]   ;;  %v6510_v22 = vld [vmem:[#allocation9 + $0x30] sm:$0xff]  }
 0x295   : > { %v2453_v58 = vadd.f32 %v2452_v5, %v7523_v23  ;;  %5896 = vmatpush3.bf16.msra.mxu0 %v6512_v18  ;;  %5784 = vmatpush3.bf16.msra.mxu1 %v6498_v49  ;;  %v6518_v18 = vld [vmem:[#allocation9 + $0x78] sm:$0xff]  }
 0x296   : > { %5897 = vmatprep.subr.bf16.mxu0 %v6513_v37  ;;  %v2861_v37 = vld [vmem:[#allocation2 + $0x9] sm:$0xff] }
 0x297   : > { %v2454_v7 = vadd.f32 %v2453_v58, %v7512_v57  ;;  %v6299_v11 = vpop.f32.mrb[156].mxu0  ;;  %v6505_v58 = vld [vmem:[#allocation9 + $0x68] sm:$0xff]  }
 0x298   : > { %v7528_v48 = vadd.f32 %v6299_v11, %v7412_v24  ;;  %v2414_v35 = vpop.f32.mrb[157].mxu0  ;;  %v6506_v11 = vld [vmem:[#allocation9 + $0x28] sm:$0xff]  }
 0x299   : > { %v7531_v12 = vadd.f32 %v2414_v35, %v7406_v63  ;;  %v2455_v14 = vadd.f32 %v2454_v7, %v7519_v50  ;;  %v6300_v21 = vpop.f32.mrb[158].mxu0  ;;  %v6499_v63 = vld [vmem:[#allocation9 + $0x50] sm:$0xff]   ;;  %5898 = vmatpush3.bf16.msra.mxu0 %v6514_v1  ;;  %v6520_v1 = vld [vmem:[#allocation9 + $0x38] sm:$0xff]  }
 0x29a   : > { %v7535_v47 = vadd.f32 %v6300_v21, %v7414_v55  ;;  %v2417_v39 = vpop.f32.mrb[159].mxu0  ;;  %5785 = vmatprep.subr.bf16.mxu1 %v6499_v63  ;;  %5899 = vmatprep.subr.bf16.mxu0 %v6515_v44  ;;  %v6508_v35 = vld [vmem:[#allocation9 + $0x70] sm:$0xff]  }
 0x29b   : > { %v2456_v24 = vadd.f32 %v2455_v14, %v7531_v12  ;;  %v7539_v52 = vadd.f32 %v2417_v39, %v7408_v56  ;;  %5786 = vmatpush3.bf16.msra.mxu1 %v6500_v10  ;;  %v6502_v56 = vld [vmem:[#allocation9 + $0x18] sm:$0xff]   ;;  %v6523_v14 = vld [vmem:[#allocation9 + $0xf0] sm:$0xff]  }
 0x29c   : > { %5787 = vmatprep.subr.bf16.mxu1 %v6501_v26  ;;  %v6524_v21 = vld [vmem:[#allocation9 + $0xb0] sm:$0xff]   ;;  %v6525_v39 = vld [vmem:[#allocation9 + $0xf8] sm:$0xff]  }
 0x29d   : > { %v2457_v29 = vadd.f32 %v2456_v24, %v7539_v52  ;;  %5900 = vmatpush3.bf16.msra.mxu0 %v6516_v45  ;;  %v2860_v24 = vld [vmem:[#allocation2 + $0x1] sm:$0xff] }
 0x29e   : > { %5901 = vmatprep.subr.bf16.mxu0 %v6517_v15  ;;  %v6526_v10 = vld [vmem:[#allocation9 + $0xb8] sm:$0xff]  }
 0x29f   : > { %v2458_v55 = vadd.f32 %v2457_v29, %v7528_v48  ;;  %5788 = vmatpush3.bf16.msra.mxu1 %v6502_v56  ;;  %v2892_v29 = vpack.c.bf16 %v2861_v37, %v2860_v24 }
 0x2a0   : > { %5789 = vmatprep.subr.bf16.mxu1 %v6503_v20 }
 0x2a1   : > { %v2459_v16 = vadd.f32 %v2458_v55, %v7535_v47  ;;  %5902 = vmatpush3.bf16.msra.mxu0 %v6519_v61  ;;  %4157 = vmatprep.mubr.bf16.mxu0 %v2892_v29  ;;  %v6527_v55 = vld [vmem:[#allocation9 + $0x140] sm:$0xff]  }
 0x2a2   : > { %5903 = vmatprep.subr.bf16.mxu0 %v6521_v54 }
 0x2a3   : > { %v2460_v33 = vrot.slane %v2459_v16, 4  ;;  %5790 = vmatpush3.bf16.msra.mxu1 %v6504_v62 }
 0x2a4   : > { %5791 = vmatprep.subr.bf16.mxu1 %v6505_v58 }
 0x2a5   : > { %v2461_v5 = vadd.f32 %v2460_v33, %v2459_v16  ;;  %5904 = vmatpush3.bf16.msra.mxu0 %v6522_v34 }
 0x2a6   : > { %5905 = vmatprep.subr.bf16.mxu0 %v6523_v14 }
 0x2a7   : > { %v2462_v13 = vrot.slane %v2461_v5, 2  ;;  %5792 = vmatpush3.bf16.msra.mxu1 %v6506_v11 }
 0x2a8   : > { %5793 = vmatprep.subr.bf16.mxu1 %v6508_v35 }
 0x2a9   : > { %v2463_v7 = vadd.f32 %v2462_v13, %v2461_v5  ;;  %5906 = vmatpush3.bf16.msra.mxu0 %v6524_v21 }
 0x2aa   : > { %5907 = vmatprep.subr.bf16.mxu0 %v6525_v39 }
 0x2ab   : > { %v2464_v38 = vrot.slane %v2463_v7, 1  ;;  %5794 = vmatpush3.bf16.msra.mxu1 %v6510_v22 }
 0x2ac   : > { %5795 = vmatprep.subr.bf16.mxu1 %v6518_v18 }
 0x2ad   : > { %v2465_v49 = vadd.f32 %v2464_v38, %v2463_v7  ;;  %5908 = vmatpush3.bf16.msra.mxu0 %v6526_v10 }
 0x2af   : > { %v2467_v63 = vmul.f32 0.00390625, %v2465_v49  ;;  %5796 = vmatpush3.bf16.msra.mxu1 %v6520_v1 }
 0x2b0   : > { %6005 = vmatprep.subr.bf16.mxu1 %v6527_v55 }
 0x2b1   : > { %v7545_v44 = vsub.f32 %v7451_v30, %v2467_v63  ;;  %v7548_v26 = vsub.f32 %v7459_v0, %v2467_v63  ;;  %v7551_v45 = vsub.f32 %v7448_v3, %v2467_v63  ;;  %v7554_v16 = vsub.f32 %v7455_v32, %v2467_v63 }
 0x2b2   : > { %v7557_v56 = vsub.f32 %v7467_v42, %v2467_v63  ;;  %v7560_v33 = vsub.f32 %v7475_v43, %v2467_v63  ;;  %v7563_v15 = vsub.f32 %v7464_v28, %v2467_v63  ;;  %v7566_v30 = vsub.f32 %v7471_v41, %v2467_v63 }
 0x2b3   : > { %v7569_v3 = vsub.f32 %v7483_v2, %v2467_v63  ;;  %v7572_v32 = vsub.f32 %v7491_v31, %v2467_v63  ;;  %v7575_v0 = vsub.f32 %v7480_v6, %v2467_v63  ;;  %v7578_v42 = vsub.f32 %v7487_v19, %v2467_v63 }
 0x2b4   : > { %v7581_v28 = vsub.f32 %v7499_v60, %v2467_v63  ;;  %v7584_v41 = vsub.f32 %v7507_v25, %v2467_v63  ;;  %v7587_v43 = vsub.f32 %v7496_v17, %v2467_v63  ;;  %v7590_v2 = vsub.f32 %v7503_v53, %v2467_v63 }
 0x2b5   : > { %v7593_v31 = vsub.f32 %v7515_v27, %v2467_v63  ;;  %v7596_v6 = vsub.f32 %v7523_v23, %v2467_v63  ;;  %v7599_v19 = vsub.f32 %v7512_v57, %v2467_v63  ;;  %v7602_v60 = vsub.f32 %v7519_v50, %v2467_v63 }
 0x2b6   : > { %v7605_v25 = vsub.f32 %v7531_v12, %v2467_v63  ;;  %v7608_v17 = vsub.f32 %v7539_v52, %v2467_v63  ;;  %v7611_v53 = vsub.f32 %v7528_v48, %v2467_v63  ;;  %v7614_v27 = vsub.f32 %v7535_v47, %v2467_v63 }
 0x2b7   : > { %v7617_v23 = vsub.f32 %v7420_v9, %v2467_v63  ;;  %v7620_v57 = vsub.f32 %v7426_v46, %v2467_v63  ;;  %v7623_v50 = vsub.f32 %v7417_v4, %v2467_v63  ;;  %v7630_v48 = vsub.f32 %v7423_v51, %v2467_v63 }
 0x2b8   : > { %v7633_v47 = vsub.f32 %v7435_v8, %v2467_v63  ;;  %v7638_v20 = vsub.f32 %v7443_v40, %v2467_v63  ;;  %v7643_v5 = vsub.f32 %v7432_v59, %v2467_v63  ;;  %v7648_v8 = vsub.f32 %v7439_v36, %v2467_v63 }
 0x2b9   : > { %v2500_v12 = vmul.f32 %v7617_v23, %v7617_v23  ;;  %v2501_v52 = vmul.f32 %v7620_v57, %v7620_v57  ;;  %v2502_v9 = vmul.f32 %v7623_v50, %v7623_v50  ;;  %v2503_v4 = vmul.f32 %v7630_v48, %v7630_v48 }
 0x2ba   : > { %v2504_v51 = vmul.f32 %v7633_v47, %v7633_v47  ;;  %v2505_v13 = vmul.f32 %v7638_v20, %v7638_v20  ;;  %v2506_v40 = vmul.f32 %v7643_v5, %v7643_v5  ;;  %v2507_v34 = vmul.f32 %v7648_v8, %v7648_v8 }
 0x2bb   : > { %v2532_v46 = vadd.f32 %v2501_v52, %v2500_v12  ;;  %v2508_v7 = vmul.f32 %v7545_v44, %v7545_v44  ;;  %v2509_v36 = vmul.f32 %v7548_v26, %v7548_v26  ;;  %v2510_v35 = vmul.f32 %v7551_v45, %v7551_v45 }
 0x2bc   : > { %v2511_v18 = vmul.f32 %v7554_v16, %v7554_v16  ;;  %v2512_v21 = vmul.f32 %v7557_v56, %v7557_v56  ;;  %v2513_v39 = vmul.f32 %v7560_v33, %v7560_v33  ;;  %v2514_v37 = vmul.f32 %v7563_v15, %v7563_v15 }
 0x2bd   : > { %v2533_v61 = vadd.f32 %v2532_v46, %v2502_v9  ;;  %v2515_v1 = vmul.f32 %v7566_v30, %v7566_v30  ;;  %v2516_v10 = vmul.f32 %v7569_v3, %v7569_v3  ;;  %v2517_v12 = vmul.f32 %v7572_v32, %v7572_v32 }
 0x2be   : > { %v2518_v9 = vmul.f32 %v7575_v0, %v7575_v0 }
 0x2bf   : > { %v2534_v62 = vadd.f32 %v2533_v61, %v2503_v4  ;;  %v2519_v4 = vmul.f32 %v7578_v42, %v7578_v42 }
 0x2c1   : > { %v2535_v54 = vadd.f32 %v2534_v62, %v2504_v51  ;;  %v2520_v51 = vmul.f32 %v7581_v28, %v7581_v28 }
 0x2c3   : > { %v2536_v58 = vadd.f32 %v2535_v54, %v2505_v13  ;;  %v2521_v13 = vmul.f32 %v7584_v41, %v7584_v41 }
 0x2c5   : > { %v2537_v59 = vadd.f32 %v2536_v58, %v2506_v40  ;;  %v2522_v40 = vmul.f32 %v7587_v43, %v7587_v43 }
 0x2c7   : > { %v2538_v11 = vadd.f32 %v2537_v59, %v2507_v34  ;;  %v2523_v34 = vmul.f32 %v7590_v2, %v7590_v2 }
 0x2c9   : > { %v2539_v38 = vadd.f32 %v2538_v11, %v2508_v7  ;;  %v2524_v7 = vmul.f32 %v7593_v31, %v7593_v31 }
 0x2cb   : > { %v2540_v22 = vadd.f32 %v2539_v38, %v2509_v36  ;;  %v2525_v36 = vmul.f32 %v7596_v6, %v7596_v6 }
 0x2cd   : > { %v2541_v14 = vadd.f32 %v2540_v22, %v2510_v35  ;;  %v6536_v35 = vld [vmem:[#allocation9 + $0x1c0] sm:$0xff]   ;;  %v2526_v22 = vmul.f32 %v7599_v19, %v7599_v19 }
 0x2ce   : > { %6117 = vmatprep.subr.bf16.mxu0 %v6536_v35 }
 0x2cf   : > { %v2542_v49 = vadd.f32 %v2541_v14, %v2511_v18  ;;  %v2527_v14 = vmul.f32 %v7602_v60, %v7602_v60 }
 0x2d1   : > { %v2543_v24 = vadd.f32 %v2542_v49, %v2512_v21  ;;  %v2528_v49 = vmul.f32 %v7605_v25, %v7605_v25 }
 0x2d3   : > { %v2544_v63 = vadd.f32 %v2543_v24, %v2513_v39  ;;  %v2529_v24 = vmul.f32 %v7608_v17, %v7608_v17 }
 0x2d5   : > { %v2545_v29 = vadd.f32 %v2544_v63, %v2514_v37  ;;  %v2530_v63 = vmul.f32 %v7611_v53, %v7611_v53 }
 0x2d7   : > { %v2546_v55 = vadd.f32 %v2545_v29, %v2515_v1  ;;  %v2531_v29 = vmul.f32 %v7614_v27, %v7614_v27 }
 0x2d9   : > { %v2547_v52 = vadd.f32 %v2546_v55, %v2516_v10 }
 0x2db   : > { %v2548_v46 = vadd.f32 %v2547_v52, %v2517_v12 }
 0x2dd   : > { %v2549_v61 = vadd.f32 %v2548_v46, %v2518_v9 }
 0x2df   : > { %v2550_v62 = vadd.f32 %v2549_v61, %v2519_v4 }
 0x2e1   : > { %v2551_v54 = vadd.f32 %v2550_v62, %v2520_v51 }
 0x2e3   : > { %v2552_v58 = vadd.f32 %v2551_v54, %v2521_v13 }
 0x2e5   : > { %v2553_v59 = vadd.f32 %v2552_v58, %v2522_v40 }
 0x2e7   : > { %v2554_v11 = vadd.f32 %v2553_v59, %v2523_v34 }
 0x2e9   : > { %v2555_v38 = vadd.f32 %v2554_v11, %v2524_v7 }
 0x2eb   : > { %v2556_v18 = vadd.f32 %v2555_v38, %v2525_v36 }
 0x2ed   : > { %v2557_v21 = vadd.f32 %v2556_v18, %v2526_v22 }
 0x2ef   : > { %v2558_v39 = vadd.f32 %v2557_v21, %v2527_v14 }
 0x2f1   : > { %v2559_v37 = vadd.f32 %v2558_v39, %v2528_v49 }
 0x2f3   : > { %v2560_v1 = vadd.f32 %v2559_v37, %v2529_v24 }
 0x2f5   : > { %v2561_v10 = vadd.f32 %v2560_v1, %v2530_v63 }
 0x2f7   : > { %v2562_v55 = vadd.f32 %v2561_v10, %v2531_v29 }
 0x2f9   : > { %v2563_v12 = vrot.slane %v2562_v55, 4 }
 0x2fb   : > { %v2564_v52 = vadd.f32 %v2563_v12, %v2562_v55 }
 0x2fd   : > { %v2565_v9 = vrot.slane %v2564_v52, 2 }
 0x2ff   : > { %v2566_v46 = vadd.f32 %v2565_v9, %v2564_v52 }
 0x301   : > { %v2567_v4 = vrot.slane %v2566_v46, 1 }
 0x303   : > { %v2568_v61 = vadd.f32 %v2567_v4, %v2566_v46 }
 0x305   : > { %v2569_v51 = vmul.f32 0.00390625, %v2568_v61  ;;  %v2668_v61 = vld [vmem:[#allocation2] sm:$0xff] }
 0x307   : > { %v2570_v62 = vadd.f32 1e-05, %v2569_v51 }
 0x309   : > { %6567 = vrsqrt.f32 %v2570_v62 }
 0x313   : > { %v6568_v13 = vpop.eup %6567 }
 0x314   : > { %v2601_v54 = vmul.f32 %v6568_v13, %v7608_v17  ;;  %v7706_v40 = vmul.f32 %v6568_v13, %v7617_v23  ;;  %v7709_v58 = vmul.f32 %v6568_v13, %v7620_v57  ;;  %v7712_v34 = vmul.f32 %v6568_v13, %v7623_v50 }
 0x315   : > { %v7715_v59 = vmul.f32 %v6568_v13, %v7630_v48  ;;  %v7718_v7 = vmul.f32 %v6568_v13, %v7633_v47  ;;  %v7721_v11 = vmul.f32 %v6568_v13, %v7638_v20  ;;  %v7724_v17 = vmul.f32 %v6568_v13, %v7643_v5 }
 0x316   : > { %v2633_v23 = vmax.f32 %v2601_v54, 0.0  ;;  %v7727_v36 = vmul.f32 %v6568_v13, %v7648_v8  ;;  %v7730_v57 = vmul.f32 %v6568_v13, %v7545_v44  ;;  %v7733_v50 = vmul.f32 %v6568_v13, %v7548_v26 }
 0x317   : > { %v7736_v48 = vmul.f32 %v6568_v13, %v7551_v45  ;;  %v7739_v47 = vmul.f32 %v6568_v13, %v7554_v16  ;;  %v7742_v20 = vmul.f32 %v6568_v13, %v7557_v56  ;;  %v7745_v5 = vmul.f32 %v6568_v13, %v7560_v33 }
 0x318   : > { %v7748_v8 = vmul.f32 %v6568_v13, %v7563_v15  ;;  %v7751_v44 = vmul.f32 %v6568_v13, %v7566_v30  ;;  %v7754_v26 = vmul.f32 %v6568_v13, %v7569_v3  ;;  %v7757_v45 = vmul.f32 %v6568_v13, %v7572_v32  ;;  %2665 = vst [vmem:[#allocation2 + $0x171] sm:$0xff] %v2633_v23 }
 0x319   : > { %v7760_v16 = vmul.f32 %v6568_v13, %v7575_v0  ;;  %v7763_v56 = vmul.f32 %v6568_v13, %v7578_v42  ;;  %v7766_v33 = vmul.f32 %v6568_v13, %v7581_v28  ;;  %v7769_v15 = vmul.f32 %v6568_v13, %v7584_v41 }
 0x31a   : > { %v7772_v30 = vmul.f32 %v6568_v13, %v7587_v43  ;;  %v7775_v3 = vmul.f32 %v6568_v13, %v7590_v2  ;;  %v7778_v32 = vmul.f32 %v6568_v13, %v7593_v31  ;;  %v7781_v0 = vmul.f32 %v6568_v13, %v7596_v6 }
 0x31b   : > { %v7784_v42 = vmul.f32 %v6568_v13, %v7599_v19  ;;  %v7787_v28 = vmul.f32 %v6568_v13, %v7602_v60  ;;  %v7790_v41 = vmul.f32 %v6568_v13, %v7605_v25  ;;  %v7793_v43 = vmul.f32 %v6568_v13, %v7611_v53 }
 0x31c   : > { %v7796_v2 = vmul.f32 %v6568_v13, %v7614_v27  ;;  %v2604_v31 = vmax.f32 %v7706_v40, 0.0  ;;  %v2605_v6 = vmax.f32 %v7709_v58, 0.0  ;;  %v2606_v38 = vmax.f32 %v7712_v34, 0.0  ;;  %v6544_v40 = vld [vmem:[#allocation9 + $0x1d0] sm:$0xff]   ;;  %v6549_v34 = vld [vmem:[#allocation9 + $0x1e0] sm:$0xff]  }
 0x31d   : > { %v2607_v19 = vmax.f32 %v7715_v59, 0.0  ;;  %v2608_v60 = vmax.f32 %v7718_v7, 0.0  ;;  %v2609_v35 = vmax.f32 %v7721_v11, 0.0  ;;  %v2610_v25 = vmax.f32 %v7724_v17, 0.0  ;;  %v6555_v7 = vld [vmem:[#allocation9 + $0x1f0] sm:$0xff]   ;;  %v7892_v17 = vld [vmem:[#allocation9 + $0x200] sm:$0xff]  }
 0x31e   : > { %v2611_v53 = vmax.f32 %v7727_v36, 0.0  ;;  %v2612_v22 = vmax.f32 %v7730_v57, 0.0  ;;  %v2613_v27 = vmax.f32 %v7733_v50, 0.0  ;;  %v2614_v18 = vmax.f32 %v7736_v48, 0.0  ;;  %2636 = vst [vmem:[#allocation2 + $0x19] sm:$0xff] %v2604_v31  ;;  %2637 = vst [vmem:[#allocation2 + $0x21] sm:$0xff] %v2605_v6 }
 0x31f   : > { %2638 = vst [vmem:[#allocation2 + $0x31] sm:$0xff] %v2606_v38  ;;  %v2615_v14 = vmax.f32 %v7739_v47, 0.0  ;;  %v2616_v21 = vmax.f32 %v7742_v20, 0.0  ;;  %v2617_v49 = vmax.f32 %v7745_v5, 0.0  ;;  %v2618_v39 = vmax.f32 %v7748_v8, 0.0  ;;  %2639 = vst [vmem:[#allocation2 + $0x39] sm:$0xff] %v2607_v19 }
 0x320   : > { %2640 = vst [vmem:[#allocation2 + $0x49] sm:$0xff] %v2608_v60  ;;  %2641 = vst [vmem:[#allocation2 + $0x51] sm:$0xff] %v2609_v35  ;;  %v2619_v24 = vmax.f32 %v7751_v44, 0.0  ;;  %v2620_v37 = vmax.f32 %v7754_v26, 0.0  ;;  %v2621_v63 = vmax.f32 %v7757_v45, 0.0  ;;  %v2622_v1 = vmax.f32 %v7760_v16, 0.0 }
 0x321   : > { %2642 = vst [vmem:[#allocation2 + $0x61] sm:$0xff] %v2610_v25  ;;  %2643 = vst [vmem:[#allocation2 + $0x69] sm:$0xff] %v2611_v53  ;;  %v2623_v29 = vmax.f32 %v7763_v56, 0.0  ;;  %v2624_v10 = vmax.f32 %v7766_v33, 0.0  ;;  %v2625_v55 = vmax.f32 %v7769_v15, 0.0  ;;  %v2626_v12 = vmax.f32 %v7772_v30, 0.0 }
 0x322   : > { %2644 = vst [vmem:[#allocation2 + $0x79] sm:$0xff] %v2612_v22  ;;  %2645 = vst [vmem:[#allocation2 + $0x81] sm:$0xff] %v2613_v27  ;;  %v2627_v52 = vmax.f32 %v7775_v3, 0.0  ;;  %v2628_v9 = vmax.f32 %v7778_v32, 0.0  ;;  %v2629_v46 = vmax.f32 %v7781_v0, 0.0  ;;  %v2630_v4 = vmax.f32 %v7784_v42, 0.0 }
 0x323   : > { %2646 = vst [vmem:[#allocation2 + $0x91] sm:$0xff] %v2614_v18  ;;  %2647 = vst [vmem:[#allocation2 + $0x99] sm:$0xff] %v2615_v14  ;;  %v2631_v51 = vmax.f32 %v7787_v28, 0.0  ;;  %v2632_v62 = vmax.f32 %v7790_v41, 0.0  ;;  %v2634_v13 = vmax.f32 %v7793_v43, 0.0  ;;  %v2635_v54 = vmax.f32 %v7796_v2, 0.0 }
 0x324   : > { %2648 = vst [vmem:[#allocation2 + $0xa9] sm:$0xff] %v2616_v21  ;;  %2649 = vst [vmem:[#allocation2 + $0xb1] sm:$0xff] %v2617_v49  ;;  %v7859_v26 = vld [vmem:[#allocation2 + $0x8] sm:$0xff]  ;;  %v7862_v16 = vpack.c.bf16 %v2619_v24, %v2618_v39  ;;  %v7864_v15 = vpack.c.bf16 %v2621_v63, %v2620_v37  ;;  %v7866_v30 = vpack.c.bf16 %v2623_v29, %v2622_v1  ;;  %v6528_v0 = vld [vmem:[#allocation9 + $0x100] sm:$0xff]  }
 0x325   : > { %2650 = vst [vmem:[#allocation2 + $0xc1] sm:$0xff] %v2618_v39  ;;  %2651 = vst [vmem:[#allocation2 + $0xc9] sm:$0xff] %v2619_v24  ;;  %v2732_v23 = vld [vmem:[#allocation2 + $0x18] sm:$0xff]  ;;  %v2733_v8 = vld [vmem:[#allocation2 + $0x20] sm:$0xff]  ;;  %v2700_v45 = vpack.c.bf16 %v7859_v26, %v2668_v61  ;;  %v7868_v3 = vpack.c.bf16 %v2625_v55, %v2624_v10  ;;  %v7870_v28 = vpack.c.bf16 %v2627_v52, %v2626_v12 }
 0x326   : > { %2652 = vst [vmem:[#allocation2 + $0xd9] sm:$0xff] %v2620_v37  ;;  %2653 = vst [vmem:[#allocation2 + $0xe1] sm:$0xff] %v2621_v63  ;;  %v2796_v44 = vld [vmem:[#allocation2 + $0x30] sm:$0xff]  ;;  %v2764_v56 = vpack.c.bf16 %v2733_v8, %v2732_v23  ;;  %v2797_v33 = vld [vmem:[#allocation2 + $0x38] sm:$0xff]  ;;  %v7872_v43 = vpack.c.bf16 %v2629_v46, %v2628_v9  ;;  %v2893_v2 = vpack.c.bf16 %v2605_v6, %v2604_v31 }
 0x327   : > { %2654 = vst [vmem:[#allocation2 + $0xf1] sm:$0xff] %v2622_v1  ;;  %2655 = vst [vmem:[#allocation2 + $0xf9] sm:$0xff] %v2623_v29  ;;  %v2828_v32 = vpack.c.bf16 %v2797_v33, %v2796_v44  ;;  %v6538_v42 = vld [vmem:[#allocation9 + $0x180] sm:$0xff]   ;;  %v6529_v39 = vld [vmem:[#allocation9 + $0x148] sm:$0xff]   ;;  %v7878_v37 = vpack.c.bf16 %v2631_v51, %v2630_v4 }
 0x328   : > { %2656 = vst [vmem:[#allocation2 + $0x109] sm:$0xff] %v2624_v10  ;;  %2657 = vst [vmem:[#allocation2 + $0x111] sm:$0xff] %v2625_v55  ;;  %3996 = vmatprep.mubr.bf16.mxu1 %v2764_v56  ;;  %v6540_v24 = vld [vmem:[#allocation9 + $0x1c8] sm:$0xff]   ;;  %v6531_v1 = vld [vmem:[#allocation9 + $0x150] sm:$0xff]  }
 0x329   : > { %2658 = vst [vmem:[#allocation2 + $0x121] sm:$0xff] %v2626_v12  ;;  %2659 = vst [vmem:[#allocation2 + $0x129] sm:$0xff] %v2627_v52  ;;  %4158 = vmatmul.mubr.bf16.vlgmr.msra.gmra.mrb[160].mxu0 %v2828_v32  ;;  %3997 = vmatmul.mubr.bf16.vlgmr.msra.gmra.mrb[128].mxu1 %v2700_v45  ;;  %v6530_v63 = vld [vmem:[#allocation9 + $0x108] sm:$0xff]   ;;  %v2798_v10 = vld [vmem:[#allocation2 + $0x48] sm:$0xff]  ;;  %v2894_v12 = vpack.c.bf16 %v2607_v19, %v2606_v38 }
 0x32a   : > { %2660 = vst [vmem:[#allocation2 + $0x139] sm:$0xff] %v2628_v9  ;;  %2661 = vst [vmem:[#allocation2 + $0x141] sm:$0xff] %v2629_v46  ;;  %4165 = vmatprep.mubr.bf16.mxu0 %v2893_v2  ;;  %4004 = vmatprep.mubr.bf16.mxu1 %v2828_v32  ;;  %v6542_v29 = vld [vmem:[#allocation9 + $0x188] sm:$0xff]   ;;  %v2799_v55 = vld [vmem:[#allocation2 + $0x50] sm:$0xff] }
 0x32b   : > { %2662 = vst [vmem:[#allocation2 + $0x151] sm:$0xff] %v2630_v4  ;;  %2663 = vst [vmem:[#allocation2 + $0x159] sm:$0xff] %v2631_v51  ;;  %6006 = vmatpush3.bf16.msra.mxu1 %v6528_v0  ;;  %6118 = vmatpush3.bf16.msra.mxu0 %v6538_v42  ;;  %v2829_v58 = vpack.c.bf16 %v2799_v55, %v2798_v10  ;;  %v6532_v31 = vld [vmem:[#allocation9 + $0x110] sm:$0xff]   ;;  %v6533_v52 = vld [vmem:[#allocation9 + $0x158] sm:$0xff]   ;;  %v2898_v55 = vpack.c.bf16 %v2615_v14, %v2614_v18 }
 0x32c   : > { %2664 = vst [vmem:[#allocation2 + $0x169] sm:$0xff] %v2632_v62  ;;  %2666 = vst [vmem:[#allocation2 + $0x181] sm:$0xff] %v2634_v13  ;;  %6007 = vmatprep.subr.bf16.mxu1 %v6529_v39  ;;  %6119 = vmatprep.subr.bf16.mxu0 %v6540_v24  ;;  %v6546_v6 = vld [vmem:[#allocation9 + $0x190] sm:$0xff]   ;;  %v6547_v9 = vld [vmem:[#allocation9 + $0x1d8] sm:$0xff]  }
 0x32d   : > { %2667 = vst [vmem:[#allocation2 + $0x189] sm:$0xff] %v2635_v54  ;;  %v6534_v46 = vld [vmem:[#allocation9 + $0x118] sm:$0xff]   ;;  %v6535_v4 = vld [vmem:[#allocation9 + $0x160] sm:$0xff]   ;;  %v2800_v51 = vld [vmem:[#allocation2 + $0x60] sm:$0xff]  ;;  %v2895_v54 = vpack.c.bf16 %v2609_v35, %v2608_v60 }
 0x32e   : > { %v6548_v61 = vld [vmem:[#allocation9 + $0x198] sm:$0xff]   ;;  %v6537_v38 = vld [vmem:[#allocation9 + $0x120] sm:$0xff]   ;;  %v6539_v23 = vld [vmem:[#allocation9 + $0x168] sm:$0xff]  }
 0x32f   : > { %6008 = vmatpush3.bf16.msra.mxu1 %v6530_v63  ;;  %6120 = vmatpush3.bf16.msra.mxu0 %v6542_v29  ;;  %v2801_v13 = vld [vmem:[#allocation2 + $0x68] sm:$0xff]  ;;  %v6551_v19 = vld [vmem:[#allocation9 + $0x1a0] sm:$0xff]   ;;  %v6553_v8 = vld [vmem:[#allocation9 + $0x1e8] sm:$0xff]  }
 0x330   : > { %6009 = vmatprep.subr.bf16.mxu1 %v6531_v1  ;;  %6121 = vmatprep.subr.bf16.mxu0 %v6544_v40  ;;  %v2830_v59 = vpack.c.bf16 %v2801_v13, %v2800_v51  ;;  %v6541_v44 = vld [vmem:[#allocation9 + $0x128] sm:$0xff]   ;;  %v6543_v45 = vld [vmem:[#allocation9 + $0x170] sm:$0xff]   ;;  %v6550_v42 = vld [vmem:[#allocation9 + $0x178] sm:$0xff]  }
 0x331   : > { %4166 = vmatmul.mubr.bf16.gmra.mrb[164].mxu0 %v2829_v58  ;;  %4005 = vmatmul.mubr.bf16.gmra.mrb[132].mxu1 %v2764_v56  ;;  %v6554_v56 = vld [vmem:[#allocation9 + $0x1a8] sm:$0xff]   ;;  %v2803_v0 = vld [vmem:[#allocation2 + $0x80] sm:$0xff]  ;;  %v6557_v2 = vld [vmem:[#allocation9 + $0x1f8] sm:$0xff]  }
 0x332   : > { %4173 = vmatprep.mubr.bf16.mxu0 %v2894_v12  ;;  %4012 = vmatprep.mubr.bf16.mxu1 %v2829_v58  ;;  %v2802_v33 = vld [vmem:[#allocation2 + $0x78] sm:$0xff]  ;;  %v6545_v60 = vld [vmem:[#allocation9 + $0x130] sm:$0xff]   ;;  %v6552_v39 = vld [vmem:[#allocation9 + $0x138] sm:$0xff]  }
 0x333   : > { %6010 = vmatpush3.bf16.msra.mxu1 %v6532_v31  ;;  %6122 = vmatpush3.bf16.msra.mxu0 %v6546_v6  ;;  %v2831_v11 = vpack.c.bf16 %v2803_v0, %v2802_v33  ;;  %v6556_v35 = vld [vmem:[#allocation9 + $0x1b0] sm:$0xff]   ;;  %v6558_v24 = vld [vmem:[#allocation9 + $0x1b8] sm:$0xff]   ;;  %v2804_v63 = vld [vmem:[#allocation2 + $0x90] sm:$0xff] }
 0x334   : > { %6011 = vmatprep.subr.bf16.mxu1 %v6533_v52  ;;  %6123 = vmatprep.subr.bf16.mxu0 %v6547_v9  ;;  %v2805_v1 = vld [vmem:[#allocation2 + $0x98] sm:$0xff]  ;;  %v2807_v29 = vld [vmem:[#allocation2 + $0xb0] sm:$0xff]  ;;  %v2808_v57 = vld [vmem:[#allocation2 + $0xc0] sm:$0xff] }
 0x335   : > { %v2832_v36 = vpack.c.bf16 %v2805_v1, %v2804_v63  ;;  %v2809_v50 = vld [vmem:[#allocation2 + $0xc8] sm:$0xff]  ;;  %v2810_v48 = vld [vmem:[#allocation2 + $0xd8] sm:$0xff]  ;;  %v2811_v40 = vld [vmem:[#allocation2 + $0xe0] sm:$0xff] }
 0x336   : > { %v2835_v47 = vpack.c.bf16 %v2811_v40, %v2810_v48  ;;  %v2812_v18 = vld [vmem:[#allocation2 + $0xf0] sm:$0xff]  ;;  %v2813_v14 = vld [vmem:[#allocation2 + $0xf8] sm:$0xff]  ;;  %v2814_v20 = vld [vmem:[#allocation2 + $0x108] sm:$0xff] }
 0x337   : > { %6012 = vmatpush3.bf16.msra.mxu1 %v6534_v46  ;;  %6124 = vmatpush3.bf16.msra.mxu0 %v6548_v61  ;;  %v2815_v5 = vld [vmem:[#allocation2 + $0x110] sm:$0xff]  ;;  %v2817_v31 = vld [vmem:[#allocation2 + $0x128] sm:$0xff]  ;;  %v2818_v6 = vld [vmem:[#allocation2 + $0x138] sm:$0xff] }
 0x338   : > { %6013 = vmatprep.subr.bf16.mxu1 %v6535_v4  ;;  %6125 = vmatprep.subr.bf16.mxu0 %v6549_v34  ;;  %v2819_v12 = vld [vmem:[#allocation2 + $0x140] sm:$0xff]  ;;  %v2820_v52 = vld [vmem:[#allocation2 + $0x150] sm:$0xff]  ;;  %v2821_v9 = vld [vmem:[#allocation2 + $0x158] sm:$0xff] }
 0x339   : > { %4174 = vmatmul.mubr.bf16.gmra.mrb[168].mxu0 %v2830_v59  ;;  %4013 = vmatmul.mubr.bf16.gmra.mrb[136].mxu1 %v2828_v32  ;;  %v2896_v32 = vpack.c.bf16 %v2611_v53, %v2610_v25  ;;  %v2897_v25 = vpack.c.bf16 %v2613_v27, %v2612_v22  ;;  %v2806_v53 = vld [vmem:[#allocation2 + $0xa8] sm:$0xff]  ;;  %v2834_v22 = vpack.c.bf16 %v2809_v50, %v2808_v57  ;;  %v2823_v4 = vld [vmem:[#allocation2 + $0x170] sm:$0xff]  ;;  %v2824_v61 = vld [vmem:[#allocation2 + $0x180] sm:$0xff] }
 0x33a   : > { %4181 = vmatprep.mubr.bf16.mxu0 %v2895_v54  ;;  %4020 = vmatprep.mubr.bf16.mxu1 %v2830_v59  ;;  %v2833_v10 = vpack.c.bf16 %v2807_v29, %v2806_v53  ;;  %v2899_v27 = vpack.c.bf16 %v2617_v49, %v2616_v21  ;;  %v2837_v21 = vpack.c.bf16 %v2815_v5, %v2814_v20  ;;  %v2816_v49 = vld [vmem:[#allocation2 + $0x120] sm:$0xff]  ;;  %v2822_v46 = vld [vmem:[#allocation2 + $0x168] sm:$0xff]  ;;  %v3126_v5 = vld [vmem:[#allocation2 + $0x92] sm:$0xff] }
 0x33b   : > { %6014 = vmatpush3.bf16.msra.mxu1 %v6537_v38  ;;  %6126 = vmatpush3.bf16.msra.mxu0 %v6551_v19  ;;  %v2825_v51 = vld [vmem:[#allocation2 + $0x188] sm:$0xff]  ;;  %v2989_v54 = vld [vmem:[#allocation2 + $0x39] sm:$0xff] }
 0x33c   : > { %6015 = vmatprep.subr.bf16.mxu1 %v6539_v23  ;;  %6127 = vmatprep.subr.bf16.mxu0 %v6553_v8  ;;  %v2842_v13 = vpack.c.bf16 %v2825_v51, %v2824_v61  ;;  %v3117_v19 = vld [vmem:[#allocation2 + $0x22] sm:$0xff]  ;;  %v3119_v0 = vld [vmem:[#allocation2 + $0x3a] sm:$0xff]  ;;  %v3123_v29 = vld [vmem:[#allocation2 + $0x6a] sm:$0xff] }
 0x33d   : > { %v3052_v41 = vld [vmem:[#allocation2 + $0x2] sm:$0xff]  ;;  %v3002_v61 = vld [vmem:[#allocation2 + $0xd9] sm:$0xff] }
 0x33e   : > { %v2993_v63 = vld [vmem:[#allocation2 + $0x69] sm:$0xff]  ;;  %v6565_v48 = vld [vmem:[#allocation9 + $0x230] sm:$0xff]  }
 0x33f   : > { %6016 = vmatpush3.bf16.msra.mxu1 %v6541_v44  ;;  %6128 = vmatpush3.bf16.msra.mxu0 %v6554_v56  ;;  %v3053_v44 = vld [vmem:[#allocation2 + $0xa] sm:$0xff]  ;;  %v3118_v56 = vld [vmem:[#allocation2 + $0x32] sm:$0xff]  ;;  %v3122_v53 = vld [vmem:[#allocation2 + $0x62] sm:$0xff] }
 0x340   : > { %6017 = vmatprep.subr.bf16.mxu1 %v6543_v45  ;;  %6129 = vmatprep.subr.bf16.mxu0 %v6555_v7  ;;  %v2925_v45 = vld [vmem:[#allocation2 + $0x21] sm:$0xff]  ;;  %v3084_v33 = vpack.c.bf16 %v3053_v44, %v3052_v41  ;;  %v2990_v7 = vld [vmem:[#allocation2 + $0x49] sm:$0xff]  ;;  %v7927_v57 = vpack.c.bf16 %v3123_v29, %v3122_v53  ;;  %v3007_v44 = vld [vmem:[#allocation2 + $0x111] sm:$0xff] }
 0x341   : > { %4182 = vmatmul.mubr.bf16.gmra.mrb[172].mxu0 %v2831_v11  ;;  %4021 = vmatmul.mubr.bf16.gmra.mrb[140].mxu1 %v2829_v58  ;;  %v2836_v58 = vpack.c.bf16 %v2813_v14, %v2812_v18  ;;  %v3125_v40 = vld [vmem:[#allocation2 + $0x82] sm:$0xff]  ;;  %v2997_v18 = vld [vmem:[#allocation2 + $0x99] sm:$0xff] }
 0x342   : > { %4189 = vmatprep.mubr.bf16.mxu0 %v2896_v32  ;;  %4028 = vmatprep.mubr.bf16.mxu1 %v2831_v11  ;;  %v6560_v32 = vld [vmem:[#allocation9 + $0x208] sm:$0xff]   ;;  %v6566_v20 = vld [vmem:[#allocation9 + $0x238] sm:$0xff]  }
 0x343   : > { %6018 = vmatpush3.bf16.msra.mxu1 %v6545_v60  ;;  %6130 = vmatpush3.bf16.msra.mxu0 %v6556_v35  ;;  %v3003_v51 = vld [vmem:[#allocation2 + $0xe1] sm:$0xff]  ;;  %v3006_v41 = vld [vmem:[#allocation2 + $0x109] sm:$0xff] }
 0x344   : > { %6019 = vmatprep.subr.bf16.mxu1 %v6550_v42  ;;  %6131 = vmatprep.subr.bf16.mxu0 %v6557_v2  ;;  %v3120_v42 = vld [vmem:[#allocation2 + $0x4a] sm:$0xff]  ;;  %v6561_v2 = vld [vmem:[#allocation9 + $0x210] sm:$0xff]  }
 0x345   : > { %v3141_v53 = vld [vmem:[#allocation2 + $0x142] sm:$0xff] }
 0x347   : > { %6020 = vmatpush3.bf16.msra.mxu1 %v6552_v39  ;;  %6132 = vmatpush3.bf16.msra.mxu0 %v6558_v24  ;;  %v3121_v39 = vld [vmem:[#allocation2 + $0x52] sm:$0xff]  ;;  %v2992_v24 = vld [vmem:[#allocation2 + $0x61] sm:$0xff] }
 0x348   : > { %6301 = vmatprep.subr.bf16.mxu1 %v7892_v17  ;;  %v7924_v1 = vpack.c.bf16 %v3121_v39, %v3120_v42  ;;  %v3010_v42 = vld [vmem:[#allocation2 + $0x139] sm:$0xff] }
 0x349   : > { %4190 = vmatmul.mubr.bf16.gmra.mrb[176].mxu0 %v2832_v36  ;;  %4029 = vmatmul.mubr.bf16.gmra.mrb[144].mxu1 %v2830_v59  ;;  %v3116_v59 = vld [vmem:[#allocation2 + $0x1a] sm:$0xff] }
 0x34a   : > { %4197 = vmatprep.mubr.bf16.mxu0 %v2897_v25  ;;  %4036 = vmatprep.mubr.bf16.mxu1 %v2832_v36  ;;  %v3148_v23 = vpack.c.bf16 %v3117_v19, %v3116_v59  ;;  %v6562_v25 = vld [vmem:[#allocation9 + $0x218] sm:$0xff]   ;;  %v3005_v19 = vld [vmem:[#allocation2 + $0xf9] sm:$0xff] }
 0x34b   : > { %v3133_v59 = vld [vmem:[#allocation2 + $0xe2] sm:$0xff] }
 0x351   : > { %4198 = vmatmul.mubr.bf16.gmra.mrb[180].mxu0 %v2833_v10  ;;  %4037 = vmatmul.mubr.bf16.gmra.mrb[148].mxu1 %v2831_v11  ;;  %v2991_v11 = vld [vmem:[#allocation2 + $0x51] sm:$0xff] }
 0x352   : > { %4205 = vmatprep.mubr.bf16.mxu0 %v2898_v55  ;;  %4044 = vmatprep.mubr.bf16.mxu1 %v2833_v10  ;;  %v3021_v35 = vpack.c.bf16 %v2991_v11, %v2990_v7  ;;  %v2995_v55 = vld [vmem:[#allocation2 + $0x81] sm:$0xff]  ;;  %v3009_v7 = vld [vmem:[#allocation2 + $0x129] sm:$0xff] }
 0x359   : > { %4206 = vmatmul.mubr.bf16.gmra.mrb[184].mxu0 %v2834_v22  ;;  %4045 = vmatmul.mubr.bf16.gmra.mrb[152].mxu1 %v2832_v36  ;;  %v3022_v36 = vpack.c.bf16 %v2993_v63, %v2992_v24 }
 0x35a   : > { %4213 = vmatprep.mubr.bf16.mxu0 %v2899_v27  ;;  %4052 = vmatprep.mubr.bf16.mxu1 %v2834_v22  ;;  %v3124_v27 = vld [vmem:[#allocation2 + $0x7a] sm:$0xff] }
 0x35b   : > { %v7931_v14 = vpack.c.bf16 %v3125_v40, %v3124_v27 }
 0x361   : > { %4214 = vmatmul.mubr.bf16.gmra.mrb[188].mxu0 %v2835_v47  ;;  %4053 = vmatmul.mubr.bf16.gmra.mrb[156].mxu1 %v2833_v10  ;;  %v2994_v10 = vld [vmem:[#allocation2 + $0x79] sm:$0xff] }
 0x362   : > { %4221 = vmatprep.mubr.bf16.mxu0 %v7862_v16  ;;  %4060 = vmatprep.mubr.bf16.mxu1 %v2835_v47  ;;  %v2838_v16 = vpack.c.bf16 %v2817_v31, %v2816_v49  ;;  %v3023_v50 = vpack.c.bf16 %v2995_v55, %v2994_v10  ;;  %v2998_v49 = vld [vmem:[#allocation2 + $0xa9] sm:$0xff]  ;;  %v2999_v31 = vld [vmem:[#allocation2 + $0xb1] sm:$0xff]  ;;  %v3013_v55 = vld [vmem:[#allocation2 + $0x159] sm:$0xff] }
 0x363   : > { %v3012_v10 = vld [vmem:[#allocation2 + $0x151] sm:$0xff] }
 0x369   : > { %4222 = vmatmul.mubr.bf16.gmra.mrb[192].mxu0 %v2836_v58  ;;  %4061 = vmatmul.mubr.bf16.gmra.mrb[160].mxu1 %v2834_v22  ;;  %v6564_v22 = vld [vmem:[#allocation9 + $0x228] sm:$0xff]  }
 0x36a   : > { %4229 = vmatprep.mubr.bf16.mxu0 %v7864_v15  ;;  %4068 = vmatprep.mubr.bf16.mxu1 %v2836_v58  ;;  %v2839_v15 = vpack.c.bf16 %v2819_v12, %v2818_v6  ;;  %v3025_v6 = vpack.c.bf16 %v2999_v31, %v2998_v49  ;;  %v3128_v12 = vld [vmem:[#allocation2 + $0xaa] sm:$0xff] }
 0x371   : > { %4230 = vmatmul.mubr.bf16.gmra.mrb[196].mxu0 %v2837_v21  ;;  %4069 = vmatmul.mubr.bf16.gmra.mrb[164].mxu1 %v2835_v47  ;;  %v2996_v47 = vld [vmem:[#allocation2 + $0x91] sm:$0xff] }
 0x372   : > { %4237 = vmatprep.mubr.bf16.mxu0 %v7866_v30  ;;  %4076 = vmatprep.mubr.bf16.mxu1 %v2837_v21  ;;  %v2840_v30 = vpack.c.bf16 %v2821_v9, %v2820_v52  ;;  %v3000_v52 = vld [vmem:[#allocation2 + $0xc1] sm:$0xff]  ;;  %v3001_v9 = vld [vmem:[#allocation2 + $0xc9] sm:$0xff] }
 0x379   : > { %4238 = vmatmul.mubr.bf16.gmra.mrb[200].mxu0 %v2838_v16  ;;  %4077 = vmatmul.mubr.bf16.gmra.mrb[168].mxu1 %v2836_v58  ;;  %v3024_v58 = vpack.c.bf16 %v2997_v18, %v2996_v47 }
 0x37a   : > { %4245 = vmatprep.mubr.bf16.mxu0 %v7868_v3  ;;  %4084 = vmatprep.mubr.bf16.mxu1 %v2838_v16  ;;  %v2841_v3 = vpack.c.bf16 %v2823_v4, %v2822_v46  ;;  %v3026_v46 = vpack.c.bf16 %v3001_v9, %v3000_v52  ;;  %v3130_v4 = vld [vmem:[#allocation2 + $0xc2] sm:$0xff] }
 0x381   : > { %4246 = vmatmul.mubr.bf16.gmra.mrb[204].mxu0 %v2839_v15  ;;  %4085 = vmatmul.mubr.bf16.gmra.mrb[172].mxu1 %v2837_v21  ;;  %v3127_v21 = vld [vmem:[#allocation2 + $0x9a] sm:$0xff] }
 0x382   : > { %4253 = vmatprep.mubr.bf16.mxu0 %v7870_v28  ;;  %4092 = vmatprep.mubr.bf16.mxu1 %v2839_v15  ;;  %v7914_v28 = vld [vmem:[#allocation2 + $0x171] sm:$0xff] }
 0x383   : > { %v2907_v34 = vpack.c.bf16 %v7914_v28, %v2632_v62  ;;  %v2924_v62 = vld [vmem:[#allocation2 + $0x19] sm:$0xff] }
 0x384   : > { %v2956_v60 = vpack.c.bf16 %v2925_v45, %v2924_v62  ;;  %v3029_v45 = vpack.c.bf16 %v3007_v44, %v3006_v41 }
 0x389   : > { %4254 = vmatmul.mubr.bf16.gmra.mrb[208].mxu0 %v2840_v30  ;;  %4093 = vmatmul.mubr.bf16.gmra.mrb[176].mxu1 %v2838_v16  ;;  %v7935_v16 = vpack.c.bf16 %v3127_v21, %v3126_v5  ;;  %v3032_v21 = vpack.c.bf16 %v3013_v55, %v3012_v10  ;;  %v3018_v10 = vld [vmem:[#allocation2 + $0x199] sm:$0xff]  ;;  %v3019_v55 = vld [vmem:[#allocation2 + $0x1a1] sm:$0xff] }
 0x38a   : > { %4261 = vmatprep.mubr.bf16.mxu0 %v7872_v43  ;;  %4100 = vmatprep.mubr.bf16.mxu1 %v2840_v30  ;;  %v2826_v43 = vld [vmem:[#allocation2 + $0x198] sm:$0xff] }
 0x38b   : > { %v2843_v38 = vpack.c.bf16 %v7859_v26, %v2826_v43  ;;  %v7920_v26 = vpack.c.bf16 %v3119_v0, %v3118_v56  ;;  %v3132_v43 = vld [vmem:[#allocation2 + $0xda] sm:$0xff]  ;;  %v3136_v56 = vld [vmem:[#allocation2 + $0x10a] sm:$0xff] }
 0x38c   : > { %v3008_v0 = vld [vmem:[#allocation2 + $0x121] sm:$0xff] }
 0x391   : > { %4262 = vmatmul.mubr.bf16.gmra.mrb[212].mxu0 %v2841_v3  ;;  %4101 = vmatmul.mubr.bf16.gmra.mrb[180].mxu1 %v2839_v15  ;;  %v3129_v15 = vld [vmem:[#allocation2 + $0xb2] sm:$0xff] }
 0x392   : > { %4269 = vmatprep.mubr.bf16.mxu0 %v7878_v37  ;;  %4108 = vmatprep.mubr.bf16.mxu1 %v2841_v3  ;;  %v2988_v37 = vld [vmem:[#allocation2 + $0x31] sm:$0xff] }
 0x393   : > { %v3020_v8 = vpack.c.bf16 %v2989_v54, %v2988_v37  ;;  %v7947_v37 = vpack.c.bf16 %v3133_v59, %v3132_v43 }
 0x399   : > { %4270 = vmatmul.mubr.bf16.gmra.mrb[216].mxu0 %v2842_v13  ;;  %4109 = vmatmul.mubr.bf16.gmra.mrb[184].mxu1 %v2840_v30  ;;  %v7939_v30 = vpack.c.bf16 %v3129_v15, %v3128_v12  ;;  %v3142_v12 = vld [vmem:[#allocation2 + $0x152] sm:$0xff]  ;;  %v3143_v15 = vld [vmem:[#allocation2 + $0x15a] sm:$0xff] }
 0x39a   : > { %4277 = vmatprep.mubr.bf16.mxu0 %v2907_v34  ;;  %4116 = vmatprep.mubr.bf16.mxu1 %v2842_v13  ;;  %v3027_v34 = vpack.c.bf16 %v3003_v51, %v3002_v61  ;;  %v7971_v59 = vpack.c.bf16 %v3143_v15, %v3142_v12  ;;  %v3035_v12 = vpack.c.bf16 %v3019_v55, %v3018_v10 }
 0x3a1   : > { %4278 = vmatmul.mubr.bf16.gmra.mrb[220].mxu0 %v2843_v38  ;;  %4117 = vmatmul.mubr.bf16.gmra.mrb[188].mxu1 %v2841_v3  ;;  %v3131_v3 = vld [vmem:[#allocation2 + $0xca] sm:$0xff] }
 0x3a2   : > { %4479 = vmatprep.mubr.bf16.mxu0 %v3148_v23  ;;  %4318 = vmatprep.mubr.bf16.mxu1 %v3020_v8  ;;  %v7943_v13 = vpack.c.bf16 %v3131_v3, %v3130_v4  ;;  %v3004_v38 = vld [vmem:[#allocation2 + $0xf1] sm:$0xff] }
 0x3a3   : > { %v3028_v54 = vpack.c.bf16 %v3005_v19, %v3004_v38 }
 0x3a9   : > { %4480 = vmatmul.mubr.bf16.vlgmr.msra.gmra.mrb[224].mxu0 %v3084_v33  ;;  %4319 = vmatmul.mubr.bf16.vlgmr.msra.gmra.mrb[192].mxu1 %v2956_v60  ;;  %v3137_v33 = vld [vmem:[#allocation2 + $0x112] sm:$0xff]  ;;  %v3030_v60 = vpack.c.bf16 %v3009_v7, %v3008_v0  ;;  %v3016_v7 = vld [vmem:[#allocation2 + $0x181] sm:$0xff] }
 0x3aa   : > { %4487 = vmatprep.mubr.bf16.mxu0 %v7920_v26  ;;  %4326 = vmatprep.mubr.bf16.mxu1 %v3021_v35  ;;  %v7955_v11 = vpack.c.bf16 %v3137_v33, %v3136_v56  ;;  %v3145_v56 = vld [vmem:[#allocation2 + $0x172] sm:$0xff] }
 0x3ab   : > { %6302 = vmatpush3.bf16.msra.mxu1 %v7892_v17  ;;  %v6563_v17 = vld [vmem:[#allocation9 + $0x220] sm:$0xff]  }
 0x3ac   : > { %6303 = vmatprep.subr.bf16.mxu1 %v6560_v32 }
 0x3af   : > { %6304 = vmatpush3.bf16.msra.mxu1 %v6560_v32  ;;  %v3139_v32 = vld [vmem:[#allocation2 + $0x12a] sm:$0xff] }
 0x3b0   : > { %6305 = vmatprep.subr.bf16.mxu1 %v6561_v2 }
 0x3b1   : > { %4488 = vmatmul.mubr.bf16.gmra.mrb[228].mxu0 %v3148_v23  ;;  %4327 = vmatmul.mubr.bf16.gmra.mrb[196].mxu1 %v3020_v8  ;;  %v3134_v23 = vld [vmem:[#allocation2 + $0xf2] sm:$0xff]  ;;  %v3135_v8 = vld [vmem:[#allocation2 + $0xfa] sm:$0xff] }
 0x3b2   : > { %4495 = vmatprep.mubr.bf16.mxu0 %v7924_v1  ;;  %4334 = vmatprep.mubr.bf16.mxu1 %v3022_v36  ;;  %v7951_v62 = vpack.c.bf16 %v3135_v8, %v3134_v23 }
 0x3b3   : > { %6306 = vmatpush3.bf16.msra.mxu1 %v6561_v2  ;;  %v3011_v2 = vld [vmem:[#allocation2 + $0x141] sm:$0xff] }
 0x3b4   : > { %6307 = vmatprep.subr.bf16.mxu1 %v6562_v25  ;;  %v3031_v24 = vpack.c.bf16 %v3011_v2, %v3010_v42 }
 0x3b7   : > { %6308 = vmatpush3.bf16.msra.mxu1 %v6562_v25  ;;  %v3140_v25 = vld [vmem:[#allocation2 + $0x13a] sm:$0xff] }
 0x3b8   : > { %6309 = vmatprep.subr.bf16.mxu1 %v6563_v17  ;;  %v7963_v18 = vpack.c.bf16 %v3141_v53, %v3140_v25 }
 0x3b9   : > { %4496 = vmatmul.mubr.bf16.gmra.mrb[232].mxu0 %v7920_v26  ;;  %4335 = vmatmul.mubr.bf16.gmra.mrb[200].mxu1 %v3021_v35  ;;  %v3138_v35 = vld [vmem:[#allocation2 + $0x122] sm:$0xff] }
 0x3ba   : > { %4503 = vmatprep.mubr.bf16.mxu0 %v7927_v57  ;;  %4342 = vmatprep.mubr.bf16.mxu1 %v3023_v50  ;;  %v7959_v39 = vpack.c.bf16 %v3139_v32, %v3138_v35 }
 0x3bb   : > { %6310 = vmatpush3.bf16.msra.mxu1 %v6563_v17 }
 0x3bc   : > { %6311 = vmatprep.subr.bf16.mxu1 %v6564_v22 }
 0x3bf   : > { %6312 = vmatpush3.bf16.msra.mxu1 %v6564_v22 }
 0x3c0   : > { %6313 = vmatprep.subr.bf16.mxu1 %v6565_v48 }
 0x3c1   : > { %4504 = vmatmul.mubr.bf16.gmra.mrb[236].mxu0 %v7924_v1  ;;  %4343 = vmatmul.mubr.bf16.gmra.mrb[204].mxu1 %v3022_v36 }
 0x3c2   : > { %4511 = vmatprep.mubr.bf16.mxu0 %v7931_v14  ;;  %4350 = vmatprep.mubr.bf16.mxu1 %v3024_v58 }
 0x3c3   : > { %6314 = vmatpush3.bf16.msra.mxu1 %v6565_v48 }
 0x3c4   : > { %6315 = vmatprep.subr.bf16.mxu1 %v6566_v20 }
 0x3c7   : > { %6316 = vmatpush3.bf16.msra.mxu1 %v6566_v20 }
 0x3c9   : > { %4512 = vmatmul.mubr.bf16.gmra.mrb[240].mxu0 %v7927_v57  ;;  %4351 = vmatmul.mubr.bf16.gmra.mrb[208].mxu1 %v3023_v50 }
 0x3ca   : > { %4519 = vmatprep.mubr.bf16.mxu0 %v7935_v16  ;;  %4358 = vmatprep.mubr.bf16.mxu1 %v3025_v6 }
 0x3d1   : > { %4520 = vmatmul.mubr.bf16.gmra.mrb[244].mxu0 %v7931_v14  ;;  %4359 = vmatmul.mubr.bf16.gmra.mrb[212].mxu1 %v3024_v58 }
 0x3d2   : > { %4527 = vmatprep.mubr.bf16.mxu0 %v7939_v30  ;;  %4366 = vmatprep.mubr.bf16.mxu1 %v3026_v46 }
 0x3d9   : > { %4528 = vmatmul.mubr.bf16.gmra.mrb[248].mxu0 %v7935_v16  ;;  %4367 = vmatmul.mubr.bf16.gmra.mrb[216].mxu1 %v3025_v6 }
 0x3da   : > { %4535 = vmatprep.mubr.bf16.mxu0 %v7943_v13  ;;  %4374 = vmatprep.mubr.bf16.mxu1 %v3027_v34 }
 0x3e1   : > { %4536 = vmatmul.mubr.bf16.gmra.mrb[252].mxu0 %v7939_v30  ;;  %4375 = vmatmul.mubr.bf16.gmra.mrb[220].mxu1 %v3026_v46  ;;  %v3014_v46 = vld [vmem:[#allocation2 + $0x169] sm:$0xff] }
 0x3e2   : > { %4543 = vmatprep.mubr.bf16.mxu0 %v7947_v37  ;;  %4382 = vmatprep.mubr.bf16.mxu1 %v3028_v54  ;;  %v3033_v23 = vpack.c.bf16 %v7914_v28, %v3014_v46 }
 0x3e9   : > { %4544 = vmatmul.mubr.bf16.gmra.mrb[0].mxu0 %v7943_v13  ;;  %4383 = vmatmul.mubr.bf16.gmra.mrb[224].mxu1 %v3027_v34 }
 0x3ea   : > { %4551 = vmatprep.mubr.bf16.mxu0 %v7951_v62  ;;  %4390 = vmatprep.mubr.bf16.mxu1 %v3029_v45 }
 0x3f1   : > { %4552 = vmatmul.mubr.bf16.gmra.mrb[4].mxu0 %v7947_v37  ;;  %4391 = vmatmul.mubr.bf16.gmra.mrb[228].mxu1 %v3028_v54 }
 0x3f2   : > { %4559 = vmatprep.mubr.bf16.mxu0 %v7955_v11  ;;  %4398 = vmatprep.mubr.bf16.mxu1 %v3030_v60 }
 0x3f9   : > { %4560 = vmatmul.mubr.bf16.gmra.mrb[8].mxu0 %v7951_v62  ;;  %4399 = vmatmul.mubr.bf16.gmra.mrb[232].mxu1 %v3029_v45  ;;  %v3144_v45 = vld [vmem:[#allocation2 + $0x16a] sm:$0xff] }
 0x3fa   : > { %4567 = vmatprep.mubr.bf16.mxu0 %v7959_v39  ;;  %4406 = vmatprep.mubr.bf16.mxu1 %v3031_v24 }
 0x3fc   : > { %v5909_v63 = vpop.f32.mrb[160].mxu0  ;;  %v5797_v36 = vpop.f32.mrb[128].mxu1 }
 0x3fd   : > { %v5910_v17 = vpop.f32.mrb[161].mxu0  ;;  %v5798_v29 = vpop.f32.mrb[129].mxu1 }
 0x3fe   : > { %v5911_v50 = vadd.f32 %v5910_v17, %v5909_v63  ;;  %v5799_v22 = vadd.f32 %v5798_v29, %v5797_v36  ;;  %v5912_v27 = vpop.f32.mrb[162].mxu0  ;;  %v5800_v48 = vpop.f32.mrb[130].mxu1 }
 0x3ff   : > { %v5913_v40 = vpop.f32.mrb[163].mxu0  ;;  %v5801_v47 = vpop.f32.mrb[131].mxu1 }
 0x400   : > { %v7965_v58 = vadd.f32 %v5911_v50, %v5799_v22  ;;  %v5914_v20 = vadd.f32 %v5913_v40, %v5912_v27  ;;  %v5802_v5 = vadd.f32 %v5801_v47, %v5800_v48  ;;  %v3146_v40 = vld [vmem:[#allocation2 + $0x182] sm:$0xff]  ;;  %v3147_v47 = vld [vmem:[#allocation2 + $0x18a] sm:$0xff] }
 0x401   : > { %4568 = vmatmul.mubr.bf16.gmra.mrb[12].mxu0 %v7955_v11  ;;  %4407 = vmatmul.mubr.bf16.gmra.mrb[236].mxu1 %v3030_v60  ;;  %v3017_v60 = vld [vmem:[#allocation2 + $0x189] sm:$0xff] }
 0x402   : > { %v7968_v49 = vadd.f32 %v5914_v20, %v5802_v5  ;;  %4575 = vmatprep.mubr.bf16.mxu0 %v7963_v18  ;;  %4414 = vmatprep.mubr.bf16.mxu1 %v3032_v21  ;;  %v3034_v17 = vpack.c.bf16 %v3017_v60, %v3016_v7 }
 0x404   : > { %v5915_v31 = vpop.f32.mrb[164].mxu0  ;;  %v5803_v6 = vpop.f32.mrb[132].mxu1 }
 0x405   : > { %v5916_v52 = vpop.f32.mrb[165].mxu0  ;;  %v5804_v9 = vpop.f32.mrb[133].mxu1 }
 0x406   : > { %v5917_v4 = vadd.f32 %v5916_v52, %v5915_v31  ;;  %v5805_v3 = vadd.f32 %v5804_v9, %v5803_v6  ;;  %v5918_v61 = vpop.f32.mrb[166].mxu0  ;;  %v5806_v51 = vpop.f32.mrb[134].mxu1 }
 0x407   : > { %v5919_v34 = vpop.f32.mrb[167].mxu0  ;;  %v5807_v43 = vpop.f32.mrb[135].mxu1 }
 0x408   : > { %v7973_v38 = vadd.f32 %v5917_v4, %v5805_v3  ;;  %v5920_v19 = vadd.f32 %v5919_v34, %v5918_v61  ;;  %v5808_v54 = vadd.f32 %v5807_v43, %v5806_v51  ;;  %v7990_v4 = vpack.c.bf16 %v3147_v47, %v3146_v40 }
 0x409   : > { %4576 = vmatmul.mubr.bf16.gmra.mrb[16].mxu0 %v7959_v39  ;;  %4415 = vmatmul.mubr.bf16.gmra.mrb[240].mxu1 %v3031_v24  ;;  %v7980_v24 = vpack.c.bf16 %v3145_v56, %v3144_v45 }
 0x40a   : > { %v7977_v8 = vadd.f32 %v5920_v19, %v5808_v54  ;;  %4583 = vmatprep.mubr.bf16.mxu0 %v7971_v59  ;;  %4422 = vmatprep.mubr.bf16.mxu1 %v3033_v23 }
 0x40c   : > { %v5921_v41 = vpop.f32.mrb[168].mxu0  ;;  %v5809_v44 = vpop.f32.mrb[136].mxu1 }
 0x40d   : > { %v5922_v33 = vpop.f32.mrb[169].mxu0  ;;  %v5810_v0 = vpop.f32.mrb[137].mxu1 }
 0x40e   : > { %v5923_v35 = vadd.f32 %v5922_v33, %v5921_v41  ;;  %v5811_v32 = vadd.f32 %v5810_v0, %v5809_v44  ;;  %v5924_v42 = vpop.f32.mrb[170].mxu0  ;;  %v5812_v28 = vpop.f32.mrb[138].mxu1 }
 0x40f   : > { %v5925_v2 = vpop.f32.mrb[171].mxu0  ;;  %v5813_v63 = vpop.f32.mrb[139].mxu1 }
 0x410   : > { %v7982_v36 = vadd.f32 %v5923_v35, %v5811_v32  ;;  %v5926_v25 = vadd.f32 %v5925_v2, %v5924_v42  ;;  %v5814_v53 = vadd.f32 %v5813_v63, %v5812_v28 }
 0x411   : > { %4584 = vmatmul.mubr.bf16.gmra.mrb[20].mxu0 %v7963_v18  ;;  %4423 = vmatmul.mubr.bf16.gmra.mrb[244].mxu1 %v3032_v21 }
 0x412   : > { %v7985_v29 = vadd.f32 %v5926_v25, %v5814_v53  ;;  %4591 = vmatprep.mubr.bf16.mxu0 %v7980_v24  ;;  %4430 = vmatprep.mubr.bf16.mxu1 %v3034_v17 }
 0x414   : > { %v5927_v50 = vpop.f32.mrb[172].mxu0  ;;  %v5815_v22 = vpop.f32.mrb[140].mxu1 }
 0x415   : > { %v5928_v27 = vpop.f32.mrb[173].mxu0  ;;  %v5816_v48 = vpop.f32.mrb[141].mxu1 }
 0x416   : > { %v5929_v20 = vadd.f32 %v5928_v27, %v5927_v50  ;;  %v5817_v5 = vadd.f32 %v5816_v48, %v5815_v22  ;;  %v5930_v31 = vpop.f32.mrb[174].mxu0  ;;  %v5818_v6 = vpop.f32.mrb[142].mxu1 }
 0x417   : > { %v5931_v15 = vpop.f32.mrb[175].mxu0  ;;  %v5819_v21 = vpop.f32.mrb[143].mxu1 }
 0x418   : > { %v7988_v52 = vadd.f32 %v5929_v20, %v5817_v5  ;;  %v5932_v9 = vadd.f32 %v5931_v15, %v5930_v31  ;;  %v5820_v46 = vadd.f32 %v5819_v21, %v5818_v6 }
 0x419   : > { %4592 = vmatmul.mubr.bf16.gmra.mrb[24].mxu0 %v7971_v59  ;;  %4431 = vmatmul.mubr.bf16.gmra.mrb[248].mxu1 %v3033_v23 }
 0x41a   : > { %v7993_v3 = vadd.f32 %v5932_v9, %v5820_v46  ;;  %4599 = vmatprep.mubr.bf16.mxu0 %v7990_v4  ;;  %4438 = vmatprep.mubr.bf16.mxu1 %v3035_v12 }
 0x41c   : > { %v5933_v61 = vpop.f32.mrb[176].mxu0  ;;  %v5821_v51 = vpop.f32.mrb[144].mxu1 }
 0x41d   : > { %v5934_v34 = vpop.f32.mrb[177].mxu0  ;;  %v5822_v43 = vpop.f32.mrb[145].mxu1 }
 0x41e   : > { %v5935_v19 = vadd.f32 %v5934_v34, %v5933_v61  ;;  %v5823_v54 = vadd.f32 %v5822_v43, %v5821_v51  ;;  %v5936_v41 = vpop.f32.mrb[178].mxu0  ;;  %v5824_v44 = vpop.f32.mrb[146].mxu1 }
 0x41f   : > { %v5937_v45 = vpop.f32.mrb[179].mxu0  ;;  %v5825_v56 = vpop.f32.mrb[147].mxu1 }
 0x420   : > { %v7996_v33 = vadd.f32 %v5935_v19, %v5823_v54  ;;  %v5938_v0 = vadd.f32 %v5937_v45, %v5936_v41  ;;  %v5826_v7 = vadd.f32 %v5825_v56, %v5824_v44 }
 0x421   : > { %4600 = vmatmul.mubr.bf16.gmra.mrb[28].mxu0 %v7980_v24  ;;  %4439 = vmatmul.mubr.bf16.gmra.mrb[252].mxu1 %v3034_v17 }
 0x422   : > { %v7999_v23 = vadd.f32 %v5938_v0, %v5826_v7  ;;  %6317 = vmatprep.mubr.bf16.mxu1 %v7920_v26 }
 0x424   : > { %v5939_v60 = vpop.f32.mrb[180].mxu0  ;;  %v5827_v35 = vpop.f32.mrb[148].mxu1 }
 0x425   : > { %v5940_v32 = vpop.f32.mrb[181].mxu0  ;;  %v5828_v42 = vpop.f32.mrb[149].mxu1 }
 0x426   : > { %v5941_v28 = vadd.f32 %v5940_v32, %v5939_v60  ;;  %v5829_v2 = vadd.f32 %v5828_v42, %v5827_v35  ;;  %v5942_v63 = vpop.f32.mrb[182].mxu0  ;;  %v5830_v25 = vpop.f32.mrb[150].mxu1 }
 0x427   : > { %v5943_v53 = vpop.f32.mrb[183].mxu0  ;;  %v5831_v10 = vpop.f32.mrb[151].mxu1 }
 0x428   : > { %v8002_v55 = vadd.f32 %v5941_v28, %v5829_v2  ;;  %v5944_v50 = vadd.f32 %v5943_v53, %v5942_v63  ;;  %v5832_v22 = vadd.f32 %v5831_v10, %v5830_v25 }
 0x429   : > { %6318 = vmatmul.mubr.bf16.vlgmr.msra.gmra.mrb[0].mxu1 %v7924_v1 }
 0x42a   : > { %v8005_v17 = vadd.f32 %v5944_v50, %v5832_v22  ;;  %6321 = vmatprep.mubr.bf16.mxu1 %v7927_v57 }
 0x42c   : > { %v5945_v26 = vpop.f32.mrb[184].mxu0  ;;  %v5833_v27 = vpop.f32.mrb[152].mxu1 }
 0x42d   : > { %v5946_v48 = vpop.f32.mrb[185].mxu0  ;;  %v5834_v40 = vpop.f32.mrb[153].mxu1 }
 0x42e   : > { %v5947_v47 = vadd.f32 %v5946_v48, %v5945_v26  ;;  %v5835_v20 = vadd.f32 %v5834_v40, %v5833_v27  ;;  %v5948_v5 = vpop.f32.mrb[186].mxu0  ;;  %v5836_v31 = vpop.f32.mrb[154].mxu1 }
 0x42f   : > { %v5949_v6 = vpop.f32.mrb[187].mxu0  ;;  %v5837_v12 = vpop.f32.mrb[155].mxu1 }
 0x430   : > { %v8008_v15 = vadd.f32 %v5947_v47, %v5835_v20  ;;  %v5950_v21 = vadd.f32 %v5949_v6, %v5948_v5  ;;  %v5838_v9 = vadd.f32 %v5837_v12, %v5836_v31 }
 0x431   : > { %6322 = vmatmul.mubr.bf16.gmra.mrb[4].mxu1 %v7931_v14 }
 0x432   : > { %v8011_v1 = vadd.f32 %v5950_v21, %v5838_v9  ;;  %6325 = vmatprep.mubr.bf16.mxu1 %v7935_v16 }
 0x434   : > { %v5951_v57 = vpop.f32.mrb[188].mxu0  ;;  %v5839_v46 = vpop.f32.mrb[156].mxu1 }
 0x435   : > { %v5952_v61 = vpop.f32.mrb[189].mxu0  ;;  %v5840_v51 = vpop.f32.mrb[157].mxu1 }
 0x436   : > { %v5953_v34 = vadd.f32 %v5952_v61, %v5951_v57  ;;  %v5841_v43 = vadd.f32 %v5840_v51, %v5839_v46  ;;  %v5954_v19 = vpop.f32.mrb[190].mxu0  ;;  %v5842_v54 = vpop.f32.mrb[158].mxu1 }
 0x437   : > { %v5955_v41 = vpop.f32.mrb[191].mxu0  ;;  %v5843_v44 = vpop.f32.mrb[159].mxu1 }
 0x438   : > { %v8014_v45 = vadd.f32 %v5953_v34, %v5841_v43  ;;  %v5956_v56 = vadd.f32 %v5955_v41, %v5954_v19  ;;  %v5844_v0 = vadd.f32 %v5843_v44, %v5842_v54 }
 0x439   : > { %6326 = vmatmul.mubr.bf16.gmra.mrb[8].mxu1 %v7939_v30 }
 0x43a   : > { %v8017_v14 = vadd.f32 %v5956_v56, %v5844_v0  ;;  %6329 = vmatprep.mubr.bf16.mxu1 %v7943_v13 }
 0x43c   : > { %v5957_v16 = vpop.f32.mrb[192].mxu0  ;;  %v5845_v7 = vpop.f32.mrb[160].mxu1 }
 0x43d   : > { %v5958_v60 = vpop.f32.mrb[193].mxu0  ;;  %v5846_v35 = vpop.f32.mrb[161].mxu1 }
 0x43e   : > { %v5959_v32 = vadd.f32 %v5958_v60, %v5957_v16  ;;  %v5847_v42 = vadd.f32 %v5846_v35, %v5845_v7  ;;  %v5960_v28 = vpop.f32.mrb[194].mxu0  ;;  %v5848_v2 = vpop.f32.mrb[162].mxu1 }
 0x43f   : > { %v5961_v63 = vpop.f32.mrb[195].mxu0  ;;  %v5849_v25 = vpop.f32.mrb[163].mxu1 }
 0x440   : > { %v8020_v53 = vadd.f32 %v5959_v32, %v5847_v42  ;;  %v5962_v10 = vadd.f32 %v5961_v63, %v5960_v28  ;;  %v5850_v50 = vadd.f32 %v5849_v25, %v5848_v2 }
 0x441   : > { %6330 = vmatmul.mubr.bf16.gmra.mrb[12].mxu1 %v7947_v37 }
 0x442   : > { %v8023_v30 = vadd.f32 %v5962_v10, %v5850_v50  ;;  %6333 = vmatprep.mubr.bf16.mxu1 %v7951_v62  ;;  %v3211_v50 = vld [vmem:[#allocation2 + $0x1a2] sm:$0xff] }
 0x444   : > { %v5963_v13 = vpop.f32.mrb[196].mxu0  ;;  %v5851_v22 = vpop.f32.mrb[164].mxu1 }
 0x445   : > { %v5964_v26 = vpop.f32.mrb[197].mxu0  ;;  %v5852_v27 = vpop.f32.mrb[165].mxu1 }
 0x446   : > { %v5965_v48 = vadd.f32 %v5964_v26, %v5963_v13  ;;  %v5853_v40 = vadd.f32 %v5852_v27, %v5851_v22  ;;  %v5966_v47 = vpop.f32.mrb[198].mxu0  ;;  %v5854_v20 = vpop.f32.mrb[166].mxu1 }
 0x447   : > { %v5967_v5 = vpop.f32.mrb[199].mxu0  ;;  %v5855_v31 = vpop.f32.mrb[167].mxu1 }
 0x448   : > { %v8026_v6 = vadd.f32 %v5965_v48, %v5853_v40  ;;  %v5968_v12 = vadd.f32 %v5967_v5, %v5966_v47  ;;  %v5856_v21 = vadd.f32 %v5855_v31, %v5854_v20 }
 0x449   : > { %6334 = vmatmul.mubr.bf16.gmra.mrb[16].mxu1 %v7955_v11 }
 0x44a   : > { %v8029_v37 = vadd.f32 %v5968_v12, %v5856_v21  ;;  %6337 = vmatprep.mubr.bf16.mxu1 %v7959_v39 }
 0x44c   : > { %v5969_v62 = vpop.f32.mrb[200].mxu0  ;;  %v5857_v9 = vpop.f32.mrb[168].mxu1 }
 0x44d   : > { %v5970_v57 = vpop.f32.mrb[201].mxu0  ;;  %v5858_v46 = vpop.f32.mrb[169].mxu1 }
 0x44e   : > { %v5971_v61 = vadd.f32 %v5970_v57, %v5969_v62  ;;  %v5859_v51 = vadd.f32 %v5858_v46, %v5857_v9  ;;  %v5972_v34 = vpop.f32.mrb[202].mxu0  ;;  %v5860_v43 = vpop.f32.mrb[170].mxu1 }
 0x44f   : > { %v5973_v19 = vpop.f32.mrb[203].mxu0  ;;  %v5861_v54 = vpop.f32.mrb[171].mxu1 }
 0x450   : > { %v8032_v41 = vadd.f32 %v5971_v61, %v5859_v51  ;;  %v5974_v44 = vadd.f32 %v5973_v19, %v5972_v34  ;;  %v5862_v56 = vadd.f32 %v5861_v54, %v5860_v43 }
 0x451   : > { %6338 = vmatmul.mubr.bf16.gmra.mrb[20].mxu1 %v7963_v18 }
 0x452   : > { %v8035_v11 = vadd.f32 %v5974_v44, %v5862_v56  ;;  %6341 = vmatprep.mubr.bf16.mxu1 %v7971_v59  ;;  %v3210_v59 = vld [vmem:[#allocation2 + $0x19a] sm:$0xff] }
 0x453   : > { %v3227_v48 = vpack.c.bf16 %v3211_v50, %v3210_v59 }
 0x454   : > { %v5975_v39 = vpop.f32.mrb[204].mxu0  ;;  %v5863_v0 = vpop.f32.mrb[172].mxu1 }
 0x455   : > { %v5976_v16 = vpop.f32.mrb[205].mxu0  ;;  %v5864_v7 = vpop.f32.mrb[173].mxu1 }
 0x456   : > { %v5977_v60 = vadd.f32 %v5976_v16, %v5975_v39  ;;  %v5865_v35 = vadd.f32 %v5864_v7, %v5863_v0  ;;  %v5978_v32 = vpop.f32.mrb[206].mxu0  ;;  %v5866_v42 = vpop.f32.mrb[174].mxu1 }
 0x457   : > { %v5979_v28 = vpop.f32.mrb[207].mxu0  ;;  %v5867_v2 = vpop.f32.mrb[175].mxu1 }
 0x458   : > { %v8038_v63 = vadd.f32 %v5977_v60, %v5865_v35  ;;  %v5980_v25 = vadd.f32 %v5979_v28, %v5978_v32  ;;  %v5868_v10 = vadd.f32 %v5867_v2, %v5866_v42 }
 0x459   : > { %6342 = vmatmul.mubr.bf16.gmra.mrb[24].mxu1 %v7980_v24 }
 0x45a   : > { %v8041_v18 = vadd.f32 %v5980_v25, %v5868_v10  ;;  %6345 = vmatprep.mubr.bf16.mxu1 %v7990_v4 }
 0x45c   : > { %v5981_v13 = vpop.f32.mrb[208].mxu0  ;;  %v5869_v22 = vpop.f32.mrb[176].mxu1 }
 0x45d   : > { %v5982_v26 = vpop.f32.mrb[209].mxu0  ;;  %v5870_v27 = vpop.f32.mrb[177].mxu1 }
 0x45e   : > { %v5983_v40 = vadd.f32 %v5982_v26, %v5981_v13  ;;  %v5871_v47 = vadd.f32 %v5870_v27, %v5869_v22  ;;  %v5984_v20 = vpop.f32.mrb[210].mxu0  ;;  %v5872_v5 = vpop.f32.mrb[178].mxu1 }
 0x45f   : > { %v5985_v31 = vpop.f32.mrb[211].mxu0  ;;  %v5873_v12 = vpop.f32.mrb[179].mxu1 }
 0x460   : > { %v8044_v21 = vadd.f32 %v5983_v40, %v5871_v47  ;;  %v5986_v24 = vadd.f32 %v5985_v31, %v5984_v20  ;;  %v5874_v62 = vadd.f32 %v5873_v12, %v5872_v5 }
 0x461   : > { %6346 = vmatmul.mubr.bf16.gmra.mrb[28].mxu1 %v3227_v48 }
 0x462   : > { %v8046_v9 = vadd.f32 %v5986_v24, %v5874_v62 }
 0x464   : > { %v5987_v4 = vpop.f32.mrb[212].mxu0  ;;  %v5875_v57 = vpop.f32.mrb[180].mxu1 }
 0x465   : > { %v5988_v46 = vpop.f32.mrb[213].mxu0  ;;  %v5876_v61 = vpop.f32.mrb[181].mxu1 }
 0x466   : > { %v5989_v51 = vadd.f32 %v5988_v46, %v5987_v4  ;;  %v5877_v34 = vadd.f32 %v5876_v61, %v5875_v57  ;;  %v5990_v43 = vpop.f32.mrb[214].mxu0  ;;  %v5878_v19 = vpop.f32.mrb[182].mxu1 }
 0x467   : > { %v5991_v54 = vpop.f32.mrb[215].mxu0  ;;  %v5879_v44 = vpop.f32.mrb[183].mxu1 }
 0x468   : > { %v8048_v56 = vadd.f32 %v5989_v51, %v5877_v34  ;;  %v5992_v39 = vadd.f32 %v5991_v54, %v5990_v43  ;;  %v5880_v0 = vadd.f32 %v5879_v44, %v5878_v19 }
 0x46a   : > { %v8050_v16 = vadd.f32 %v5992_v39, %v5880_v0 }
 0x46c   : > { %v5993_v7 = vpop.f32.mrb[216].mxu0  ;;  %v5881_v60 = vpop.f32.mrb[184].mxu1 }
 0x46d   : > { %v5994_v35 = vpop.f32.mrb[217].mxu0  ;;  %v5882_v32 = vpop.f32.mrb[185].mxu1 }
 0x46e   : > { %v5995_v42 = vadd.f32 %v5994_v35, %v5993_v7  ;;  %v5883_v28 = vadd.f32 %v5882_v32, %v5881_v60  ;;  %v5996_v2 = vpop.f32.mrb[218].mxu0  ;;  %v5884_v25 = vpop.f32.mrb[186].mxu1 }
 0x46f   : > { %v5997_v10 = vpop.f32.mrb[219].mxu0  ;;  %v5885_v59 = vpop.f32.mrb[187].mxu1 }
 0x470   : > { %v8052_v50 = vadd.f32 %v5995_v42, %v5883_v28  ;;  %v5998_v13 = vadd.f32 %v5997_v10, %v5996_v2  ;;  %v5886_v22 = vadd.f32 %v5885_v59, %v5884_v25 }
 0x472   : > { %v8054_v26 = vadd.f32 %v5998_v13, %v5886_v22 }
 0x474   : > { %v5887_v27 = vpop.f32.mrb[188].mxu1  ;;  %v5999_v48 = vpop.f32.mrb[220].mxu0 }
 0x475   : > { %v5888_v40 = vpop.f32.mrb[189].mxu1  ;;  %v6000_v47 = vpop.f32.mrb[221].mxu0 }
 0x476   : > { %v5889_v20 = vadd.f32 %v5888_v40, %v5887_v27  ;;  %v6001_v5 = vadd.f32 %v6000_v47, %v5999_v48  ;;  %v5890_v31 = vpop.f32.mrb[190].mxu1  ;;  %v6002_v12 = vpop.f32.mrb[222].mxu0 }
 0x477   : > { %v5891_v24 = vpop.f32.mrb[191].mxu1  ;;  %v6003_v62 = vpop.f32.mrb[223].mxu0 }
 0x478   : > { %v8056_v4 = vadd.f32 %v6001_v5, %v5889_v20  ;;  %v5892_v57 = vadd.f32 %v5891_v24, %v5890_v31  ;;  %v6004_v46 = vadd.f32 %v6003_v62, %v6002_v12 }
 0x47a   : > { %v8058_v61 = vadd.f32 %v6004_v46, %v5892_v57 }
 0x47c   : > { %v6021_v51 = vpop.f32.mrb[192].mxu1  ;;  %v6133_v34 = vpop.f32.mrb[224].mxu0 }
 0x47d   : > { %v6022_v43 = vpop.f32.mrb[193].mxu1  ;;  %v6134_v19 = vpop.f32.mrb[225].mxu0 }
 0x47e   : > { %v6023_v54 = vadd.f32 %v6022_v43, %v6021_v51  ;;  %v6024_v44 = vpop.f32.mrb[194].mxu1  ;;  %v6135_v39 = vadd.f32 %v6134_v19, %v6133_v34  ;;  %v6136_v0 = vpop.f32.mrb[226].mxu0 }
 0x47f   : > { %v6025_v7 = vpop.f32.mrb[195].mxu1  ;;  %v6137_v60 = vpop.f32.mrb[227].mxu0 }
 0x480   : > { %v4321_v35 = vadd.f32 %v6023_v54, %v7965_v58  ;;  %v6026_v32 = vadd.f32 %v6025_v7, %v6024_v44  ;;  %v6138_v42 = vadd.f32 %v6137_v60, %v6136_v0 }
 0x482   : > { %v4324_v28 = vadd.f32 %v6026_v32, %v7968_v49  ;;  %v8062_v2 = vadd.f32 %v6135_v39, %v4321_v35 }
 0x484   : > { %v6139_v25 = vpop.f32.mrb[228].mxu0  ;;  %v6027_v10 = vpop.f32.mrb[196].mxu1  ;;  %v8064_v59 = vadd.f32 %v6138_v42, %v4324_v28 }
 0x485   : > { %v6140_v13 = vpop.f32.mrb[229].mxu0  ;;  %v6028_v22 = vpop.f32.mrb[197].mxu1 }
 0x486   : > { %v6141_v27 = vadd.f32 %v6140_v13, %v6139_v25  ;;  %v6029_v48 = vadd.f32 %v6028_v22, %v6027_v10  ;;  %v6142_v40 = vpop.f32.mrb[230].mxu0  ;;  %v6030_v47 = vpop.f32.mrb[198].mxu1 }
 0x487   : > { %v6143_v20 = vpop.f32.mrb[231].mxu0  ;;  %v6031_v5 = vpop.f32.mrb[199].mxu1 }
 0x488   : > { %v4329_v58 = vadd.f32 %v6029_v48, %v7973_v38  ;;  %v6144_v31 = vadd.f32 %v6143_v20, %v6142_v40  ;;  %v6032_v12 = vadd.f32 %v6031_v5, %v6030_v47 }
 0x48a   : > { %v4332_v49 = vadd.f32 %v6032_v12, %v7977_v8  ;;  %v8068_v24 = vadd.f32 %v6141_v27, %v4329_v58 }
 0x48c   : > { %v6145_v62 = vpop.f32.mrb[232].mxu0  ;;  %v6033_v57 = vpop.f32.mrb[200].mxu1  ;;  %v8070_v46 = vadd.f32 %v6144_v31, %v4332_v49 }
 0x48d   : > { %v6146_v51 = vpop.f32.mrb[233].mxu0  ;;  %v6034_v34 = vpop.f32.mrb[201].mxu1 }
 0x48e   : > { %v6147_v43 = vadd.f32 %v6146_v51, %v6145_v62  ;;  %v6035_v19 = vadd.f32 %v6034_v34, %v6033_v57  ;;  %v6148_v54 = vpop.f32.mrb[234].mxu0  ;;  %v6036_v44 = vpop.f32.mrb[202].mxu1 }
 0x48f   : > { %v6149_v39 = vpop.f32.mrb[235].mxu0  ;;  %v6037_v0 = vpop.f32.mrb[203].mxu1 }
 0x490   : > { %v4337_v38 = vadd.f32 %v6035_v19, %v7982_v36  ;;  %v6150_v7 = vadd.f32 %v6149_v39, %v6148_v54  ;;  %v6038_v60 = vadd.f32 %v6037_v0, %v6036_v44 }
 0x492   : > { %v4340_v8 = vadd.f32 %v6038_v60, %v7985_v29  ;;  %v8074_v35 = vadd.f32 %v6147_v43, %v4337_v38 }
 0x494   : > { %v6151_v32 = vpop.f32.mrb[236].mxu0  ;;  %v6039_v42 = vpop.f32.mrb[204].mxu1  ;;  %v8076_v28 = vadd.f32 %v6150_v7, %v4340_v8 }
 0x495   : > { %v6152_v25 = vpop.f32.mrb[237].mxu0  ;;  %v6040_v10 = vpop.f32.mrb[205].mxu1 }
 0x496   : > { %v6153_v13 = vadd.f32 %v6152_v25, %v6151_v32  ;;  %v6041_v22 = vadd.f32 %v6040_v10, %v6039_v42  ;;  %v6154_v27 = vpop.f32.mrb[238].mxu0  ;;  %v6042_v48 = vpop.f32.mrb[206].mxu1 }
 0x497   : > { %v6155_v40 = vpop.f32.mrb[239].mxu0  ;;  %v6043_v47 = vpop.f32.mrb[207].mxu1 }
 0x498   : > { %v4345_v36 = vadd.f32 %v6041_v22, %v7988_v52  ;;  %v6156_v20 = vadd.f32 %v6155_v40, %v6154_v27  ;;  %v6044_v5 = vadd.f32 %v6043_v47, %v6042_v48 }
 0x49a   : > { %v4348_v29 = vadd.f32 %v6044_v5, %v7993_v3  ;;  %v8080_v58 = vadd.f32 %v6153_v13, %v4345_v36 }
 0x49c   : > { %v6157_v31 = vpop.f32.mrb[240].mxu0  ;;  %v6045_v12 = vpop.f32.mrb[208].mxu1  ;;  %v8082_v49 = vadd.f32 %v6156_v20, %v4348_v29 }
 0x49d   : > { %v6158_v62 = vpop.f32.mrb[241].mxu0  ;;  %v6046_v57 = vpop.f32.mrb[209].mxu1 }
 0x49e   : > { %v6159_v51 = vadd.f32 %v6158_v62, %v6157_v31  ;;  %v6047_v34 = vadd.f32 %v6046_v57, %v6045_v12  ;;  %v6160_v43 = vpop.f32.mrb[242].mxu0  ;;  %v6048_v19 = vpop.f32.mrb[210].mxu1 }
 0x49f   : > { %v6161_v54 = vpop.f32.mrb[243].mxu0  ;;  %v6049_v44 = vpop.f32.mrb[211].mxu1 }
 0x4a0   : > { %v4353_v52 = vadd.f32 %v6047_v34, %v7996_v33  ;;  %v6162_v39 = vadd.f32 %v6161_v54, %v6160_v43  ;;  %v6050_v0 = vadd.f32 %v6049_v44, %v6048_v19 }
 0x4a2   : > { %v4356_v3 = vadd.f32 %v6050_v0, %v7999_v23  ;;  %v8086_v38 = vadd.f32 %v6159_v51, %v4353_v52 }
 0x4a4   : > { %v6163_v7 = vpop.f32.mrb[244].mxu0  ;;  %v6051_v60 = vpop.f32.mrb[212].mxu1  ;;  %v8088_v8 = vadd.f32 %v6162_v39, %v4356_v3 }
 0x4a5   : > { %v6164_v32 = vpop.f32.mrb[245].mxu0  ;;  %v6052_v42 = vpop.f32.mrb[213].mxu1 }
 0x4a6   : > { %v6165_v25 = vadd.f32 %v6164_v32, %v6163_v7  ;;  %v6053_v10 = vadd.f32 %v6052_v42, %v6051_v60  ;;  %v6166_v13 = vpop.f32.mrb[246].mxu0  ;;  %v6054_v22 = vpop.f32.mrb[214].mxu1 }
 0x4a7   : > { %v6167_v27 = vpop.f32.mrb[247].mxu0  ;;  %v6055_v48 = vpop.f32.mrb[215].mxu1 }
 0x4a8   : > { %v4361_v33 = vadd.f32 %v6053_v10, %v8002_v55  ;;  %v6168_v40 = vadd.f32 %v6167_v27, %v6166_v13  ;;  %v6056_v47 = vadd.f32 %v6055_v48, %v6054_v22 }
 0x4aa   : > { %v4364_v23 = vadd.f32 %v6056_v47, %v8005_v17  ;;  %v8092_v36 = vadd.f32 %v6165_v25, %v4361_v33 }
 0x4ac   : > { %v6169_v20 = vpop.f32.mrb[248].mxu0  ;;  %v6057_v5 = vpop.f32.mrb[216].mxu1  ;;  %v8094_v29 = vadd.f32 %v6168_v40, %v4364_v23 }
 0x4ad   : > { %v6170_v31 = vpop.f32.mrb[249].mxu0  ;;  %v6058_v12 = vpop.f32.mrb[217].mxu1 }
 0x4ae   : > { %v6171_v62 = vadd.f32 %v6170_v31, %v6169_v20  ;;  %v6059_v57 = vadd.f32 %v6058_v12, %v6057_v5  ;;  %v6172_v51 = vpop.f32.mrb[250].mxu0  ;;  %v6060_v34 = vpop.f32.mrb[218].mxu1 }
 0x4af   : > { %v6173_v43 = vpop.f32.mrb[251].mxu0  ;;  %v6061_v19 = vpop.f32.mrb[219].mxu1 }
 0x4b0   : > { %v4369_v55 = vadd.f32 %v6059_v57, %v8008_v15  ;;  %v6174_v54 = vadd.f32 %v6173_v43, %v6172_v51  ;;  %v6062_v44 = vadd.f32 %v6061_v19, %v6060_v34 }
 0x4b2   : > { %v4372_v17 = vadd.f32 %v6062_v44, %v8011_v1  ;;  %v8098_v52 = vadd.f32 %v6171_v62, %v4369_v55 }
 0x4b4   : > { %v6175_v39 = vpop.f32.mrb[252].mxu0  ;;  %v6063_v0 = vpop.f32.mrb[220].mxu1  ;;  %v8100_v3 = vadd.f32 %v6174_v54, %v4372_v17 }
 0x4b5   : > { %v6176_v7 = vpop.f32.mrb[253].mxu0  ;;  %v6064_v60 = vpop.f32.mrb[221].mxu1 }
 0x4b6   : > { %v6177_v32 = vadd.f32 %v6176_v7, %v6175_v39  ;;  %v6065_v42 = vadd.f32 %v6064_v60, %v6063_v0  ;;  %v6178_v25 = vpop.f32.mrb[254].mxu0  ;;  %v6066_v10 = vpop.f32.mrb[222].mxu1 }
 0x4b7   : > { %v6179_v13 = vpop.f32.mrb[255].mxu0  ;;  %v6067_v22 = vpop.f32.mrb[223].mxu1 }
 0x4b8   : > { %v4377_v15 = vadd.f32 %v6065_v42, %v8014_v45  ;;  %v6180_v27 = vadd.f32 %v6179_v13, %v6178_v25  ;;  %v6068_v48 = vadd.f32 %v6067_v22, %v6066_v10 }
 0x4ba   : > { %v4380_v1 = vadd.f32 %v6068_v48, %v8017_v14  ;;  %v8104_v33 = vadd.f32 %v6177_v32, %v4377_v15 }
 0x4bc   : > { %v6181_v40 = vpop.f32.mrb[0].mxu0  ;;  %v6069_v47 = vpop.f32.mrb[224].mxu1  ;;  %v8106_v23 = vadd.f32 %v6180_v27, %v4380_v1 }
 0x4bd   : > { %v6182_v20 = vpop.f32.mrb[1].mxu0  ;;  %v6070_v5 = vpop.f32.mrb[225].mxu1 }
 0x4be   : > { %v6183_v31 = vadd.f32 %v6182_v20, %v6181_v40  ;;  %v6071_v12 = vadd.f32 %v6070_v5, %v6069_v47  ;;  %v6184_v62 = vpop.f32.mrb[2].mxu0  ;;  %v6072_v57 = vpop.f32.mrb[226].mxu1 }
 0x4bf   : > { %v6185_v51 = vpop.f32.mrb[3].mxu0  ;;  %v6073_v34 = vpop.f32.mrb[227].mxu1 }
 0x4c0   : > { %v4385_v45 = vadd.f32 %v6071_v12, %v8020_v53  ;;  %v6186_v43 = vadd.f32 %v6185_v51, %v6184_v62  ;;  %v6074_v19 = vadd.f32 %v6073_v34, %v6072_v57 }
 0x4c2   : > { %v4388_v14 = vadd.f32 %v6074_v19, %v8023_v30  ;;  %v8110_v55 = vadd.f32 %v6183_v31, %v4385_v45 }
 0x4c4   : > { %v6187_v54 = vpop.f32.mrb[4].mxu0  ;;  %v6075_v44 = vpop.f32.mrb[228].mxu1  ;;  %v8112_v17 = vadd.f32 %v6186_v43, %v4388_v14 }
 0x4c5   : > { %v6188_v39 = vpop.f32.mrb[5].mxu0  ;;  %v6076_v0 = vpop.f32.mrb[229].mxu1 }
 0x4c6   : > { %v6189_v7 = vadd.f32 %v6188_v39, %v6187_v54  ;;  %v6077_v60 = vadd.f32 %v6076_v0, %v6075_v44  ;;  %v6190_v32 = vpop.f32.mrb[6].mxu0  ;;  %v6078_v42 = vpop.f32.mrb[230].mxu1 }
 0x4c7   : > { %v6191_v25 = vpop.f32.mrb[7].mxu0  ;;  %v6079_v10 = vpop.f32.mrb[231].mxu1 }
 0x4c8   : > { %v4393_v53 = vadd.f32 %v6077_v60, %v8026_v6  ;;  %v6192_v13 = vadd.f32 %v6191_v25, %v6190_v32  ;;  %v6080_v22 = vadd.f32 %v6079_v10, %v6078_v42 }
 0x4ca   : > { %v4396_v30 = vadd.f32 %v6080_v22, %v8029_v37  ;;  %v8116_v15 = vadd.f32 %v6189_v7, %v4393_v53 }
 0x4cc   : > { %v6193_v27 = vpop.f32.mrb[8].mxu0  ;;  %v6081_v48 = vpop.f32.mrb[232].mxu1  ;;  %v8118_v1 = vadd.f32 %v6192_v13, %v4396_v30 }
 0x4cd   : > { %v6194_v40 = vpop.f32.mrb[9].mxu0  ;;  %v6082_v47 = vpop.f32.mrb[233].mxu1 }
 0x4ce   : > { %v6195_v20 = vadd.f32 %v6194_v40, %v6193_v27  ;;  %v6083_v5 = vadd.f32 %v6082_v47, %v6081_v48  ;;  %v6196_v31 = vpop.f32.mrb[10].mxu0  ;;  %v6084_v12 = vpop.f32.mrb[234].mxu1 }
 0x4cf   : > { %v6197_v62 = vpop.f32.mrb[11].mxu0  ;;  %v6085_v57 = vpop.f32.mrb[235].mxu1 }
 0x4d0   : > { %v4401_v6 = vadd.f32 %v6083_v5, %v8032_v41  ;;  %v6198_v51 = vadd.f32 %v6197_v62, %v6196_v31  ;;  %v6086_v34 = vadd.f32 %v6085_v57, %v6084_v12 }
 0x4d2   : > { %v4404_v37 = vadd.f32 %v6086_v34, %v8035_v11  ;;  %v8122_v45 = vadd.f32 %v6195_v20, %v4401_v6 }
 0x4d4   : > { %v6199_v43 = vpop.f32.mrb[12].mxu0  ;;  %v6087_v19 = vpop.f32.mrb[236].mxu1  ;;  %v8124_v14 = vadd.f32 %v6198_v51, %v4404_v37 }
 0x4d5   : > { %v6200_v54 = vpop.f32.mrb[13].mxu0  ;;  %v6088_v44 = vpop.f32.mrb[237].mxu1 }
 0x4d6   : > { %v6201_v39 = vadd.f32 %v6200_v54, %v6199_v43  ;;  %v6089_v0 = vadd.f32 %v6088_v44, %v6087_v19  ;;  %v6202_v7 = vpop.f32.mrb[14].mxu0  ;;  %v6090_v60 = vpop.f32.mrb[238].mxu1 }
 0x4d7   : > { %v6203_v32 = vpop.f32.mrb[15].mxu0  ;;  %v6091_v42 = vpop.f32.mrb[239].mxu1 }
 0x4d8   : > { %v4409_v41 = vadd.f32 %v6089_v0, %v8038_v63  ;;  %v6204_v25 = vadd.f32 %v6203_v32, %v6202_v7  ;;  %v6092_v10 = vadd.f32 %v6091_v42, %v6090_v60 }
 0x4da   : > { %v4412_v11 = vadd.f32 %v6092_v10, %v8041_v18  ;;  %v8128_v53 = vadd.f32 %v6201_v39, %v4409_v41 }
 0x4dc   : > { %v6205_v13 = vpop.f32.mrb[16].mxu0  ;;  %v6093_v22 = vpop.f32.mrb[240].mxu1  ;;  %v8130_v30 = vadd.f32 %v6204_v25, %v4412_v11 }
 0x4dd   : > { %v6206_v27 = vpop.f32.mrb[17].mxu0  ;;  %v6094_v48 = vpop.f32.mrb[241].mxu1 }
 0x4de   : > { %v6207_v40 = vadd.f32 %v6206_v27, %v6205_v13  ;;  %v6095_v47 = vadd.f32 %v6094_v48, %v6093_v22  ;;  %v6208_v20 = vpop.f32.mrb[18].mxu0  ;;  %v6096_v5 = vpop.f32.mrb[242].mxu1 }
 0x4df   : > { %v6209_v31 = vpop.f32.mrb[19].mxu0  ;;  %v6097_v12 = vpop.f32.mrb[243].mxu1 }
 0x4e0   : > { %v4417_v63 = vadd.f32 %v6095_v47, %v8044_v21  ;;  %v6210_v62 = vadd.f32 %v6209_v31, %v6208_v20  ;;  %v6098_v57 = vadd.f32 %v6097_v12, %v6096_v5 }
 0x4e2   : > { %v4420_v18 = vadd.f32 %v6098_v57, %v8046_v9  ;;  %v8134_v6 = vadd.f32 %v6207_v40, %v4417_v63 }
 0x4e4   : > { %v6211_v51 = vpop.f32.mrb[20].mxu0  ;;  %v6099_v34 = vpop.f32.mrb[244].mxu1  ;;  %v8136_v37 = vadd.f32 %v6210_v62, %v4420_v18 }
 0x4e5   : > { %v6212_v43 = vpop.f32.mrb[21].mxu0  ;;  %v6100_v19 = vpop.f32.mrb[245].mxu1 }
 0x4e6   : > { %v6213_v54 = vadd.f32 %v6212_v43, %v6211_v51  ;;  %v6101_v44 = vadd.f32 %v6100_v19, %v6099_v34  ;;  %v6214_v39 = vpop.f32.mrb[22].mxu0  ;;  %v6102_v0 = vpop.f32.mrb[246].mxu1 }
 0x4e7   : > { %v6215_v7 = vpop.f32.mrb[23].mxu0  ;;  %v6103_v60 = vpop.f32.mrb[247].mxu1 }
 0x4e8   : > { %v4425_v21 = vadd.f32 %v6101_v44, %v8048_v56  ;;  %v6216_v32 = vadd.f32 %v6215_v7, %v6214_v39  ;;  %v6104_v42 = vadd.f32 %v6103_v60, %v6102_v0 }
 0x4ea   : > { %v4428_v9 = vadd.f32 %v6104_v42, %v8050_v16  ;;  %v8140_v41 = vadd.f32 %v6213_v54, %v4425_v21 }
 0x4ec   : > { %v6217_v25 = vpop.f32.mrb[24].mxu0  ;;  %v6105_v10 = vpop.f32.mrb[248].mxu1  ;;  %v8142_v11 = vadd.f32 %v6216_v32, %v4428_v9 }
 0x4ed   : > { %v6218_v13 = vpop.f32.mrb[25].mxu0  ;;  %v6106_v22 = vpop.f32.mrb[249].mxu1 }
 0x4ee   : > { %v6219_v27 = vadd.f32 %v6218_v13, %v6217_v25  ;;  %v6107_v48 = vadd.f32 %v6106_v22, %v6105_v10  ;;  %v6220_v40 = vpop.f32.mrb[26].mxu0  ;;  %v6108_v47 = vpop.f32.mrb[250].mxu1 }
 0x4ef   : > { %v6221_v20 = vpop.f32.mrb[27].mxu0  ;;  %v6109_v5 = vpop.f32.mrb[251].mxu1 }
 0x4f0   : > { %v4433_v56 = vadd.f32 %v6107_v48, %v8052_v50  ;;  %v6222_v31 = vadd.f32 %v6221_v20, %v6220_v40  ;;  %v6110_v12 = vadd.f32 %v6109_v5, %v6108_v47 }
 0x4f2   : > { %v4436_v16 = vadd.f32 %v6110_v12, %v8054_v26  ;;  %v8146_v63 = vadd.f32 %v6219_v27, %v4433_v56 }
 0x4f4   : > { %v6223_v62 = vpop.f32.mrb[28].mxu0  ;;  %v6111_v57 = vpop.f32.mrb[252].mxu1  ;;  %v8148_v18 = vadd.f32 %v6222_v31, %v4436_v16 }
 0x4f5   : > { %v6224_v51 = vpop.f32.mrb[29].mxu0  ;;  %v6112_v34 = vpop.f32.mrb[253].mxu1 }
 0x4f6   : > { %v6225_v43 = vadd.f32 %v6224_v51, %v6223_v62  ;;  %v6113_v19 = vadd.f32 %v6112_v34, %v6111_v57  ;;  %v6226_v54 = vpop.f32.mrb[30].mxu0  ;;  %v6114_v44 = vpop.f32.mrb[254].mxu1 }
 0x4f7   : > { %v6227_v39 = vpop.f32.mrb[31].mxu0  ;;  %v6115_v0 = vpop.f32.mrb[255].mxu1 }
 0x4f8   : > { %v4441_v50 = vadd.f32 %v6113_v19, %v8056_v4  ;;  %v6228_v7 = vadd.f32 %v6227_v39, %v6226_v54  ;;  %v6116_v60 = vadd.f32 %v6115_v0, %v6114_v44 }
 0x4fa   : > { %v4444_v26 = vadd.f32 %v6116_v60, %v8058_v61  ;;  %v8152_v21 = vadd.f32 %v6225_v43, %v4441_v50 }
 0x4fc   : > { %v6319_v32 = vpop.f32.mrb[0].mxu1  ;;  %v8154_v42 = vadd.f32 %v6228_v7, %v4444_v26 }
 0x4fd   : > { %v8157_v9 = vadd.f32 %v6319_v32, %v8068_v24  ;;  %v4642_v25 = vpop.f32.mrb[1].mxu1 }
 0x4fe   : > { %v8160_v10 = vadd.f32 %v4642_v25, %v8062_v2  ;;  %v6320_v13 = vpop.f32.mrb[2].mxu1 }
 0x4ff   : > { %v8163_v22 = vadd.f32 %v6320_v13, %v8070_v46  ;;  %v4645_v4 = vpop.f32.mrb[3].mxu1 }
 0x500   : > { %v8166_v27 = vadd.f32 %v4645_v4, %v8064_v59 }
 0x502   : > { %v4769_v61 = vadd.f32 %v8166_v27, %v8160_v10 }
 0x504   : > { %v4770_v48 = vadd.f32 %v4769_v61, %v8157_v9  ;;  %v6323_v40 = vpop.f32.mrb[4].mxu1 }
 0x505   : > { %v8172_v24 = vadd.f32 %v6323_v40, %v8080_v58  ;;  %v4658_v47 = vpop.f32.mrb[5].mxu1 }
 0x506   : > { %v8175_v2 = vadd.f32 %v4658_v47, %v8074_v35  ;;  %v4771_v46 = vadd.f32 %v4770_v48, %v8163_v22  ;;  %v6324_v20 = vpop.f32.mrb[6].mxu1 }
 0x507   : > { %v8179_v5 = vadd.f32 %v6324_v20, %v8082_v49  ;;  %v4661_v59 = vpop.f32.mrb[7].mxu1 }
 0x508   : > { %v4772_v56 = vadd.f32 %v4771_v46, %v8175_v2  ;;  %v8183_v31 = vadd.f32 %v4661_v59, %v8076_v28 }
 0x50a   : > { %v4773_v12 = vadd.f32 %v4772_v56, %v8183_v31 }
 0x50c   : > { %v4774_v58 = vadd.f32 %v4773_v12, %v8172_v24  ;;  %v6327_v16 = vpop.f32.mrb[8].mxu1 }
 0x50d   : > { %v8188_v35 = vadd.f32 %v6327_v16, %v8092_v36  ;;  %v4674_v62 = vpop.f32.mrb[9].mxu1 }
 0x50e   : > { %v8191_v57 = vadd.f32 %v4674_v62, %v8086_v38  ;;  %v4775_v49 = vadd.f32 %v4774_v58, %v8179_v5  ;;  %v6328_v51 = vpop.f32.mrb[10].mxu1 }
 0x50f   : > { %v8195_v34 = vadd.f32 %v6328_v51, %v8094_v29  ;;  %v4677_v28 = vpop.f32.mrb[11].mxu1 }
 0x510   : > { %v4776_v43 = vadd.f32 %v4775_v49, %v8191_v57  ;;  %v8199_v19 = vadd.f32 %v4677_v28, %v8088_v8 }
 0x512   : > { %v4777_v54 = vadd.f32 %v4776_v43, %v8199_v19 }
 0x514   : > { %v4778_v36 = vadd.f32 %v4777_v54, %v8188_v35  ;;  %v6331_v44 = vpop.f32.mrb[12].mxu1 }
 0x515   : > { %v8204_v38 = vadd.f32 %v6331_v44, %v8104_v33  ;;  %v4690_v39 = vpop.f32.mrb[13].mxu1 }
 0x516   : > { %v8207_v0 = vadd.f32 %v4690_v39, %v8098_v52  ;;  %v4779_v29 = vadd.f32 %v4778_v36, %v8195_v34  ;;  %v6332_v50 = vpop.f32.mrb[14].mxu1 }
 0x517   : > { %v8211_v7 = vadd.f32 %v6332_v50, %v8106_v23  ;;  %v4693_v8 = vpop.f32.mrb[15].mxu1 }
 0x518   : > { %v4780_v60 = vadd.f32 %v4779_v29, %v8207_v0  ;;  %v8215_v26 = vadd.f32 %v4693_v8, %v8100_v3 }
 0x51a   : > { %v4781_v32 = vadd.f32 %v4780_v60, %v8215_v26 }
 0x51c   : > { %v4782_v33 = vadd.f32 %v4781_v32, %v8204_v38  ;;  %v6335_v25 = vpop.f32.mrb[16].mxu1 }
 0x51d   : > { %v8220_v52 = vadd.f32 %v6335_v25, %v8116_v15  ;;  %v4706_v13 = vpop.f32.mrb[17].mxu1 }
 0x51e   : > { %v4707_v4 = vadd.f32 %v4706_v13, %v8110_v55  ;;  %v4783_v23 = vadd.f32 %v4782_v33, %v8211_v7  ;;  %v6336_v61 = vpop.f32.mrb[18].mxu1 }
 0x51f   : > { %v4718_v48 = vadd.f32 %v6336_v61, %v8118_v1  ;;  %v4709_v40 = vpop.f32.mrb[19].mxu1 }
 0x520   : > { %v4784_v47 = vadd.f32 %v4783_v23, %v4707_v4  ;;  %v4710_v3 = vadd.f32 %v4709_v40, %v8112_v17 }
 0x522   : > { %v4785_v46 = vadd.f32 %v4784_v47, %v4710_v3 }
 0x524   : > { %v4786_v20 = vadd.f32 %v4785_v46, %v8220_v52  ;;  %v6339_v59 = vpop.f32.mrb[20].mxu1 }
 0x525   : > { %v4731_v56 = vadd.f32 %v6339_v59, %v8128_v53  ;;  %v4722_v15 = vpop.f32.mrb[21].mxu1 }
 0x526   : > { %v4723_v12 = vadd.f32 %v4722_v15, %v8122_v45  ;;  %v4787_v58 = vadd.f32 %v4786_v20, %v4718_v48  ;;  %v6340_v55 = vpop.f32.mrb[22].mxu1 }
 0x527   : > { %v4734_v16 = vadd.f32 %v6340_v55, %v8130_v30  ;;  %v4725_v62 = vpop.f32.mrb[23].mxu1 }
 0x528   : > { %v4788_v49 = vadd.f32 %v4787_v58, %v4723_v12  ;;  %v4726_v1 = vadd.f32 %v4725_v62, %v8124_v14 }
 0x52a   : > { %v4789_v51 = vadd.f32 %v4788_v49, %v4726_v1 }
 0x52c   : > { %v4790_v28 = vadd.f32 %v4789_v51, %v4731_v56  ;;  %v6343_v17 = vpop.f32.mrb[24].mxu1 }
 0x52d   : > { %v4747_v43 = vadd.f32 %v6343_v17, %v8140_v41  ;;  %v4738_v54 = vpop.f32.mrb[25].mxu1 }
 0x52e   : > { %v4739_v36 = vadd.f32 %v4738_v54, %v8134_v6  ;;  %v4791_v53 = vadd.f32 %v4790_v28, %v4734_v16  ;;  %v6344_v44 = vpop.f32.mrb[26].mxu1 }
 0x52f   : > { %v4750_v45 = vadd.f32 %v6344_v44, %v8142_v11  ;;  %v4741_v39 = vpop.f32.mrb[27].mxu1 }
 0x530   : > { %v4792_v29 = vadd.f32 %v4791_v53, %v4739_v36  ;;  %v4742_v30 = vadd.f32 %v4741_v39, %v8136_v37 }
 0x532   : > { %v4793_v50 = vadd.f32 %v4792_v29, %v4742_v30 }
 0x534   : > { %v4794_v8 = vadd.f32 %v4793_v50, %v4747_v43  ;;  %v6347_v60 = vpop.f32.mrb[28].mxu1 }
 0x535   : > { %v4763_v14 = vadd.f32 %v6347_v60, %v8152_v21  ;;  %v4754_v32 = vpop.f32.mrb[29].mxu1 }
 0x536   : > { %v4755_v33 = vadd.f32 %v4754_v32, %v8146_v63  ;;  %v4795_v41 = vadd.f32 %v4794_v8, %v4750_v45  ;;  %v6348_v25 = vpop.f32.mrb[30].mxu1 }
 0x537   : > { %v4766_v6 = vadd.f32 %v6348_v25, %v8154_v42  ;;  %v4757_v13 = vpop.f32.mrb[31].mxu1 }
 0x538   : > { %v4796_v23 = vadd.f32 %v4795_v41, %v4755_v33  ;;  %v4758_v11 = vadd.f32 %v4757_v13, %v8148_v18 }
 0x53a   : > { %v4797_v61 = vadd.f32 %v4796_v23, %v4758_v11 }
 0x53c   : > { %v4798_v40 = vadd.f32 %v4797_v61, %v4763_v14 }
 0x53e   : > { %v4799_v47 = vadd.f32 %v4798_v40, %v4766_v6 }
 0x540   : > { %v4800_v37 = vrot.slane %v4799_v47, 4 }
 0x542   : > { %v4801_v46 = vadd.f32 %v4800_v37, %v4799_v47 }
 0x544   : > { %v4802_v20 = vrot.slane %v4801_v46, 2 }
 0x546   : > { %v4803_v59 = vadd.f32 %v4802_v20, %v4801_v46 }
 0x548   : > { %v4804_v15 = vrot.slane %v4803_v59, 1 }
 0x54a   : > { %v4805_v21 = vadd.f32 %v4804_v15, %v4803_v59 }
 0x54c   : > { %v4806_v58 = vmul.f32 0.00390625, %v4805_v21 }
 0x54e   : > { %v8240_v63 = vsub.f32 %v8191_v57, %v4806_v58  ;;  %v8243_v55 = vsub.f32 %v8199_v19, %v4806_v58  ;;  %v8246_v42 = vsub.f32 %v8188_v35, %v4806_v58  ;;  %v8249_v18 = vsub.f32 %v8195_v34, %v4806_v58 }
 0x54f   : > { %v8252_v62 = vsub.f32 %v8207_v0, %v4806_v58  ;;  %v8255_v49 = vsub.f32 %v8215_v26, %v4806_v58  ;;  %v8258_v51 = vsub.f32 %v8204_v38, %v4806_v58  ;;  %v8261_v57 = vsub.f32 %v8211_v7, %v4806_v58 }
 0x550   : > { %v8263_v19 = vsub.f32 %v4707_v4, %v4806_v58  ;;  %v8265_v28 = vsub.f32 %v4710_v3, %v4806_v58  ;;  %v8268_v35 = vsub.f32 %v8220_v52, %v4806_v58  ;;  %v8270_v34 = vsub.f32 %v4718_v48, %v4806_v58 }
 0x551   : > { %v8272_v0 = vsub.f32 %v4723_v12, %v4806_v58  ;;  %v8274_v17 = vsub.f32 %v4726_v1, %v4806_v58  ;;  %v8276_v26 = vsub.f32 %v4731_v56, %v4806_v58  ;;  %v8278_v38 = vsub.f32 %v4734_v16, %v4806_v58 }
 0x552   : > { %v8280_v54 = vsub.f32 %v4739_v36, %v4806_v58  ;;  %v8282_v7 = vsub.f32 %v4742_v30, %v4806_v58  ;;  %v8284_v4 = vsub.f32 %v4747_v43, %v4806_v58  ;;  %v8286_v3 = vsub.f32 %v4750_v45, %v4806_v58 }
 0x553   : > { %v8288_v52 = vsub.f32 %v4755_v33, %v4806_v58  ;;  %v8290_v48 = vsub.f32 %v4758_v11, %v4806_v58  ;;  %v8292_v12 = vsub.f32 %v4763_v14, %v4806_v58  ;;  %v8294_v1 = vsub.f32 %v4766_v6, %v4806_v58 }
 0x554   : > { %v8297_v56 = vsub.f32 %v8160_v10, %v4806_v58  ;;  %v8300_v16 = vsub.f32 %v8166_v27, %v4806_v58  ;;  %v8303_v36 = vsub.f32 %v8157_v9, %v4806_v58  ;;  %v8310_v44 = vsub.f32 %v8163_v22, %v4806_v58 }
 0x555   : > { %v8313_v45 = vsub.f32 %v8175_v2, %v4806_v58  ;;  %v8318_v39 = vsub.f32 %v8183_v31, %v4806_v58  ;;  %v8323_v30 = vsub.f32 %v8172_v24, %v4806_v58  ;;  %v8328_v2 = vsub.f32 %v8179_v5, %v4806_v58 }
 0x556   : > { %v4839_v43 = vmul.f32 %v8297_v56, %v8297_v56  ;;  %v4840_v53 = vmul.f32 %v8300_v16, %v8300_v16  ;;  %v4841_v10 = vmul.f32 %v8303_v36, %v8303_v36  ;;  %v4842_v9 = vmul.f32 %v8310_v44, %v8310_v44 }
 0x557   : > { %v4843_v22 = vmul.f32 %v8313_v45, %v8313_v45  ;;  %v4844_v8 = vmul.f32 %v8318_v39, %v8318_v39  ;;  %v4845_v31 = vmul.f32 %v8323_v30, %v8323_v30  ;;  %v4846_v32 = vmul.f32 %v8328_v2, %v8328_v2 }
 0x558   : > { %v4871_v27 = vadd.f32 %v4840_v53, %v4839_v43  ;;  %v4847_v33 = vmul.f32 %v8240_v63, %v8240_v63  ;;  %v4848_v5 = vmul.f32 %v8243_v55, %v8243_v55  ;;  %v4849_v6 = vmul.f32 %v8246_v42, %v8246_v42 }
 0x559   : > { %v4850_v23 = vmul.f32 %v8249_v18, %v8249_v18  ;;  %v4851_v61 = vmul.f32 %v8252_v62, %v8252_v62  ;;  %v4852_v47 = vmul.f32 %v8255_v49, %v8255_v49  ;;  %v4853_v46 = vmul.f32 %v8258_v51, %v8258_v51 }
 0x55a   : > { %v4872_v29 = vadd.f32 %v4871_v27, %v4841_v10  ;;  %v4854_v59 = vmul.f32 %v8261_v57, %v8261_v57  ;;  %v4855_v21 = vmul.f32 %v8263_v19, %v8263_v19  ;;  %v4856_v43 = vmul.f32 %v8265_v28, %v8265_v28 }
 0x55b   : > { %v4857_v10 = vmul.f32 %v8268_v35, %v8268_v35 }
 0x55c   : > { %v4873_v50 = vadd.f32 %v4872_v29, %v4842_v9  ;;  %v4858_v9 = vmul.f32 %v8270_v34, %v8270_v34 }
 0x55e   : > { %v4874_v60 = vadd.f32 %v4873_v50, %v4843_v22  ;;  %v4859_v22 = vmul.f32 %v8272_v0, %v8272_v0 }
 0x560   : > { %v4875_v14 = vadd.f32 %v4874_v60, %v4844_v8  ;;  %v4860_v8 = vmul.f32 %v8274_v17, %v8274_v17 }
 0x562   : > { %v4876_v24 = vadd.f32 %v4875_v14, %v4845_v31  ;;  %v4861_v31 = vmul.f32 %v8276_v26, %v8276_v26 }
 0x564   : > { %v4877_v41 = vadd.f32 %v4876_v24, %v4846_v32  ;;  %v4862_v32 = vmul.f32 %v8278_v38, %v8278_v38 }
 0x566   : > { %v4878_v25 = vadd.f32 %v4877_v41, %v4847_v33  ;;  %v4863_v33 = vmul.f32 %v8280_v54, %v8280_v54 }
 0x568   : > { %v4879_v13 = vadd.f32 %v4878_v25, %v4848_v5  ;;  %v4864_v5 = vmul.f32 %v8282_v7, %v8282_v7 }
 0x56a   : > { %v4880_v11 = vadd.f32 %v4879_v13, %v4849_v6  ;;  %v4865_v6 = vmul.f32 %v8284_v4, %v8284_v4 }
 0x56c   : > { %v4881_v40 = vadd.f32 %v4880_v11, %v4850_v23  ;;  %v4866_v23 = vmul.f32 %v8286_v3, %v8286_v3 }
 0x56e   : > { %v4882_v37 = vadd.f32 %v4881_v40, %v4851_v61  ;;  %v4867_v61 = vmul.f32 %v8288_v52, %v8288_v52 }
 0x570   : > { %v4883_v20 = vadd.f32 %v4882_v37, %v4852_v47  ;;  %v4868_v47 = vmul.f32 %v8290_v48, %v8290_v48 }
 0x572   : > { %v4884_v15 = vadd.f32 %v4883_v20, %v4853_v46  ;;  %v4869_v46 = vmul.f32 %v8292_v12, %v8292_v12 }
 0x574   : > { %v4885_v58 = vadd.f32 %v4884_v15, %v4854_v59  ;;  %v4870_v59 = vmul.f32 %v8294_v1, %v8294_v1 }
 0x576   : > { %v4886_v53 = vadd.f32 %v4885_v58, %v4855_v21 }
 0x578   : > { %v4887_v27 = vadd.f32 %v4886_v53, %v4856_v43 }
 0x57a   : > { %v4888_v29 = vadd.f32 %v4887_v27, %v4857_v10 }
 0x57c   : > { %v4889_v50 = vadd.f32 %v4888_v29, %v4858_v9 }
 0x57e   : > { %v4890_v60 = vadd.f32 %v4889_v50, %v4859_v22 }
 0x580   : > { %v4891_v14 = vadd.f32 %v4890_v60, %v4860_v8  ;;  %v4972_v8 = vld [vmem:[%s6940_s30 + $0xe8] sm:$0xff] }
 0x582   : > { %v4892_v24 = vadd.f32 %v4891_v14, %v4861_v31 }
 0x584   : > { %v4893_v41 = vadd.f32 %v4892_v24, %v4862_v32 }
 0x586   : > { %v4894_v25 = vadd.f32 %v4893_v41, %v4863_v33 }
 0x588   : > { %v4895_v13 = vadd.f32 %v4894_v25, %v4864_v5 }
 0x58a   : > { %v4896_v11 = vadd.f32 %v4895_v13, %v4865_v6  ;;  %v4943_v6 = vld [vmem:[%s6940_s30] sm:$0xff]  ;;  %v4946_v13 = vld [vmem:[%s6940_s30 + $0x18] sm:$0xff] }
 0x58c   : > { %v4897_v40 = vadd.f32 %v4896_v11, %v4866_v23  ;;  %v4949_v23 = vld [vmem:[%s6940_s30 + $0x30] sm:$0xff]  ;;  %v4948_v11 = vld [vmem:[%s6940_s30 + $0x28] sm:$0xff] }
 0x58e   : > { %v4898_v37 = vadd.f32 %v4897_v40, %v4867_v61  ;;  %v4953_v61 = vld [vmem:[%s6940_s30 + $0x50] sm:$0xff]  ;;  %v4951_v40 = vld [vmem:[%s6940_s30 + $0x40] sm:$0xff] }
 0x590   : > { %v4899_v20 = vadd.f32 %v4898_v37, %v4868_v47  ;;  %v4952_v37 = vld [vmem:[%s6940_s30 + $0x48] sm:$0xff] }
 0x592   : > { %v4900_v15 = vadd.f32 %v4899_v20, %v4869_v46  ;;  %v4957_v46 = vld [vmem:[%s6940_s30 + $0x70] sm:$0xff] }
 0x594   : > { %v4901_v21 = vadd.f32 %v4900_v15, %v4870_v59  ;;  %v4956_v15 = vld [vmem:[%s6940_s30 + $0x68] sm:$0xff] }
 0x596   : > { %v4902_v58 = vrot.slane %v4901_v21, 4 }
 0x598   : > { %v4903_v43 = vadd.f32 %v4902_v58, %v4901_v21  ;;  %v4959_v58 = vld [vmem:[%s6940_s30 + $0x80] sm:$0xff] }
 0x59a   : > { %v4904_v53 = vrot.slane %v4903_v43, 2 }
 0x59c   : > { %v4905_v10 = vadd.f32 %v4904_v53, %v4903_v43  ;;  %v4962_v43 = vld [vmem:[%s6940_s30 + $0x98] sm:$0xff] }
 0x59e   : > { %v4906_v27 = vrot.slane %v4905_v10, 1 }
 0x5a0   : > { %v4907_v9 = vadd.f32 %v4906_v27, %v4905_v10  ;;  %v4960_v27 = vld [vmem:[%s6940_s30 + $0x88] sm:$0xff] }
 0x5a2   : > { %v4908_v29 = vmul.f32 0.00390625, %v4907_v9  ;;  %v4963_v9 = vld [vmem:[%s6940_s30 + $0xa0] sm:$0xff] }
 0x5a4   : > { %v4909_v22 = vadd.f32 1e-05, %v4908_v29 }
 0x5a6   : > { %6569 = vrsqrt.f32 %v4909_v22 }
 0x5b0   : > { %v6570_v50 = vpop.eup %6569 }
 0x5b1   : > { %v4940_v60 = vmul.f32 %v6570_v50, %v8290_v48  ;;  %v4911_v31 = vmul.f32 %v6570_v50, %v8297_v56  ;;  %v4912_v14 = vmul.f32 %v6570_v50, %v8300_v16  ;;  %v4913_v32 = vmul.f32 %v6570_v50, %v8303_v36  ;;  %v4945_v36 = vld [vmem:[%s6940_s30 + $0x10] sm:$0xff] }
 0x5b2   : > { %v4914_v24 = vmul.f32 %v6570_v50, %v8310_v44  ;;  %v4915_v33 = vmul.f32 %v6570_v50, %v8313_v45  ;;  %v4916_v41 = vmul.f32 %v6570_v50, %v8318_v39  ;;  %v4917_v5 = vmul.f32 %v6570_v50, %v8323_v30 }
 0x5b3   : > { %v5004_v48 = vadd.f32 %v4972_v8, %v4940_v60  ;;  %v4918_v56 = vmul.f32 %v6570_v50, %v8328_v2  ;;  %v4919_v16 = vmul.f32 %v6570_v50, %v8240_v63  ;;  %v4920_v25 = vmul.f32 %v6570_v50, %v8243_v55  ;;  %v4944_v2 = vld [vmem:[%s6940_s30 + $0x8] sm:$0xff]  ;;  %v4947_v63 = vld [vmem:[%s6940_s30 + $0x20] sm:$0xff]  ;;  %v4966_v60 = vld [vmem:[%s6940_s30 + $0xb8] sm:$0xff] }
 0x5b4   : > { %v4921_v44 = vmul.f32 %v6570_v50, %v8246_v42  ;;  %v4922_v45 = vmul.f32 %v6570_v50, %v8249_v18  ;;  %v4923_v39 = vmul.f32 %v6570_v50, %v8252_v62  ;;  %v4924_v30 = vmul.f32 %v6570_v50, %v8255_v49  ;;  %v4950_v49 = vld [vmem:[%s6940_s30 + $0x38] sm:$0xff] }
 0x5b5   : > { %5036 = vst [vmem:[%s8408_s18 + $0xe8] sm:$0xff] %v5004_v48  ;;  %v4925_v55 = vmul.f32 %v6570_v50, %v8258_v51  ;;  %v8413_v42 = vmul.f32 %v6570_v50, %v8261_v57  ;;  %v8416_v18 = vmul.f32 %v6570_v50, %v8263_v19  ;;  %v8419_v62 = vmul.f32 %v6570_v50, %v8265_v28  ;;  %v4954_v28 = vld [vmem:[%s6940_s30 + $0x58] sm:$0xff]  ;;  %v4964_v48 = vld [vmem:[%s6940_s30 + $0xa8] sm:$0xff] }
 0x5b6   : > { %v4929_v47 = vmul.f32 %v6570_v50, %v8268_v35  ;;  %v8427_v51 = vmul.f32 %v6570_v50, %v8270_v34  ;;  %v8430_v57 = vmul.f32 %v6570_v50, %v8272_v0  ;;  %v8433_v19 = vmul.f32 %v6570_v50, %v8274_v17  ;;  %v4955_v0 = vld [vmem:[%s6940_s30 + $0x60] sm:$0xff]  ;;  %v4958_v17 = vld [vmem:[%s6940_s30 + $0x78] sm:$0xff] }
 0x5b7   : > { %v4933_v20 = vmul.f32 %v6570_v50, %v8276_v26  ;;  %v8440_v59 = vmul.f32 %v6570_v50, %v8278_v38  ;;  %v8443_v35 = vmul.f32 %v6570_v50, %v8280_v54  ;;  %v8446_v34 = vmul.f32 %v6570_v50, %v8282_v7  ;;  %v4961_v7 = vld [vmem:[%s6940_s30 + $0x90] sm:$0xff] }
 0x5b8   : > { %v8452_v21 = vmul.f32 %v6570_v50, %v8284_v4  ;;  %v8455_v26 = vmul.f32 %v6570_v50, %v8286_v3  ;;  %v8458_v38 = vmul.f32 %v6570_v50, %v8288_v52  ;;  %v8461_v54 = vmul.f32 %v6570_v50, %v8292_v12  ;;  %v4965_v52 = vld [vmem:[%s6940_s30 + $0xb0] sm:$0xff] }
 0x5b9   : > { %v8467_v53 = vmul.f32 %v6570_v50, %v8294_v1  ;;  %v4975_v4 = vadd.f32 %v4943_v6, %v4911_v31  ;;  %v4976_v10 = vadd.f32 %v4944_v2, %v4912_v14  ;;  %v4977_v3 = vadd.f32 %v4945_v36, %v4913_v32  ;;  %v4969_v1 = vld [vmem:[%s6940_s30 + $0xd0] sm:$0xff]  ;;  %v4971_v6 = vld [vmem:[%s6940_s30 + $0xe0] sm:$0xff] }
 0x5ba   : > { %v4978_v12 = vadd.f32 %v4946_v13, %v4914_v24  ;;  %v4979_v29 = vadd.f32 %v4947_v63, %v4915_v33  ;;  %v4980_v22 = vadd.f32 %v4948_v11, %v4916_v41  ;;  %v4981_v8 = vadd.f32 %v4949_v23, %v4917_v5  ;;  %v4967_v24 = vld [vmem:[%s6940_s30 + $0xc0] sm:$0xff]  ;;  %v4970_v33 = vld [vmem:[%s6940_s30 + $0xd8] sm:$0xff]  ;;  %v4968_v41 = vld [vmem:[%s6940_s30 + $0xc8] sm:$0xff] }
 0x5bb   : > { %v4982_v50 = vadd.f32 %v4950_v49, %v4918_v56  ;;  %v4983_v31 = vadd.f32 %v4951_v40, %v4919_v16  ;;  %v4984_v14 = vadd.f32 %v4952_v37, %v4920_v25  ;;  %v4985_v32 = vadd.f32 %v4953_v61, %v4921_v44  ;;  %5007 = vst [vmem:[%s8408_s18] sm:$0xff] %v4975_v4  ;;  %v4973_v25 = vld [vmem:[%s6940_s30 + $0xf0] sm:$0xff]  ;;  %v4974_v44 = vld [vmem:[%s6940_s30 + $0xf8] sm:$0xff] }
 0x5bc   : > { %5008 = vst [vmem:[%s8408_s18 + $0x8] sm:$0xff] %v4976_v10  ;;  %5009 = vst [vmem:[%s8408_s18 + $0x10] sm:$0xff] %v4977_v3  ;;  %v4986_v5 = vadd.f32 %v4954_v28, %v4922_v45  ;;  %v4987_v36 = vadd.f32 %v4955_v0, %v4923_v39  ;;  %v4988_v56 = vadd.f32 %v4956_v15, %v4924_v30 }
 0x5bd   : > { %v4989_v16 = vadd.f32 %v4957_v46, %v4925_v55  ;;  %5010 = vst [vmem:[%s8408_s18 + $0x18] sm:$0xff] %v4978_v12  ;;  %5011 = vst [vmem:[%s8408_s18 + $0x20] sm:$0xff] %v4979_v29  ;;  %v4990_v45 = vadd.f32 %v4958_v17, %v8413_v42  ;;  %v4991_v39 = vadd.f32 %v4959_v58, %v8416_v18 }
 0x5be   : > { %5012 = vst [vmem:[%s8408_s18 + $0x28] sm:$0xff] %v4980_v22  ;;  %5013 = vst [vmem:[%s8408_s18 + $0x30] sm:$0xff] %v4981_v8  ;;  %v4992_v30 = vadd.f32 %v4960_v27, %v8419_v62  ;;  %v4993_v13 = vadd.f32 %v4961_v7, %v4929_v47  ;;  %v4994_v2 = vadd.f32 %v4962_v43, %v8427_v51 }
 0x5bf   : > { %5014 = vst [vmem:[%s8408_s18 + $0x38] sm:$0xff] %v4982_v50  ;;  %5015 = vst [vmem:[%s8408_s18 + $0x40] sm:$0xff] %v4983_v31  ;;  %v4995_v23 = vadd.f32 %v4963_v9, %v8430_v57  ;;  %v4996_v63 = vadd.f32 %v4964_v48, %v8433_v19  ;;  %v4997_v55 = vadd.f32 %v4965_v52, %v4933_v20 }
 0x5c0   : > { %5016 = vst [vmem:[%s8408_s18 + $0x48] sm:$0xff] %v4984_v14  ;;  %5017 = vst [vmem:[%s8408_s18 + $0x50] sm:$0xff] %v4985_v32  ;;  %v4998_v42 = vadd.f32 %v4966_v60, %v8440_v59  ;;  %v4999_v18 = vadd.f32 %v4967_v24, %v8443_v35  ;;  %v5000_v62 = vadd.f32 %v4968_v41, %v8446_v34 }
 0x5c1   : > { %5018 = vst [vmem:[%s8408_s18 + $0x58] sm:$0xff] %v4986_v5  ;;  %5019 = vst [vmem:[%s8408_s18 + $0x60] sm:$0xff] %v4987_v36  ;;  %v5001_v49 = vadd.f32 %v4969_v1, %v8452_v21  ;;  %v5002_v11 = vadd.f32 %v4970_v33, %v8455_v26  ;;  %v5003_v61 = vadd.f32 %v4971_v6, %v8458_v38 }
 0x5c2   : > { %5020 = vst [vmem:[%s8408_s18 + $0x68] sm:$0xff] %v4988_v56  ;;  %5021 = vst [vmem:[%s8408_s18 + $0x70] sm:$0xff] %v4989_v16  ;;  %v5005_v40 = vadd.f32 %v4973_v25, %v8461_v54  ;;  %v5006_v47 = vadd.f32 %v4974_v44, %v8467_v53 }
 0x5c3   : > { %5022 = vst [vmem:[%s8408_s18 + $0x78] sm:$0xff] %v4990_v45  ;;  %5023 = vst [vmem:[%s8408_s18 + $0x80] sm:$0xff] %v4991_v39 }
 0x5c4   : > { %5024 = vst [vmem:[%s8408_s18 + $0x88] sm:$0xff] %v4992_v30  ;;  %5025 = vst [vmem:[%s8408_s18 + $0x90] sm:$0xff] %v4993_v13 }
 0x5c5   : > { %5026 = vst [vmem:[%s8408_s18 + $0x98] sm:$0xff] %v4994_v2  ;;  %5027 = vst [vmem:[%s8408_s18 + $0xa0] sm:$0xff] %v4995_v23 }
 0x5c6   : > { %5028 = vst [vmem:[%s8408_s18 + $0xa8] sm:$0xff] %v4996_v63  ;;  %5029 = vst [vmem:[%s8408_s18 + $0xb0] sm:$0xff] %v4997_v55 }
 0x5c7   : > { %5030 = vst [vmem:[%s8408_s18 + $0xb8] sm:$0xff] %v4998_v42  ;;  %5031 = vst [vmem:[%s8408_s18 + $0xc0] sm:$0xff] %v4999_v18 }
 0x5c8   : > { %5032 = vst [vmem:[%s8408_s18 + $0xc8] sm:$0xff] %v5000_v62  ;;  %5033 = vst [vmem:[%s8408_s18 + $0xd0] sm:$0xff] %v5001_v49 }
 0x5c9   : > { %5034 = vst [vmem:[%s8408_s18 + $0xd8] sm:$0xff] %v5002_v11  ;;  %5035 = vst [vmem:[%s8408_s18 + $0xe0] sm:$0xff] %v5003_v61 }
 0x5ca   : > { %5037 = vst [vmem:[%s8408_s18 + $0xf0] sm:$0xff] %v5005_v40  ;;  %5038 = vst [vmem:[%s8408_s18 + $0xf8] sm:$0xff] %v5006_v47 }
 0x5cb   : > { %6672 = shalt.err (!%p6669_p2)
}
 0x5cc   : > { %s6673_s25 = scalar_lea.hbm %s8517_s27, 4096  ;;  %s6677_s21 = scalar_lea.hbm %s8584_s3, 8192 }
 0x5cd   : > { %p6674_p13 = scmp.ne.s32.totalorder %s8517_s27, %s6673_s25  ;;  %p6678_p4 = scmp.lt.u32.totalorder %s8517_s27, %s8584_s3 }
 0x5ce   : > { %p6679_p5 = scmp.lt.u32.totalorder %s6677_s21, %s6673_s25  ;;  %p6681_p11 = scmp.lt.u32.totalorder %s6673_s25, %s8517_s27 }
 0x5cf   : > { %p6675_p6 = pnand %p6674_p13, %p8598_p0 }
 0x5d0   : > { %p6680_p8 = por %p6679_p5, %p6678_p4 }
 0x5d1   : > { %p6676_p10 = pneg %p6675_p6 }
 0x5d2   : > { %p6682_p1 = por %p6681_p11, %p6680_p8 }
 0x5d4   : > { %p6683_p3 = pnand %p6682_p1, %p6676_p10 }
 0x5d6   : > { %6686 = shalt.err (!%p6683_p3)
}
 0x5d7   : > { %s6740_s30 = smov 128   ;;  %s6741_s18 = smov 8  }
 0x5d8   : > { %6359 = dma.vmem_to_hbm [thread:$0]  (%p8598_p0), %s8521_s17, 4096, %s8517_s27, %s5040_s16, %s6740_s30, %s6740_s30, %s6741_s18  }
 0x5d9 PF: > { %s5068_s20 = sand.u32 1, %s6717_s12   ;;  %p8599_p7 = scmp.ne.s32.totalorder %s8589_s19, 0 }
 0x5da   : > { %p8600_p9 = scmp.ge.s32.totalorder %s6729_s15, 2  ;;  %s5069_s24 = scalar_lea.sflag [#allocation6], %s5068_s20 }
 0x5dc   : > { %p6373_p12 = pnand %p8600_p9, %p8599_p7 }
 0x5de   : > { %6712 = dma.done.wait (!%p6373_p12), %s5069_s24, 4096  }
 0x5df   : > { %6714 = vsyncadd (!%p6373_p12), %s5069_s24, 4294963200  ;;  %p17_p2 = scmp.ge.s32.totalorder %s6872_s4, 4   ;;  %s8601_s12 = smov %s6721_s13 }
 0x5e0   : > { %s8602_s13 = smov %s6725_s14  ;;  %s8603_s14 = smov %s6888_s9 }
 0x5e1   : > { %s8604_s15 = smov %s6872_s4  ;;  %19 = sbr.rel (!%p17_p2) target bundleno = 6 (0x6), region = 88 }
 0x5e8   :  { %5074 = vsyncpa [#allocation5], 1 }
 0x5e9   :  { %5076 = vsyncpa [#allocation5 + $0x1], 1 }
 0x5ea   :  { %5077 = vsyncpa [#allocation8], 1 }
 0x5eb   :  { %5078 = vsyncpa [#allocation6], 1 }
 0x5ec   :  { %5080 = vsyncpa [#allocation6 + $0x1], 1 }

</bundles_post_ra>
